<compile_context>
chip_gen: v6e
topology: v6e:2x2x1
jax: 0.10.0
libtpu: 0.0.40
codegen_flags: <defaults>
</compile_context>

<pallas_src>
import functools
import math

import jax
import jax.numpy as jnp
from jax.experimental import pallas as pl
from jax.experimental.pallas import tpu as pltpu


class Config:
    is_classification = False
    bins = 16


cfg = Config()


# ----------------------------------------------------------------------------
# Pallas kernels: fused GEMM (conv-as-matmul) + folded-BN bias (+res) (+ReLU)
# (BN scale is pre-folded into the bf16 weights on the host side.)
# ----------------------------------------------------------------------------
def _mm_bias_kernel(x_ref, w_ref, b_ref, o_ref, *, relu):
    # x: (TM, K) bf16, w: (K, Cout) bf16, b: (1, Cout) f32 -> o: (TM, Cout) bf16
    acc = jnp.dot(x_ref[...], w_ref[...], preferred_element_type=jnp.float32)
    acc = acc + b_ref[...]
    if relu:
        acc = jnp.maximum(acc, 0.0)
    o_ref[...] = acc.astype(o_ref.dtype)


def _mm_bias_res_kernel(x_ref, w_ref, b_ref, r_ref, o_ref, *, relu):
    # Same as above + residual add (second conv of a BasicBlock: add, then ReLU).
    acc = jnp.dot(x_ref[...], w_ref[...], preferred_element_type=jnp.float32)
    acc = acc + b_ref[...] + r_ref[...].astype(jnp.float32)
    if relu:
        acc = jnp.maximum(acc, 0.0)
    o_ref[...] = acc.astype(o_ref.dtype)


# ----------------------------------------------------------------------------
# Pallas wrappers
# ----------------------------------------------------------------------------
def _pick_tm(m):
    """Tile M with no padding; give the parallel grid >=2 steps when M allows
    (keeps both v7x TensorCores busy). Tiles stay multiples of 16 (bf16 sublanes)."""
    if m < 128:
        return m
    for tm in (256, 128, 64, 32, 16, 8):
        if 2 * tm <= m and m % tm == 0:
            return tm
    return m


def _gemm_bias(xm, wm, bias, residual=None, relu=True):
    m, k = xm.shape
    cout = wm.shape[1]
    tm = _pick_tm(m)

    in_specs = [
        pl.BlockSpec((tm, k), lambda i: (i, 0)),       # patches (bf16)
        pl.BlockSpec((k, cout), lambda i: (0, 0)),     # scale-folded weights (bf16)
        pl.BlockSpec((1, cout), lambda i: (0, 0)),     # folded-BN bias (f32)
    ]
    args = [xm, wm, bias]
    # Allow XLA to fuse the im2col pad/slice/concat (and residual reshape) into the
    # Pallas operands; weights/bias are re-read per grid step -> keep False.
    fuse = [True, False, False]

    if residual is not None:
        in_specs.append(pl.BlockSpec((tm, cout), lambda i: (i, 0)))
        args.append(residual)
        fuse.append(True)
        kernel = functools.partial(_mm_bias_res_kernel, relu=relu)
    else:
        kernel = functools.partial(_mm_bias_kernel, relu=relu)

    return pl.pallas_call(
        kernel,
        out_shape=jax.ShapeDtypeStruct((m, cout), jnp.bfloat16),
        grid=(m // tm,),
        in_specs=in_specs,
        out_specs=pl.BlockSpec((tm, cout), lambda i: (i, 0)),
        compiler_params=pltpu.CompilerParams(
            dimension_semantics=("parallel",),
            allow_input_fusion=fuse,
        ),
    )(*args)


def _im2col(x, kh, kw, stride, pad):
    """x: NHWC -> bf16 patches [N*OH*OW, kh*kw*C] with (kh, kw, cin) ordering."""
    n, h, w, c = x.shape
    x = x.astype(jnp.bfloat16)                      # no-op for bf16 activations
    xp = jnp.pad(x, ((0, 0), (pad, pad), (pad, pad), (0, 0)))
    oh = (h + 2 * pad - kh) // stride + 1
    ow = (w + 2 * pad - kw) // stride + 1
    cols = [
        xp[:, i:i + stride * oh:stride, j:j + stride * ow:stride, :]
        for i in range(kh) for j in range(kw)
    ]
    patches = jnp.concatenate(cols, axis=-1)        # [N, OH, OW, kh*kw*C]
    return patches.reshape(n * oh * ow, kh * kw * c), (n, oh, ow)


def conv_bn(x, layer, kh, kw, stride, pad, relu, residual=None):
    xm, (n, oh, ow) = _im2col(x, kh, kw, stride, pad)
    res_m = None
    if residual is not None:
        res_m = residual.reshape(-1, residual.shape[-1])
    out = _gemm_bias(xm, layer["w"], layer["bias"], res_m, relu)
    return out.reshape(n, oh, ow, -1)


def maxpool3x3_s2_p1(x):
    # 9-tap max as a fused XLA maximum tree (near-zero-compute op): single pass over
    # the activation, no [9,M,C] HBM stack, no extra kernel launch.
    n, h, w, c = x.shape
    neg = jnp.finfo(x.dtype).min
    xp = jnp.pad(x, ((0, 0), (1, 1), (1, 1), (0, 0)), constant_values=neg)
    oh = (h - 1) // 2 + 1
    ow = (w - 1) // 2 + 1
    out = None
    for i in range(3):
        for j in range(3):
            tap = xp[:, i:i + 2 * oh:2, j:j + 2 * ow:2, :]
            out = tap if out is None else jnp.maximum(out, tap)
    return out


def upsample2x_nearest(x):
    # nn.Upsample(scale_factor=2), mode='nearest' — single broadcast + reshape.
    n, h, w, c = x.shape
    x = jnp.broadcast_to(x[:, :, None, :, None, :], (n, h, 2, w, 2, c))
    return x.reshape(n, 2 * h, 2 * w, c)


# ----------------------------------------------------------------------------
# Deterministic parameter construction (synthetic, matches module shapes)
# ----------------------------------------------------------------------------
def _init_bn(key, c, eps=1e-5):
    k1, k2, k3, k4 = jax.random.split(key, 4)
    gamma = 1.0 + 0.1 * jax.random.normal(k1, (c,), jnp.float32)
    beta = 0.1 * jax.random.normal(k2, (c,), jnp.float32)
    mean = 0.1 * jax.random.normal(k3, (c,), jnp.float32)
    var = 1.0 + 0.1 * jnp.abs(jax.random.normal(k4, (c,), jnp.float32))
    s = gamma / jnp.sqrt(var + eps)
    b = beta - mean * s
    return s.reshape(1, c), b.reshape(1, c)


def _make_conv_bn(key, kh, kw, cin, cout, conv_bias=False):
    kw_, kb_, kbn_ = jax.random.split(key, 3)
    w = jax.random.normal(kw_, (kh, kw, cin, cout), jnp.float32) / math.sqrt(kh * kw * cin)
    s, b = _init_bn(kbn_, cout)
    if conv_bias:
        cb = 0.05 * jax.random.normal(kb_, (1, cout), jnp.float32)
        b = b + s * cb                              # fold conv bias through folded BN
    # Fold the BN scale into the (f32) weights before the bf16 cast: the kernel
    # epilogue becomes a pure bias add.
    wf = w.reshape(kh * kw * cin, cout) * s
    return {"w": wf.astype(jnp.bfloat16), "bias": b}


def _make_conv_padded(key, kh, kw, cin, cout_real, cout_pad):
    # Plain conv (bias, no BN, no ReLU); Cout zero-padded to a lane-dense width so
    # the Pallas output block is 128 lanes wide (real channels sliced in wrapper).
    kw_, kb_ = jax.random.split(key, 2)
    w = jax.random.normal(kw_, (kh, kw, cin, cout_real), jnp.float32) / math.sqrt(kh * kw * cin)
    b = 0.05 * jax.random.normal(kb_, (1, cout_real), jnp.float32)
    wf = jnp.pad(w.reshape(kh * kw * cin, cout_real), ((0, 0), (0, cout_pad - cout_real)))
    bf = jnp.pad(b, ((0, 0), (0, cout_pad - cout_real)))
    return {"w": wf.astype(jnp.bfloat16), "bias": bf}


def make_params(seed=0):
    keys = jax.random.split(jax.random.PRNGKey(seed), 16)
    p = {}
    # Backbone: ResNet-18 children[0:6], conv1 modified to 1 input channel.
    p["conv1"] = _make_conv_bn(keys[0], 7, 7, 1, 64)                    # conv1 + bn1
    p["l1b1_c1"] = _make_conv_bn(keys[1], 3, 3, 64, 64)
    p["l1b1_c2"] = _make_conv_bn(keys[2], 3, 3, 64, 64)
    p["l1b2_c1"] = _make_conv_bn(keys[3], 3, 3, 64, 64)
    p["l1b2_c2"] = _make_conv_bn(keys[4], 3, 3, 64, 64)
    p["l2b1_c1"] = _make_conv_bn(keys[5], 3, 3, 64, 128)                # stride 2
    p["l2b1_c2"] = _make_conv_bn(keys[6], 3, 3, 128, 128)
    p["l2b1_ds"] = _make_conv_bn(keys[7], 1, 1, 64, 128)                # downsample, stride 2
    p["l2b2_c1"] = _make_conv_bn(keys[8], 3, 3, 128, 128)
    p["l2b2_c2"] = _make_conv_bn(keys[9], 3, 3, 128, 128)
    # Upsample head (nn.Conv2d defaults -> bias=True, folded through BN).
    p["u1"] = _make_conv_bn(keys[10], 3, 3, 128, 128, conv_bias=True)
    p["u2"] = _make_conv_bn(keys[11], 3, 3, 128, 64, conv_bias=True)
    p["u3"] = _make_conv_bn(keys[12], 3, 3, 64, 64, conv_bias=True)
    p["u4"] = _make_conv_bn(keys[13], 3, 3, 64, 32, conv_bias=True)
    p["convr"] = _make_conv_padded(keys[14], 3, 3, 32, 2, 128)          # bias, no BN/ReLU
    return p


# ----------------------------------------------------------------------------
# Forward pass
# ----------------------------------------------------------------------------
def _basic_block(x, c1, c2, ds=None, stride=1):
    if ds is None:
        identity = x
    else:
        identity = conv_bn(x, ds, 1, 1, stride=stride, pad=0, relu=False)
    out = conv_bn(x, c1, 3, 3, stride=stride, pad=1, relu=True)
    out = conv_bn(out, c2, 3, 3, stride=1, pad=1, relu=True, residual=identity)
    return out


def colornet_forward(x_nchw, p):
    x = jnp.transpose(x_nchw, (0, 2, 3, 1)).astype(jnp.bfloat16)  # -> NHWC bf16

    # Backbone (ResNet-18 children 0..5)
    x = conv_bn(x, p["conv1"], 7, 7, stride=2, pad=3, relu=True)  # H/2,  64 ch
    x = maxpool3x3_s2_p1(x)                                       # H/4
    x = _basic_block(x, p["l1b1_c1"], p["l1b1_c2"])
    x = _basic_block(x, p["l1b2_c1"], p["l1b2_c2"])
    x = _basic_block(x, p["l2b1_c1"], p["l2b1_c2"], ds=p["l2b1_ds"], stride=2)  # H/8, 128
    x = _basic_block(x, p["l2b2_c1"], p["l2b2_c2"])

    # Upsample head (regression branch: cfg.is_classification == False)
    x = conv_bn(x, p["u1"], 3, 3, 1, 1, relu=True)
    x = upsample2x_nearest(x)                                     # H/4
    x = conv_bn(x, p["u2"], 3, 3, 1, 1, relu=True)
    x = conv_bn(x, p["u3"], 3, 3, 1, 1, relu=True)
    x = upsample2x_nearest(x)                                     # H/2
    x = conv_bn(x, p["u4"], 3, 3, 1, 1, relu=True)
    x = conv_bn(x, p["convr"], 3, 3, 1, 1, relu=False)            # lane-dense 128-wide out
    x = x[..., :2]                                                # real 2 channels
    x = upsample2x_nearest(x)                                     # H

    return jnp.transpose(x, (0, 3, 1, 2)).astype(jnp.float32)     # -> NCHW f32


if __name__ == "__main__":
    params = make_params(seed=0)
    x = jax.random.normal(jax.random.PRNGKey(0), (2, 1, 32, 32), jnp.float32)
    out = jax.jit(colornet_forward)(x, params)
    out = jax.block_until_ready(out)
    assert out.shape == (2, 2, 32, 32), out.shape
    assert bool(jnp.all(jnp.isfinite(out)))
    print("KERNEL_OK")
</pallas_src>

<mosaic_0001>
module attributes {stable_mosaic.version = 11 : i64} {
  func.func @_mm_bias_kernel(%arg0: i32, %arg1: memref<256x49xbf16, #tpu.memory_space<vmem>>, %arg2: memref<49x64xbf16, #tpu.memory_space<vmem>>, %arg3: memref<1x64xf32, #tpu.memory_space<vmem>>, %arg4: memref<256x64xbf16, #tpu.memory_space<vmem>>) attributes {dimension_semantics = [#tpu.dimension_semantics<parallel>], iteration_bounds = array<i64: 2>, scalar_prefetch = 0 : i64, scratch_operands = 0 : i64, tpu.core_type = #tpu.core_type<tc>, window_params = [{transform_indices = @transform_0, window_bounds = array<i64: 256, 49>}, {pipeline_mode = #tpu.pipeline_mode<synchronous>, transform_indices = @transform_1, window_bounds = array<i64: 49, 64>}, {pipeline_mode = #tpu.pipeline_mode<synchronous>, transform_indices = @transform_2, window_bounds = array<i64: 1, 64>}, {transform_indices = @transform_3, window_bounds = array<i64: 256, 64>}]} {
    %c0 = arith.constant 0 : index
    %c0_0 = arith.constant 0 : index
    %0 = vector.load %arg1[%c0, %c0_0] : memref<256x49xbf16, #tpu.memory_space<vmem>>, vector<256x49xbf16>
    %c0_1 = arith.constant 0 : index
    %c0_2 = arith.constant 0 : index
    %1 = vector.load %arg2[%c0_1, %c0_2] : memref<49x64xbf16, #tpu.memory_space<vmem>>, vector<49x64xbf16>
    %cst = arith.constant dense<0.000000e+00> : vector<256x64xf32>
    %2 = tpu.matmul %0, %1, %cst {dimension_numbers = #tpu.dot_dimension_numbers<[1], [0], [0], [1], [0, 0, 1, 1], [], []>} : vector<256x49xbf16>, vector<49x64xbf16>, vector<256x64xf32> -> vector<256x64xf32>
    %c0_3 = arith.constant 0 : index
    %c0_4 = arith.constant 0 : index
    %3 = vector.load %arg3[%c0_3, %c0_4] : memref<1x64xf32, #tpu.memory_space<vmem>>, vector<1x64xf32>
    %4 = vector.broadcast %3 : vector<1x64xf32> to vector<256x64xf32>
    %5 = arith.addf %2, %4 : vector<256x64xf32>
    %cst_5 = arith.constant 0.000000e+00 : f32
    %6 = vector.broadcast %cst_5 : f32 to vector<256x64xf32>
    %7 = arith.maximumf %5, %6 : vector<256x64xf32>
    %8 = arith.truncf %7 : vector<256x64xf32> to vector<256x64xbf16>
    %c0_6 = arith.constant 0 : index
    %c0_7 = arith.constant 0 : index
    %9 = vector.load %arg4[%c0_6, %c0_7] : memref<256x64xbf16, #tpu.memory_space<vmem>>, vector<256x64xbf16>
    tpu.vector_store %arg4[%c0_6, %c0_7], %8 {strides = array<i32>} : memref<256x64xbf16, #tpu.memory_space<vmem>>, vector<256x64xbf16>,
    return
  }
  func.func @transform_0(%arg0: i32) -> (i32, i32) {
    %c0_i32 = arith.constant 0 : i32
    %c0_i32_0 = arith.constant 0 : i32
    return %arg0, %c0_i32 : i32, i32
  }
  func.func @transform_1(%arg0: i32) -> (i32, i32) {
    %c0_i32 = arith.constant 0 : i32
    %c0_i32_0 = arith.constant 0 : i32
    %c0_i32_1 = arith.constant 0 : i32
    return %c0_i32, %c0_i32_0 : i32, i32
  }
  func.func @transform_2(%arg0: i32) -> (i32, i32) {
    %c0_i32 = arith.constant 0 : i32
    %c0_i32_0 = arith.constant 0 : i32
    %c0_i32_1 = arith.constant 0 : i32
    return %c0_i32, %c0_i32_0 : i32, i32
  }
  func.func @transform_3(%arg0: i32) -> (i32, i32) {
    %c0_i32 = arith.constant 0 : i32
    %c0_i32_0 = arith.constant 0 : i32
    return %arg0, %c0_i32 : i32, i32
  }
}

module attributes {stable_mosaic.version = 11 : i64} {
  func.func @_mm_bias_kernel(%arg0: i32, %arg1: memref<64x576xbf16, #tpu.memory_space<vmem>>, %arg2: memref<576x64xbf16, #tpu.memory_space<vmem>>, %arg3: memref<1x64xf32, #tpu.memory_space<vmem>>, %arg4: memref<64x64xbf16, #tpu.memory_space<vmem>>) attributes {dimension_semantics = [#tpu.dimension_semantics<parallel>], iteration_bounds = array<i64: 2>, scalar_prefetch = 0 : i64, scratch_operands = 0 : i64, tpu.core_type = #tpu.core_type<tc>, window_params = [{transform_indices = @transform_0, window_bounds = array<i64: 64, 576>}, {pipeline_mode = #tpu.pipeline_mode<synchronous>, transform_indices = @transform_1, window_bounds = array<i64: 576, 64>}, {pipeline_mode = #tpu.pipeline_mode<synchronous>, transform_indices = @transform_2, window_bounds = array<i64: 1, 64>}, {transform_indices = @transform_3, window_bounds = array<i64: 64, 64>}]} {
    %c0 = arith.constant 0 : index
    %c0_0 = arith.constant 0 : index
    %0 = vector.load %arg1[%c0, %c0_0] : memref<64x576xbf16, #tpu.memory_space<vmem>>, vector<64x576xbf16>
    %c0_1 = arith.constant 0 : index
    %c0_2 = arith.constant 0 : index
    %1 = vector.load %arg2[%c0_1, %c0_2] : memref<576x64xbf16, #tpu.memory_space<vmem>>, vector<576x64xbf16>
    %cst = arith.constant dense<0.000000e+00> : vector<64x64xf32>
    %2 = tpu.matmul %0, %1, %cst {dimension_numbers = #tpu.dot_dimension_numbers<[1], [0], [0], [1], [0, 0, 1, 1], [], []>} : vector<64x576xbf16>, vector<576x64xbf16>, vector<64x64xf32> -> vector<64x64xf32>
    %c0_3 = arith.constant 0 : index
    %c0_4 = arith.constant 0 : index
    %3 = vector.load %arg3[%c0_3, %c0_4] : memref<1x64xf32, #tpu.memory_space<vmem>>, vector<1x64xf32>
    %4 = vector.broadcast %3 : vector<1x64xf32> to vector<64x64xf32>
    %5 = arith.addf %2, %4 : vector<64x64xf32>
    %cst_5 = arith.constant 0.000000e+00 : f32
    %6 = vector.broadcast %cst_5 : f32 to vector<64x64xf32>
    %7 = arith.maximumf %5, %6 : vector<64x64xf32>
    %8 = arith.truncf %7 : vector<64x64xf32> to vector<64x64xbf16>
    %c0_6 = arith.constant 0 : index
    %c0_7 = arith.constant 0 : index
    %9 = vector.load %arg4[%c0_6, %c0_7] : memref<64x64xbf16, #tpu.memory_space<vmem>>, vector<64x64xbf16>
    tpu.vector_store %arg4[%c0_6, %c0_7], %8 {strides = array<i32>} : memref<64x64xbf16, #tpu.memory_space<vmem>>, vector<64x64xbf16>,
    return
  }
  func.func @transform_0(%arg0: i32) -> (i32, i32) {
    %c0_i32 = arith.constant 0 : i32
    %c0_i32_0 = arith.constant 0 : i32
    return %arg0, %c0_i32 : i32, i32
  }
  func.func @transform_1(%arg0: i32) -> (i32, i32) {
    %c0_i32 = arith.constant 0 : i32
    %c0_i32_0 = arith.constant 0 : i32
    %c0_i32_1 = arith.constant 0 : i32
    return %c0_i32, %c0_i32_0 : i32, i32
  }
  func.func @transform_2(%arg0: i32) -> (i32, i32) {
    %c0_i32 = arith.constant 0 : i32
    %c0_i32_0 = arith.constant 0 : i32
    %c0_i32_1 = arith.constant 0 : i32
    return %c0_i32, %c0_i32_0 : i32, i32
  }
  func.func @transform_3(%arg0: i32) -> (i32, i32) {
    %c0_i32 = arith.constant 0 : i32
    %c0_i32_0 = arith.constant 0 : i32
    return %arg0, %c0_i32 : i32, i32
  }
}

module attributes {stable_mosaic.version = 11 : i64} {
  func.func @_mm_bias_res_kernel(%arg0: i32, %arg1: memref<64x576xbf16, #tpu.memory_space<vmem>>, %arg2: memref<576x64xbf16, #tpu.memory_space<vmem>>, %arg3: memref<1x64xf32, #tpu.memory_space<vmem>>, %arg4: memref<64x64xbf16, #tpu.memory_space<vmem>>, %arg5: memref<64x64xbf16, #tpu.memory_space<vmem>>) attributes {dimension_semantics = [#tpu.dimension_semantics<parallel>], iteration_bounds = array<i64: 2>, scalar_prefetch = 0 : i64, scratch_operands = 0 : i64, tpu.core_type = #tpu.core_type<tc>, window_params = [{transform_indices = @transform_0, window_bounds = array<i64: 64, 576>}, {pipeline_mode = #tpu.pipeline_mode<synchronous>, transform_indices = @transform_1, window_bounds = array<i64: 576, 64>}, {pipeline_mode = #tpu.pipeline_mode<synchronous>, transform_indices = @transform_2, window_bounds = array<i64: 1, 64>}, {transform_indices = @transform_3, window_bounds = array<i64: 64, 64>}, {transform_indices = @transform_4, window_bounds = array<i64: 64, 64>}]} {
    %c0 = arith.constant 0 : index
    %c0_0 = arith.constant 0 : index
    %0 = vector.load %arg1[%c0, %c0_0] : memref<64x576xbf16, #tpu.memory_space<vmem>>, vector<64x576xbf16>
    %c0_1 = arith.constant 0 : index
    %c0_2 = arith.constant 0 : index
    %1 = vector.load %arg2[%c0_1, %c0_2] : memref<576x64xbf16, #tpu.memory_space<vmem>>, vector<576x64xbf16>
    %cst = arith.constant dense<0.000000e+00> : vector<64x64xf32>
    %2 = tpu.matmul %0, %1, %cst {dimension_numbers = #tpu.dot_dimension_numbers<[1], [0], [0], [1], [0, 0, 1, 1], [], []>} : vector<64x576xbf16>, vector<576x64xbf16>, vector<64x64xf32> -> vector<64x64xf32>
    %c0_3 = arith.constant 0 : index
    %c0_4 = arith.constant 0 : index
    %3 = vector.load %arg3[%c0_3, %c0_4] : memref<1x64xf32, #tpu.memory_space<vmem>>, vector<1x64xf32>
    %4 = vector.broadcast %3 : vector<1x64xf32> to vector<64x64xf32>
    %5 = arith.addf %2, %4 : vector<64x64xf32>
    %c0_5 = arith.constant 0 : index
    %c0_6 = arith.constant 0 : index
    %6 = vector.load %arg4[%c0_5, %c0_6] : memref<64x64xbf16, #tpu.memory_space<vmem>>, vector<64x64xbf16>
    %7 = arith.extf %6 : vector<64x64xbf16> to vector<64x64xf32>
    %8 = arith.addf %5, %7 : vector<64x64xf32>
    %cst_7 = arith.constant 0.000000e+00 : f32
    %9 = vector.broadcast %cst_7 : f32 to vector<64x64xf32>
    %10 = arith.maximumf %8, %9 : vector<64x64xf32>
    %11 = arith.truncf %10 : vector<64x64xf32> to vector<64x64xbf16>
    %c0_8 = arith.constant 0 : index
    %c0_9 = arith.constant 0 : index
    %12 = vector.load %arg5[%c0_8, %c0_9] : memref<64x64xbf16, #tpu.memory_space<vmem>>, vector<64x64xbf16>
    tpu.vector_store %arg5[%c0_8, %c0_9], %11 {strides = array<i32>} : memref<64x64xbf16, #tpu.memory_space<vmem>>, vector<64x64xbf16>,
    return
  }
  func.func @transform_0(%arg0: i32) -> (i32, i32) {
    %c0_i32 = arith.constant 0 : i32
    %c0_i32_0 = arith.constant 0 : i32
    return %arg0, %c0_i32 : i32, i32
  }
  func.func @transform_1(%arg0: i32) -> (i32, i32) {
    %c0_i32 = arith.constant 0 : i32
    %c0_i32_0 = arith.constant 0 : i32
    %c0_i32_1 = arith.constant 0 : i32
    return %c0_i32, %c0_i32_0 : i32, i32
  }
  func.func @transform_2(%arg0: i32) -> (i32, i32) {
    %c0_i32 = arith.constant 0 : i32
    %c0_i32_0 = arith.constant 0 : i32
    %c0_i32_1 = arith.constant 0 : i32
    return %c0_i32, %c0_i32_0 : i32, i32
  }
  func.func @transform_3(%arg0: i32) -> (i32, i32) {
    %c0_i32 = arith.constant 0 : i32
    %c0_i32_0 = arith.constant 0 : i32
    return %arg0, %c0_i32 : i32, i32
  }
  func.func @transform_4(%arg0: i32) -> (i32, i32) {
    %c0_i32 = arith.constant 0 : i32
    %c0_i32_0 = arith.constant 0 : i32
    return %arg0, %c0_i32 : i32, i32
  }
}

module attributes {stable_mosaic.version = 11 : i64} {
  func.func @_mm_bias_kernel(%arg0: i32, %arg1: memref<32x64xbf16, #tpu.memory_space<vmem>>, %arg2: memref<64x128xbf16, #tpu.memory_space<vmem>>, %arg3: memref<1x128xf32, #tpu.memory_space<vmem>>, %arg4: memref<32x128xbf16, #tpu.memory_space<vmem>>) attributes {dimension_semantics = [#tpu.dimension_semantics<parallel>], iteration_bounds = array<i64: 1>, scalar_prefetch = 0 : i64, scratch_operands = 0 : i64, tpu.core_type = #tpu.core_type<tc>, window_params = [{transform_indices = @transform_0, window_bounds = array<i64: 32, 64>}, {pipeline_mode = #tpu.pipeline_mode<synchronous>, transform_indices = @transform_1, window_bounds = array<i64: 64, 128>}, {pipeline_mode = #tpu.pipeline_mode<synchronous>, transform_indices = @transform_2, window_bounds = array<i64: 1, 128>}, {transform_indices = @transform_3, window_bounds = array<i64: 32, 128>}]} {
    %c0 = arith.constant 0 : index
    %c0_0 = arith.constant 0 : index
    %0 = vector.load %arg1[%c0, %c0_0] : memref<32x64xbf16, #tpu.memory_space<vmem>>, vector<32x64xbf16>
    %c0_1 = arith.constant 0 : index
    %c0_2 = arith.constant 0 : index
    %1 = vector.load %arg2[%c0_1, %c0_2] : memref<64x128xbf16, #tpu.memory_space<vmem>>, vector<64x128xbf16>
    %cst = arith.constant dense<0.000000e+00> : vector<32x128xf32>
    %2 = tpu.matmul %0, %1, %cst {dimension_numbers = #tpu.dot_dimension_numbers<[1], [0], [0], [1], [0, 0, 1, 1], [], []>} : vector<32x64xbf16>, vector<64x128xbf16>, vector<32x128xf32> -> vector<32x128xf32>
    %c0_3 = arith.constant 0 : index
    %c0_4 = arith.constant 0 : index
    %3 = vector.load %arg3[%c0_3, %c0_4] : memref<1x128xf32, #tpu.memory_space<vmem>>, vector<1x128xf32>
    %4 = vector.broadcast %3 : vector<1x128xf32> to vector<32x128xf32>
    %5 = arith.addf %2, %4 : vector<32x128xf32>
    %6 = arith.truncf %5 : vector<32x128xf32> to vector<32x128xbf16>
    %c0_5 = arith.constant 0 : index
    %c0_6 = arith.constant 0 : index
    %7 = vector.load %arg4[%c0_5, %c0_6] : memref<32x128xbf16, #tpu.memory_space<vmem>>, vector<32x128xbf16>
    tpu.vector_store %arg4[%c0_5, %c0_6], %6 {strides = array<i32>} : memref<32x128xbf16, #tpu.memory_space<vmem>>, vector<32x128xbf16>,
    return
  }
  func.func @transform_0(%arg0: i32) -> (i32, i32) {
    %c0_i32 = arith.constant 0 : i32
    %c0_i32_0 = arith.constant 0 : i32
    return %arg0, %c0_i32 : i32, i32
  }
  func.func @transform_1(%arg0: i32) -> (i32, i32) {
    %c0_i32 = arith.constant 0 : i32
    %c0_i32_0 = arith.constant 0 : i32
    %c0_i32_1 = arith.constant 0 : i32
    return %c0_i32, %c0_i32_0 : i32, i32
  }
  func.func @transform_2(%arg0: i32) -> (i32, i32) {
    %c0_i32 = arith.constant 0 : i32
    %c0_i32_0 = arith.constant 0 : i32
    %c0_i32_1 = arith.constant 0 : i32
    return %c0_i32, %c0_i32_0 : i32, i32
  }
  func.func @transform_3(%arg0: i32) -> (i32, i32) {
    %c0_i32 = arith.constant 0 : i32
    %c0_i32_0 = arith.constant 0 : i32
    return %arg0, %c0_i32 : i32, i32
  }
}

module attributes {stable_mosaic.version = 11 : i64} {
  func.func @_mm_bias_kernel(%arg0: i32, %arg1: memref<32x576xbf16, #tpu.memory_space<vmem>>, %arg2: memref<576x128xbf16, #tpu.memory_space<vmem>>, %arg3: memref<1x128xf32, #tpu.memory_space<vmem>>, %arg4: memref<32x128xbf16, #tpu.memory_space<vmem>>) attributes {dimension_semantics = [#tpu.dimension_semantics<parallel>], iteration_bounds = array<i64: 1>, scalar_prefetch = 0 : i64, scratch_operands = 0 : i64, tpu.core_type = #tpu.core_type<tc>, window_params = [{transform_indices = @transform_0, window_bounds = array<i64: 32, 576>}, {pipeline_mode = #tpu.pipeline_mode<synchronous>, transform_indices = @transform_1, window_bounds = array<i64: 576, 128>}, {pipeline_mode = #tpu.pipeline_mode<synchronous>, transform_indices = @transform_2, window_bounds = array<i64: 1, 128>}, {transform_indices = @transform_3, window_bounds = array<i64: 32, 128>}]} {
    %c0 = arith.constant 0 : index
    %c0_0 = arith.constant 0 : index
    %0 = vector.load %arg1[%c0, %c0_0] : memref<32x576xbf16, #tpu.memory_space<vmem>>, vector<32x576xbf16>
    %c0_1 = arith.constant 0 : index
    %c0_2 = arith.constant 0 : index
    %1 = vector.load %arg2[%c0_1, %c0_2] : memref<576x128xbf16, #tpu.memory_space<vmem>>, vector<576x128xbf16>
    %cst = arith.constant dense<0.000000e+00> : vector<32x128xf32>
    %2 = tpu.matmul %0, %1, %cst {dimension_numbers = #tpu.dot_dimension_numbers<[1], [0], [0], [1], [0, 0, 1, 1], [], []>} : vector<32x576xbf16>, vector<576x128xbf16>, vector<32x128xf32> -> vector<32x128xf32>
    %c0_3 = arith.constant 0 : index
    %c0_4 = arith.constant 0 : index
    %3 = vector.load %arg3[%c0_3, %c0_4] : memref<1x128xf32, #tpu.memory_space<vmem>>, vector<1x128xf32>
    %4 = vector.broadcast %3 : vector<1x128xf32> to vector<32x128xf32>
    %5 = arith.addf %2, %4 : vector<32x128xf32>
    %cst_5 = arith.constant 0.000000e+00 : f32
    %6 = vector.broadcast %cst_5 : f32 to vector<32x128xf32>
    %7 = arith.maximumf %5, %6 : vector<32x128xf32>
    %8 = arith.truncf %7 : vector<32x128xf32> to vector<32x128xbf16>
    %c0_6 = arith.constant 0 : index
    %c0_7 = arith.constant 0 : index
    %9 = vector.load %arg4[%c0_6, %c0_7] : memref<32x128xbf16, #tpu.memory_space<vmem>>, vector<32x128xbf16>
    tpu.vector_store %arg4[%c0_6, %c0_7], %8 {strides = array<i32>} : memref<32x128xbf16, #tpu.memory_space<vmem>>, vector<32x128xbf16>,
    return
  }
  func.func @transform_0(%arg0: i32) -> (i32, i32) {
    %c0_i32 = arith.constant 0 : i32
    %c0_i32_0 = arith.constant 0 : i32
    return %arg0, %c0_i32 : i32, i32
  }
  func.func @transform_1(%arg0: i32) -> (i32, i32) {
    %c0_i32 = arith.constant 0 : i32
    %c0_i32_0 = arith.constant 0 : i32
    %c0_i32_1 = arith.constant 0 : i32
    return %c0_i32, %c0_i32_0 : i32, i32
  }
  func.func @transform_2(%arg0: i32) -> (i32, i32) {
    %c0_i32 = arith.constant 0 : i32
    %c0_i32_0 = arith.constant 0 : i32
    %c0_i32_1 = arith.constant 0 : i32
    return %c0_i32, %c0_i32_0 : i32, i32
  }
  func.func @transform_3(%arg0: i32) -> (i32, i32) {
    %c0_i32 = arith.constant 0 : i32
    %c0_i32_0 = arith.constant 0 : i32
    return %arg0, %c0_i32 : i32, i32
  }
}

module attributes {stable_mosaic.version = 11 : i64} {
  func.func @_mm_bias_res_kernel(%arg0: i32, %arg1: memref<32x1152xbf16, #tpu.memory_space<vmem>>, %arg2: memref<1152x128xbf16, #tpu.memory_space<vmem>>, %arg3: memref<1x128xf32, #tpu.memory_space<vmem>>, %arg4: memref<32x128xbf16, #tpu.memory_space<vmem>>, %arg5: memref<32x128xbf16, #tpu.memory_space<vmem>>) attributes {dimension_semantics = [#tpu.dimension_semantics<parallel>], iteration_bounds = array<i64: 1>, scalar_prefetch = 0 : i64, scratch_operands = 0 : i64, tpu.core_type = #tpu.core_type<tc>, window_params = [{transform_indices = @transform_0, window_bounds = array<i64: 32, 1152>}, {pipeline_mode = #tpu.pipeline_mode<synchronous>, transform_indices = @transform_1, window_bounds = array<i64: 1152, 128>}, {pipeline_mode = #tpu.pipeline_mode<synchronous>, transform_indices = @transform_2, window_bounds = array<i64: 1, 128>}, {transform_indices = @transform_3, window_bounds = array<i64: 32, 128>}, {transform_indices = @transform_4, window_bounds = array<i64: 32, 128>}]} {
    %c0 = arith.constant 0 : index
    %c0_0 = arith.constant 0 : index
    %0 = vector.load %arg1[%c0, %c0_0] : memref<32x1152xbf16, #tpu.memory_space<vmem>>, vector<32x1152xbf16>
    %c0_1 = arith.constant 0 : index
    %c0_2 = arith.constant 0 : index
    %1 = vector.load %arg2[%c0_1, %c0_2] : memref<1152x128xbf16, #tpu.memory_space<vmem>>, vector<1152x128xbf16>
    %cst = arith.constant dense<0.000000e+00> : vector<32x128xf32>
    %2 = tpu.matmul %0, %1, %cst {dimension_numbers = #tpu.dot_dimension_numbers<[1], [0], [0], [1], [0, 0, 1, 1], [], []>} : vector<32x1152xbf16>, vector<1152x128xbf16>, vector<32x128xf32> -> vector<32x128xf32>
    %c0_3 = arith.constant 0 : index
    %c0_4 = arith.constant 0 : index
    %3 = vector.load %arg3[%c0_3, %c0_4] : memref<1x128xf32, #tpu.memory_space<vmem>>, vector<1x128xf32>
    %4 = vector.broadcast %3 : vector<1x128xf32> to vector<32x128xf32>
    %5 = arith.addf %2, %4 : vector<32x128xf32>
    %c0_5 = arith.constant 0 : index
    %c0_6 = arith.constant 0 : index
    %6 = vector.load %arg4[%c0_5, %c0_6] : memref<32x128xbf16, #tpu.memory_space<vmem>>, vector<32x128xbf16>
    %7 = arith.extf %6 : vector<32x128xbf16> to vector<32x128xf32>
    %8 = arith.addf %5, %7 : vector<32x128xf32>
    %cst_7 = arith.constant 0.000000e+00 : f32
    %9 = vector.broadcast %cst_7 : f32 to vector<32x128xf32>
    %10 = arith.maximumf %8, %9 : vector<32x128xf32>
    %11 = arith.truncf %10 : vector<32x128xf32> to vector<32x128xbf16>
    %c0_8 = arith.constant 0 : index
    %c0_9 = arith.constant 0 : index
    %12 = vector.load %arg5[%c0_8, %c0_9] : memref<32x128xbf16, #tpu.memory_space<vmem>>, vector<32x128xbf16>
    tpu.vector_store %arg5[%c0_8, %c0_9], %11 {strides = array<i32>} : memref<32x128xbf16, #tpu.memory_space<vmem>>, vector<32x128xbf16>,
    return
  }
  func.func @transform_0(%arg0: i32) -> (i32, i32) {
    %c0_i32 = arith.constant 0 : i32
    %c0_i32_0 = arith.constant 0 : i32
    return %arg0, %c0_i32 : i32, i32
  }
  func.func @transform_1(%arg0: i32) -> (i32, i32) {
    %c0_i32 = arith.constant 0 : i32
    %c0_i32_0 = arith.constant 0 : i32
    %c0_i32_1 = arith.constant 0 : i32
    return %c0_i32, %c0_i32_0 : i32, i32
  }
  func.func @transform_2(%arg0: i32) -> (i32, i32) {
    %c0_i32 = arith.constant 0 : i32
    %c0_i32_0 = arith.constant 0 : i32
    %c0_i32_1 = arith.constant 0 : i32
    return %c0_i32, %c0_i32_0 : i32, i32
  }
  func.func @transform_3(%arg0: i32) -> (i32, i32) {
    %c0_i32 = arith.constant 0 : i32
    %c0_i32_0 = arith.constant 0 : i32
    return %arg0, %c0_i32 : i32, i32
  }
  func.func @transform_4(%arg0: i32) -> (i32, i32) {
    %c0_i32 = arith.constant 0 : i32
    %c0_i32_0 = arith.constant 0 : i32
    return %arg0, %c0_i32 : i32, i32
  }
}

module attributes {stable_mosaic.version = 11 : i64} {
  func.func @_mm_bias_kernel(%arg0: i32, %arg1: memref<32x1152xbf16, #tpu.memory_space<vmem>>, %arg2: memref<1152x128xbf16, #tpu.memory_space<vmem>>, %arg3: memref<1x128xf32, #tpu.memory_space<vmem>>, %arg4: memref<32x128xbf16, #tpu.memory_space<vmem>>) attributes {dimension_semantics = [#tpu.dimension_semantics<parallel>], iteration_bounds = array<i64: 1>, scalar_prefetch = 0 : i64, scratch_operands = 0 : i64, tpu.core_type = #tpu.core_type<tc>, window_params = [{transform_indices = @transform_0, window_bounds = array<i64: 32, 1152>}, {pipeline_mode = #tpu.pipeline_mode<synchronous>, transform_indices = @transform_1, window_bounds = array<i64: 1152, 128>}, {pipeline_mode = #tpu.pipeline_mode<synchronous>, transform_indices = @transform_2, window_bounds = array<i64: 1, 128>}, {transform_indices = @transform_3, window_bounds = array<i64: 32, 128>}]} {
    %c0 = arith.constant 0 : index
    %c0_0 = arith.constant 0 : index
    %0 = vector.load %arg1[%c0, %c0_0] : memref<32x1152xbf16, #tpu.memory_space<vmem>>, vector<32x1152xbf16>
    %c0_1 = arith.constant 0 : index
    %c0_2 = arith.constant 0 : index
    %1 = vector.load %arg2[%c0_1, %c0_2] : memref<1152x128xbf16, #tpu.memory_space<vmem>>, vector<1152x128xbf16>
    %cst = arith.constant dense<0.000000e+00> : vector<32x128xf32>
    %2 = tpu.matmul %0, %1, %cst {dimension_numbers = #tpu.dot_dimension_numbers<[1], [0], [0], [1], [0, 0, 1, 1], [], []>} : vector<32x1152xbf16>, vector<1152x128xbf16>, vector<32x128xf32> -> vector<32x128xf32>
    %c0_3 = arith.constant 0 : index
    %c0_4 = arith.constant 0 : index
    %3 = vector.load %arg3[%c0_3, %c0_4] : memref<1x128xf32, #tpu.memory_space<vmem>>, vector<1x128xf32>
    %4 = vector.broadcast %3 : vector<1x128xf32> to vector<32x128xf32>
    %5 = arith.addf %2, %4 : vector<32x128xf32>
    %cst_5 = arith.constant 0.000000e+00 : f32
    %6 = vector.broadcast %cst_5 : f32 to vector<32x128xf32>
    %7 = arith.maximumf %5, %6 : vector<32x128xf32>
    %8 = arith.truncf %7 : vector<32x128xf32> to vector<32x128xbf16>
    %c0_6 = arith.constant 0 : index
    %c0_7 = arith.constant 0 : index
    %9 = vector.load %arg4[%c0_6, %c0_7] : memref<32x128xbf16, #tpu.memory_space<vmem>>, vector<32x128xbf16>
    tpu.vector_store %arg4[%c0_6, %c0_7], %8 {strides = array<i32>} : memref<32x128xbf16, #tpu.memory_space<vmem>>, vector<32x128xbf16>,
    return
  }
  func.func @transform_0(%arg0: i32) -> (i32, i32) {
    %c0_i32 = arith.constant 0 : i32
    %c0_i32_0 = arith.constant 0 : i32
    return %arg0, %c0_i32 : i32, i32
  }
  func.func @transform_1(%arg0: i32) -> (i32, i32) {
    %c0_i32 = arith.constant 0 : i32
    %c0_i32_0 = arith.constant 0 : i32
    %c0_i32_1 = arith.constant 0 : i32
    return %c0_i32, %c0_i32_0 : i32, i32
  }
  func.func @transform_2(%arg0: i32) -> (i32, i32) {
    %c0_i32 = arith.constant 0 : i32
    %c0_i32_0 = arith.constant 0 : i32
    %c0_i32_1 = arith.constant 0 : i32
    return %c0_i32, %c0_i32_0 : i32, i32
  }
  func.func @transform_3(%arg0: i32) -> (i32, i32) {
    %c0_i32 = arith.constant 0 : i32
    %c0_i32_0 = arith.constant 0 : i32
    return %arg0, %c0_i32 : i32, i32
  }
}

module attributes {stable_mosaic.version = 11 : i64} {
  func.func @_mm_bias_kernel(%arg0: i32, %arg1: memref<64x1152xbf16, #tpu.memory_space<vmem>>, %arg2: memref<1152x64xbf16, #tpu.memory_space<vmem>>, %arg3: memref<1x64xf32, #tpu.memory_space<vmem>>, %arg4: memref<64x64xbf16, #tpu.memory_space<vmem>>) attributes {dimension_semantics = [#tpu.dimension_semantics<parallel>], iteration_bounds = array<i64: 2>, scalar_prefetch = 0 : i64, scratch_operands = 0 : i64, tpu.core_type = #tpu.core_type<tc>, window_params = [{transform_indices = @transform_0, window_bounds = array<i64: 64, 1152>}, {pipeline_mode = #tpu.pipeline_mode<synchronous>, transform_indices = @transform_1, window_bounds = array<i64: 1152, 64>}, {pipeline_mode = #tpu.pipeline_mode<synchronous>, transform_indices = @transform_2, window_bounds = array<i64: 1, 64>}, {transform_indices = @transform_3, window_bounds = array<i64: 64, 64>}]} {
    %c0 = arith.constant 0 : index
    %c0_0 = arith.constant 0 : index
    %0 = vector.load %arg1[%c0, %c0_0] : memref<64x1152xbf16, #tpu.memory_space<vmem>>, vector<64x1152xbf16>
    %c0_1 = arith.constant 0 : index
    %c0_2 = arith.constant 0 : index
    %1 = vector.load %arg2[%c0_1, %c0_2] : memref<1152x64xbf16, #tpu.memory_space<vmem>>, vector<1152x64xbf16>
    %cst = arith.constant dense<0.000000e+00> : vector<64x64xf32>
    %2 = tpu.matmul %0, %1, %cst {dimension_numbers = #tpu.dot_dimension_numbers<[1], [0], [0], [1], [0, 0, 1, 1], [], []>} : vector<64x1152xbf16>, vector<1152x64xbf16>, vector<64x64xf32> -> vector<64x64xf32>
    %c0_3 = arith.constant 0 : index
    %c0_4 = arith.constant 0 : index
    %3 = vector.load %arg3[%c0_3, %c0_4] : memref<1x64xf32, #tpu.memory_space<vmem>>, vector<1x64xf32>
    %4 = vector.broadcast %3 : vector<1x64xf32> to vector<64x64xf32>
    %5 = arith.addf %2, %4 : vector<64x64xf32>
    %cst_5 = arith.constant 0.000000e+00 : f32
    %6 = vector.broadcast %cst_5 : f32 to vector<64x64xf32>
    %7 = arith.maximumf %5, %6 : vector<64x64xf32>
    %8 = arith.truncf %7 : vector<64x64xf32> to vector<64x64xbf16>
    %c0_6 = arith.constant 0 : index
    %c0_7 = arith.constant 0 : index
    %9 = vector.load %arg4[%c0_6, %c0_7] : memref<64x64xbf16, #tpu.memory_space<vmem>>, vector<64x64xbf16>
    tpu.vector_store %arg4[%c0_6, %c0_7], %8 {strides = array<i32>} : memref<64x64xbf16, #tpu.memory_space<vmem>>, vector<64x64xbf16>,
    return
  }
  func.func @transform_0(%arg0: i32) -> (i32, i32) {
    %c0_i32 = arith.constant 0 : i32
    %c0_i32_0 = arith.constant 0 : i32
    return %arg0, %c0_i32 : i32, i32
  }
  func.func @transform_1(%arg0: i32) -> (i32, i32) {
    %c0_i32 = arith.constant 0 : i32
    %c0_i32_0 = arith.constant 0 : i32
    %c0_i32_1 = arith.constant 0 : i32
    return %c0_i32, %c0_i32_0 : i32, i32
  }
  func.func @transform_2(%arg0: i32) -> (i32, i32) {
    %c0_i32 = arith.constant 0 : i32
    %c0_i32_0 = arith.constant 0 : i32
    %c0_i32_1 = arith.constant 0 : i32
    return %c0_i32, %c0_i32_0 : i32, i32
  }
  func.func @transform_3(%arg0: i32) -> (i32, i32) {
    %c0_i32 = arith.constant 0 : i32
    %c0_i32_0 = arith.constant 0 : i32
    return %arg0, %c0_i32 : i32, i32
  }
}

module attributes {stable_mosaic.version = 11 : i64} {
  func.func @_mm_bias_kernel(%arg0: i32, %arg1: memref<256x576xbf16, #tpu.memory_space<vmem>>, %arg2: memref<576x32xbf16, #tpu.memory_space<vmem>>, %arg3: memref<1x32xf32, #tpu.memory_space<vmem>>, %arg4: memref<256x32xbf16, #tpu.memory_space<vmem>>) attributes {dimension_semantics = [#tpu.dimension_semantics<parallel>], iteration_bounds = array<i64: 2>, scalar_prefetch = 0 : i64, scratch_operands = 0 : i64, tpu.core_type = #tpu.core_type<tc>, window_params = [{transform_indices = @transform_0, window_bounds = array<i64: 256, 576>}, {pipeline_mode = #tpu.pipeline_mode<synchronous>, transform_indices = @transform_1, window_bounds = array<i64: 576, 32>}, {pipeline_mode = #tpu.pipeline_mode<synchronous>, transform_indices = @transform_2, window_bounds = array<i64: 1, 32>}, {transform_indices = @transform_3, window_bounds = array<i64: 256, 32>}]} {
    %c0 = arith.constant 0 : index
    %c0_0 = arith.constant 0 : index
    %0 = vector.load %arg1[%c0, %c0_0] : memref<256x576xbf16, #tpu.memory_space<vmem>>, vector<256x576xbf16>
    %c0_1 = arith.constant 0 : index
    %c0_2 = arith.constant 0 : index
    %1 = vector.load %arg2[%c0_1, %c0_2] : memref<576x32xbf16, #tpu.memory_space<vmem>>, vector<576x32xbf16>
    %cst = arith.constant dense<0.000000e+00> : vector<256x32xf32>
    %2 = tpu.matmul %0, %1, %cst {dimension_numbers = #tpu.dot_dimension_numbers<[1], [0], [0], [1], [0, 0, 1, 1], [], []>} : vector<256x576xbf16>, vector<576x32xbf16>, vector<256x32xf32> -> vector<256x32xf32>
    %c0_3 = arith.constant 0 : index
    %c0_4 = arith.constant 0 : index
    %3 = vector.load %arg3[%c0_3, %c0_4] : memref<1x32xf32, #tpu.memory_space<vmem>>, vector<1x32xf32>
    %4 = vector.broadcast %3 : vector<1x32xf32> to vector<256x32xf32>
    %5 = arith.addf %2, %4 : vector<256x32xf32>
    %cst_5 = arith.constant 0.000000e+00 : f32
    %6 = vector.broadcast %cst_5 : f32 to vector<256x32xf32>
    %7 = arith.maximumf %5, %6 : vector<256x32xf32>
    %8 = arith.truncf %7 : vector<256x32xf32> to vector<256x32xbf16>
    %c0_6 = arith.constant 0 : index
    %c0_7 = arith.constant 0 : index
    %9 = vector.load %arg4[%c0_6, %c0_7] : memref<256x32xbf16, #tpu.memory_space<vmem>>, vector<256x32xbf16>
    tpu.vector_store %arg4[%c0_6, %c0_7], %8 {strides = array<i32>} : memref<256x32xbf16, #tpu.memory_space<vmem>>, vector<256x32xbf16>,
    return
  }
  func.func @transform_0(%arg0: i32) -> (i32, i32) {
    %c0_i32 = arith.constant 0 : i32
    %c0_i32_0 = arith.constant 0 : i32
    return %arg0, %c0_i32 : i32, i32
  }
  func.func @transform_1(%arg0: i32) -> (i32, i32) {
    %c0_i32 = arith.constant 0 : i32
    %c0_i32_0 = arith.constant 0 : i32
    %c0_i32_1 = arith.constant 0 : i32
    return %c0_i32, %c0_i32_0 : i32, i32
  }
  func.func @transform_2(%arg0: i32) -> (i32, i32) {
    %c0_i32 = arith.constant 0 : i32
    %c0_i32_0 = arith.constant 0 : i32
    %c0_i32_1 = arith.constant 0 : i32
    return %c0_i32, %c0_i32_0 : i32, i32
  }
  func.func @transform_3(%arg0: i32) -> (i32, i32) {
    %c0_i32 = arith.constant 0 : i32
    %c0_i32_0 = arith.constant 0 : i32
    return %arg0, %c0_i32 : i32, i32
  }
}

module attributes {stable_mosaic.version = 11 : i64} {
  func.func @_mm_bias_kernel(%arg0: i32, %arg1: memref<256x288xbf16, #tpu.memory_space<vmem>>, %arg2: memref<288x128xbf16, #tpu.memory_space<vmem>>, %arg3: memref<1x128xf32, #tpu.memory_space<vmem>>, %arg4: memref<256x128xbf16, #tpu.memory_space<vmem>>) attributes {dimension_semantics = [#tpu.dimension_semantics<parallel>], iteration_bounds = array<i64: 2>, scalar_prefetch = 0 : i64, scratch_operands = 0 : i64, tpu.core_type = #tpu.core_type<tc>, window_params = [{transform_indices = @transform_0, window_bounds = array<i64: 256, 288>}, {pipeline_mode = #tpu.pipeline_mode<synchronous>, transform_indices = @transform_1, window_bounds = array<i64: 288, 128>}, {pipeline_mode = #tpu.pipeline_mode<synchronous>, transform_indices = @transform_2, window_bounds = array<i64: 1, 128>}, {transform_indices = @transform_3, window_bounds = array<i64: 256, 128>}]} {
    %c0 = arith.constant 0 : index
    %c0_0 = arith.constant 0 : index
    %0 = vector.load %arg1[%c0, %c0_0] : memref<256x288xbf16, #tpu.memory_space<vmem>>, vector<256x288xbf16>
    %c0_1 = arith.constant 0 : index
    %c0_2 = arith.constant 0 : index
    %1 = vector.load %arg2[%c0_1, %c0_2] : memref<288x128xbf16, #tpu.memory_space<vmem>>, vector<288x128xbf16>
    %cst = arith.constant dense<0.000000e+00> : vector<256x128xf32>
    %2 = tpu.matmul %0, %1, %cst {dimension_numbers = #tpu.dot_dimension_numbers<[1], [0], [0], [1], [0, 0, 1, 1], [], []>} : vector<256x288xbf16>, vector<288x128xbf16>, vector<256x128xf32> -> vector<256x128xf32>
    %c0_3 = arith.constant 0 : index
    %c0_4 = arith.constant 0 : index
    %3 = vector.load %arg3[%c0_3, %c0_4] : memref<1x128xf32, #tpu.memory_space<vmem>>, vector<1x128xf32>
    %4 = vector.broadcast %3 : vector<1x128xf32> to vector<256x128xf32>
    %5 = arith.addf %2, %4 : vector<256x128xf32>
    %6 = arith.truncf %5 : vector<256x128xf32> to vector<256x128xbf16>
    %c0_5 = arith.constant 0 : index
    %c0_6 = arith.constant 0 : index
    %7 = vector.load %arg4[%c0_5, %c0_6] : memref<256x128xbf16, #tpu.memory_space<vmem>>, vector<256x128xbf16>
    tpu.vector_store %arg4[%c0_5, %c0_6], %6 {strides = array<i32>} : memref<256x128xbf16, #tpu.memory_space<vmem>>, vector<256x128xbf16>,
    return
  }
  func.func @transform_0(%arg0: i32) -> (i32, i32) {
    %c0_i32 = arith.constant 0 : i32
    %c0_i32_0 = arith.constant 0 : i32
    return %arg0, %c0_i32 : i32, i32
  }
  func.func @transform_1(%arg0: i32) -> (i32, i32) {
    %c0_i32 = arith.constant 0 : i32
    %c0_i32_0 = arith.constant 0 : i32
    %c0_i32_1 = arith.constant 0 : i32
    return %c0_i32, %c0_i32_0 : i32, i32
  }
  func.func @transform_2(%arg0: i32) -> (i32, i32) {
    %c0_i32 = arith.constant 0 : i32
    %c0_i32_0 = arith.constant 0 : i32
    %c0_i32_1 = arith.constant 0 : i32
    return %c0_i32, %c0_i32_0 : i32, i32
  }
  func.func @transform_3(%arg0: i32) -> (i32, i32) {
    %c0_i32 = arith.constant 0 : i32
    %c0_i32_0 = arith.constant 0 : i32
    return %arg0, %c0_i32 : i32, i32
  }
}

</mosaic_0001>

<bundles_post_ra>
// kernel: colornet_forward.15
= control target key start
LH: loop header
LB: loop body
LE: loop exit
PB: predicated region body
PF: predicated region fallthrough
CT: control target
= control target key end

     0   :  { %s1025_s12 = smov 0   ;;  %s1198_s0 = inlined_call_operand.vmem [shape: bf16[512,49], index: 0, kind: input, shape index: {}]   ;;  %s1199_s1 = inlined_call_operand.vmem [shape: bf16[49,64], index: 1, kind: input, shape index: {}]   ;;  %s1200_s2 = inlined_call_operand.vmem [shape: f32[1,64], index: 2, kind: input, shape index: {}]   ;;  %s1201_s3 = inlined_call_operand.vmem [shape: bf16[512,64], index: 3, kind: output, shape index: {}]  }
   0x1 LB: > { %s787_s13 = sadd.s32 4294967295, %s1002_s12   ;;  %p791_p0 = scmp.ge.s32.totalorder %s1002_s12, 1  ;;  %s1002_s12 = sphi %s1025_s12, %s13_s12  }
   0x2   : > { %p138_p1 = scmp.lt.s32.totalorder %s1002_s12, 3 }
   0x4   : > { %p139_p2 = pnand %p791_p0, %p138_p1 }
   0x5   : > { %s792_s18 = sshll.u32 (!%p139_p2), %s787_s13, 5 }
   0x6   : > { %142 = sbr.rel (%p139_p2) target bundleno = 262 (0x106), region = 32  ;;  %p163_p3 = scmp.lt.s32.totalorder (!%p139_p2), %s792_s18, 63 }
   0xb   : > { %v976_v0 = vld [vmem:[%s1199_s1 + $0x18] ss:$0 sps:$4 sm:$0x11]   ;;  %vm371_vm0 = vcmask 1040384   ;;  %v1004_v1 = vmov 0   ;;  %v977_v4 = vld [vmem:[%s1199_s1 + $0x10] sm:$0xff]  }
   0xc   : > { %v373_v2 = vsel %vm371_vm0, 65535, %v1004_v1  ;;  %s1203_s18 = smov (!%p163_p3, %s792_s18), 63  ;;  %v978_v5 = vld [vmem:[%s1199_s1 + $0x8] sm:$0xff]   ;;  %v979_v6 = vld [vmem:[%s1199_s1] sm:$0xff]   ;;  %vm322_vm1 = vcmask 400384   ;;  %vm698_vm2 = vcmask 519168  }
   0xd   : > { %v375_v3 = vand.u32 %v976_v0, %v373_v2  ;;  %s793_s21 = sshll.u32 %s1203_s18, 2  ;;  %v1090_v23 = vld [vmem:[%s1200_s2] ss:$0 sm:$0xff] }
   0xe   : > { %s1053_s26 = scalar_lea.vmem %s1198_s0, %s793_s21  ;;  %s1101_s4 = scalar_lea.vmem %s1201_s3, %s793_s21 }
   0xf   : > { %919 = vmatprep.subr.bf16.mxu0 %v375_v3  ;;  %959 = vmatprep.subr.bf16.mxu1 %v375_v3  ;;  %v980_v7 = vld [vmem:[%s1053_s26] sm:$0xff]   ;;  %v982_v9 = vld [vmem:[%s1053_s26 + $0x8] sm:$0xff]   ;;  %v984_v11 = vld [vmem:[%s1053_s26 + $0x10] sm:$0xff]  }
  0x10   : > { %920 = vmatpush3.bf16.msra.mxu0 %v375_v3  ;;  %963 = vmatpush3.bf16.msra.mxu1 %v375_v3  ;;  %v981_v8 = vld [vmem:[%s1053_s26 + $0x40] sm:$0xff]   ;;  %v983_v10 = vld [vmem:[%s1053_s26 + $0x48] sm:$0xff]   ;;  %v985_v12 = vld [vmem:[%s1053_s26 + $0x50] sm:$0xff]  }
  0x11   : > { %921 = vmatprep.subr.bf16.mxu0 %v977_v4  ;;  %960 = vmatprep.subr.bf16.mxu1 %v977_v4  ;;  %v986_v13 = vld [vmem:[%s1053_s26 + $0x18] sm:$0xff]   ;;  %v988_v15 = vld [vmem:[%s1053_s26 + $0x20] sm:$0xff]   ;;  %v990_v17 = vld [vmem:[%s1053_s26 + $0x28] sm:$0xff]  }
  0x12   : > { %927 = vmatprep.mubr.msk.bf16.mxu0 %vm322_vm1, %v980_v7  ;;  %943 = vmatprep.mubr.msk.bf16.mxu1 %vm322_vm1, %v981_v8  ;;  %v987_v14 = vld [vmem:[%s1053_s26 + $0x58] sm:$0xff]   ;;  %v989_v16 = vld [vmem:[%s1053_s26 + $0x60] sm:$0xff]   ;;  %v991_v18 = vld [vmem:[%s1053_s26 + $0x68] sm:$0xff]  }
  0x13   : > { %v992_v19 = vld [vmem:[%s1053_s26 + $0x30] sm:$0xff]   ;;  %v994_v21 = vld [vmem:[%s1053_s26 + $0x38] sm:$0xff]  }
  0x14   : > { %922 = vmatpush3.bf16.msra.mxu0 %v977_v4  ;;  %964 = vmatpush3.bf16.msra.mxu1 %v977_v4  ;;  %v993_v20 = vld [vmem:[%s1053_s26 + $0x70] sm:$0xff]   ;;  %v995_v22 = vld [vmem:[%s1053_s26 + $0x78] sm:$0xff]  }
  0x15   : > { %923 = vmatprep.subr.bf16.mxu0 %v978_v5  ;;  %961 = vmatprep.subr.bf16.mxu1 %v978_v5 }
  0x18   : > { %924 = vmatpush3.bf16.msra.mxu0 %v978_v5  ;;  %965 = vmatpush3.bf16.msra.mxu1 %v978_v5 }
  0x19   : > { %925 = vmatprep.subr.bf16.mxu0 %v979_v6  ;;  %962 = vmatprep.subr.bf16.mxu1 %v979_v6 }
  0x1c   : > { %926 = vmatpush3.bf16.msra.mxu0 %v979_v6  ;;  %966 = vmatpush3.bf16.msra.mxu1 %v979_v6 }
  0x1f   : > { %928 = vmatmul.mubr.msk.bf16.vlgmr.msra.gmra.mxu0 %vm322_vm1, %v982_v9  ;;  %944 = vmatmul.mubr.msk.bf16.vlgmr.msra.gmra.mxu1 %vm322_vm1, %v983_v10 }
  0x20   : > { %931 = vmatprep.mubr.msk.bf16.mxu0 %vm322_vm1, %v984_v11  ;;  %947 = vmatprep.mubr.msk.bf16.mxu1 %vm322_vm1, %v985_v12 }
  0x27   : > { %932 = vmatmul.mubr.msk.bf16.gmra.mxu0 %vm322_vm1, %v986_v13  ;;  %948 = vmatmul.mubr.msk.bf16.gmra.mxu1 %vm322_vm1, %v987_v14 }
  0x28   : > { %935 = vmatprep.mubr.msk.bf16.mxu0 %vm322_vm1, %v988_v15  ;;  %951 = vmatprep.mubr.msk.bf16.mxu1 %vm322_vm1, %v989_v16 }
  0x2f   : > { %936 = vmatmul.mubr.msk.bf16.gmra.mxu0 %vm322_vm1, %v990_v17  ;;  %952 = vmatmul.mubr.msk.bf16.gmra.mxu1 %vm322_vm1, %v991_v18 }
  0x30   : > { %939 = vmatprep.mubr.msk.bf16.mxu0 %vm322_vm1, %v992_v19  ;;  %955 = vmatprep.mubr.msk.bf16.mxu1 %vm322_vm1, %v993_v20 }
  0x37   : > { %940 = vmatmul.mubr.msk.bf16.gmra.mxu0 %vm322_vm1, %v994_v21  ;;  %956 = vmatmul.mubr.msk.bf16.gmra.mxu1 %vm322_vm1, %v995_v22 }
  0xdf   : > { %v929_v24 = vpop.f32.mrf.mxu0  ;;  %v945_v25 = vpop.f32.mrf.mxu1 }
  0xe0   : > { %v420_v26 = vadd.f32 %v929_v24, %v1090_v23  ;;  %v484_v27 = vadd.f32 %v945_v25, %v1090_v23 }
  0xe1   : > { %v411_v28 = vpop.f32.mrf.mxu0  ;;  %v475_v29 = vpop.f32.mrf.mxu1 }
  0xe2   : > { %v540_v30 = vmax.f32 %v420_v26, 0.0  ;;  %v556_v31 = vmax.f32 %v484_v27, 0.0  ;;  %v412_v32 = vadd.f32 %v1090_v23, %v411_v28  ;;  %v476_v33 = vadd.f32 %v1090_v23, %v475_v29 }
  0xe3   : > { %v930_v34 = vpop.f32.mrf.mxu0  ;;  %v946_v35 = vpop.f32.mrf.mxu1 }
  0xe4   : > { %v869_v36 = vpack.c.bf16 %v540_v30, %v540_v30  ;;  %v885_v37 = vpack.c.bf16 %v556_v31, %v556_v31  ;;  %v538_v38 = vmax.f32 %v412_v32, 0.0  ;;  %v554_v39 = vmax.f32 %v476_v33, 0.0 }
  0xe5   : > { %v423_v40 = vadd.f32 %v930_v34, %v1090_v23  ;;  %v487_v41 = vadd.f32 %v946_v35, %v1090_v23  ;;  %v414_v42 = vpop.f32.mrf.mxu0  ;;  %v478_v43 = vpop.f32.mrf.mxu1 }
  0xe6   : > { %701 = vst.msk [vmem:[%s1101_s4 + $0x8] sm:$0xf] %vm698_vm2, %v869_v36  ;;  %717 = vst.msk [vmem:[%s1101_s4 + $0x48] sm:$0xf] %vm698_vm2, %v885_v37  ;;  %v867_v44 = vpack.c.bf16 %v538_v38, %v538_v38  ;;  %v883_v45 = vpack.c.bf16 %v554_v39, %v554_v39  ;;  %v415_v46 = vadd.f32 %v1090_v23, %v414_v42 }
  0xe7   : > { %v479_v47 = vadd.f32 %v1090_v23, %v478_v43  ;;  %v541_v48 = vmax.f32 %v423_v40, 0.0  ;;  %v557_v49 = vmax.f32 %v487_v41, 0.0  ;;  %v933_v50 = vpop.f32.mrf.mxu0  ;;  %v949_v51 = vpop.f32.mrf.mxu1 }
  0xe8   : > { %699 = vst.msk [vmem:[%s1101_s4] sm:$0xf] %vm698_vm2, %v867_v44  ;;  %715 = vst.msk [vmem:[%s1101_s4 + $0x40] sm:$0xf] %vm698_vm2, %v883_v45  ;;  %v539_v52 = vmax.f32 %v415_v46, 0.0  ;;  %v436_v54 = vadd.f32 %v933_v50, %v1090_v23  ;;  %v500_v55 = vadd.f32 %v949_v51, %v1090_v23 }
  0xe9   : > { %v555_v53 = vmax.f32 %v479_v47, 0.0  ;;  %v870_v56 = vpack.c.bf16 %v541_v48, %v541_v48  ;;  %v886_v57 = vpack.c.bf16 %v557_v49, %v557_v49  ;;  %v427_v58 = vpop.f32.mrf.mxu0  ;;  %v491_v59 = vpop.f32.mrf.mxu1 }
  0xea   : > { %v868_v60 = vpack.c.bf16 %v539_v52, %v539_v52  ;;  %v544_v62 = vmax.f32 %v436_v54, 0.0  ;;  %v560_v63 = vmax.f32 %v500_v55, 0.0  ;;  %v428_v0 = vadd.f32 %v1090_v23, %v427_v58 }
  0xeb   : > { %v884_v61 = vpack.c.bf16 %v555_v53, %v555_v53  ;;  %702 = vst.msk [vmem:[%s1101_s4 + $0xc] sm:$0xf] %vm698_vm2, %v870_v56  ;;  %718 = vst.msk [vmem:[%s1101_s4 + $0x4c] sm:$0xf] %vm698_vm2, %v886_v57  ;;  %v492_v1 = vadd.f32 %v1090_v23, %v491_v59  ;;  %v934_v2 = vpop.f32.mrf.mxu0  ;;  %v950_v3 = vpop.f32.mrf.mxu1 }
  0xec   : > { %700 = vst.msk [vmem:[%s1101_s4 + $0x4] sm:$0xf] %vm698_vm2, %v868_v60  ;;  %v873_v4 = vpack.c.bf16 %v544_v62, %v544_v62  ;;  %v889_v5 = vpack.c.bf16 %v560_v63, %v560_v63  ;;  %v439_v6 = vadd.f32 %v934_v2, %v1090_v23  ;;  %v503_v7 = vadd.f32 %v950_v3, %v1090_v23 }
  0xed   : > { %716 = vst.msk [vmem:[%s1101_s4 + $0x44] sm:$0xf] %vm698_vm2, %v884_v61  ;;  %v542_v8 = vmax.f32 %v428_v0, 0.0  ;;  %v558_v9 = vmax.f32 %v492_v1, 0.0  ;;  %v430_v10 = vpop.f32.mrf.mxu0  ;;  %v494_v11 = vpop.f32.mrf.mxu1 }
  0xee   : > { %705 = vst.msk [vmem:[%s1101_s4 + $0x18] sm:$0xf] %vm698_vm2, %v873_v4  ;;  %721 = vst.msk [vmem:[%s1101_s4 + $0x58] sm:$0xf] %vm698_vm2, %v889_v5  ;;  %v545_v12 = vmax.f32 %v439_v6, 0.0  ;;  %v561_v13 = vmax.f32 %v503_v7, 0.0  ;;  %v431_v14 = vadd.f32 %v1090_v23, %v430_v10  ;;  %v495_v15 = vadd.f32 %v1090_v23, %v494_v11 }
  0xef   : > { %v871_v16 = vpack.c.bf16 %v542_v8, %v542_v8  ;;  %v887_v17 = vpack.c.bf16 %v558_v9, %v558_v9  ;;  %v937_v18 = vpop.f32.mrf.mxu0  ;;  %v953_v19 = vpop.f32.mrf.mxu1 }
  0xf0   : > { %v874_v20 = vpack.c.bf16 %v545_v12, %v545_v12  ;;  %v890_v21 = vpack.c.bf16 %v561_v13, %v561_v13  ;;  %v543_v22 = vmax.f32 %v431_v14, 0.0  ;;  %v559_v24 = vmax.f32 %v495_v15, 0.0 }
  0xf1   : > { %703 = vst.msk [vmem:[%s1101_s4 + $0x10] sm:$0xf] %vm698_vm2, %v871_v16  ;;  %719 = vst.msk [vmem:[%s1101_s4 + $0x50] sm:$0xf] %vm698_vm2, %v887_v17  ;;  %v452_v25 = vadd.f32 %v937_v18, %v1090_v23  ;;  %v516_v26 = vadd.f32 %v953_v19, %v1090_v23  ;;  %v443_v27 = vpop.f32.mrf.mxu0  ;;  %v507_v28 = vpop.f32.mrf.mxu1 }
  0xf2   : > { %706 = vst.msk [vmem:[%s1101_s4 + $0x1c] sm:$0xf] %vm698_vm2, %v874_v20  ;;  %722 = vst.msk [vmem:[%s1101_s4 + $0x5c] sm:$0xf] %vm698_vm2, %v890_v21  ;;  %v872_v29 = vpack.c.bf16 %v543_v22, %v543_v22  ;;  %v888_v30 = vpack.c.bf16 %v559_v24, %v559_v24  ;;  %v444_v31 = vadd.f32 %v1090_v23, %v443_v27 }
  0xf3   : > { %v508_v32 = vadd.f32 %v1090_v23, %v507_v28  ;;  %v548_v33 = vmax.f32 %v452_v25, 0.0  ;;  %v564_v34 = vmax.f32 %v516_v26, 0.0  ;;  %v938_v35 = vpop.f32.mrf.mxu0  ;;  %v954_v36 = vpop.f32.mrf.mxu1 }
  0xf4   : > { %704 = vst.msk [vmem:[%s1101_s4 + $0x14] sm:$0xf] %vm698_vm2, %v872_v29  ;;  %720 = vst.msk [vmem:[%s1101_s4 + $0x54] sm:$0xf] %vm698_vm2, %v888_v30  ;;  %v546_v37 = vmax.f32 %v444_v31, 0.0  ;;  %v455_v39 = vadd.f32 %v938_v35, %v1090_v23  ;;  %v519_v40 = vadd.f32 %v954_v36, %v1090_v23 }
  0xf5   : > { %v562_v38 = vmax.f32 %v508_v32, 0.0  ;;  %v877_v41 = vpack.c.bf16 %v548_v33, %v548_v33  ;;  %v893_v42 = vpack.c.bf16 %v564_v34, %v564_v34  ;;  %v446_v43 = vpop.f32.mrf.mxu0  ;;  %v510_v44 = vpop.f32.mrf.mxu1 }
  0xf6   : > { %v875_v45 = vpack.c.bf16 %v546_v37, %v546_v37  ;;  %v549_v47 = vmax.f32 %v455_v39, 0.0  ;;  %v565_v48 = vmax.f32 %v519_v40, 0.0  ;;  %v447_v49 = vadd.f32 %v1090_v23, %v446_v43 }
  0xf7   : > { %v891_v46 = vpack.c.bf16 %v562_v38, %v562_v38  ;;  %709 = vst.msk [vmem:[%s1101_s4 + $0x28] sm:$0xf] %vm698_vm2, %v877_v41  ;;  %725 = vst.msk [vmem:[%s1101_s4 + $0x68] sm:$0xf] %vm698_vm2, %v893_v42  ;;  %v511_v50 = vadd.f32 %v1090_v23, %v510_v44  ;;  %v941_v51 = vpop.f32.mrf.mxu0  ;;  %v957_v52 = vpop.f32.mrf.mxu1 }
  0xf8   : > { %707 = vst.msk [vmem:[%s1101_s4 + $0x20] sm:$0xf] %vm698_vm2, %v875_v45  ;;  %v878_v53 = vpack.c.bf16 %v549_v47, %v549_v47  ;;  %v894_v54 = vpack.c.bf16 %v565_v48, %v565_v48  ;;  %v468_v55 = vadd.f32 %v941_v51, %v1090_v23  ;;  %v532_v56 = vadd.f32 %v957_v52, %v1090_v23 }
  0xf9   : > { %723 = vst.msk [vmem:[%s1101_s4 + $0x60] sm:$0xf] %vm698_vm2, %v891_v46  ;;  %v547_v57 = vmax.f32 %v447_v49, 0.0  ;;  %v563_v58 = vmax.f32 %v511_v50, 0.0  ;;  %v459_v59 = vpop.f32.mrf.mxu0  ;;  %v523_v60 = vpop.f32.mrf.mxu1 }
  0xfa   : > { %710 = vst.msk [vmem:[%s1101_s4 + $0x2c] sm:$0xf] %vm698_vm2, %v878_v53  ;;  %726 = vst.msk [vmem:[%s1101_s4 + $0x6c] sm:$0xf] %vm698_vm2, %v894_v54  ;;  %v552_v61 = vmax.f32 %v468_v55, 0.0  ;;  %v568_v62 = vmax.f32 %v532_v56, 0.0  ;;  %v460_v63 = vadd.f32 %v1090_v23, %v459_v59  ;;  %v524_v0 = vadd.f32 %v1090_v23, %v523_v60 }
  0xfb   : > { %v876_v1 = vpack.c.bf16 %v547_v57, %v547_v57  ;;  %v892_v2 = vpack.c.bf16 %v563_v58, %v563_v58  ;;  %v942_v3 = vpop.f32.mrf.mxu0  ;;  %v958_v4 = vpop.f32.mrf.mxu1 }
  0xfc   : > { %v881_v5 = vpack.c.bf16 %v552_v61, %v552_v61  ;;  %v897_v6 = vpack.c.bf16 %v568_v62, %v568_v62  ;;  %v550_v7 = vmax.f32 %v460_v63, 0.0  ;;  %v566_v8 = vmax.f32 %v524_v0, 0.0 }
  0xfd   : > { %708 = vst.msk [vmem:[%s1101_s4 + $0x24] sm:$0xf] %vm698_vm2, %v876_v1  ;;  %724 = vst.msk [vmem:[%s1101_s4 + $0x64] sm:$0xf] %vm698_vm2, %v892_v2  ;;  %v471_v9 = vadd.f32 %v942_v3, %v1090_v23  ;;  %v535_v10 = vadd.f32 %v958_v4, %v1090_v23  ;;  %v462_v11 = vpop.f32.mrf.mxu0  ;;  %v526_v12 = vpop.f32.mrf.mxu1 }
  0xfe   : > { %713 = vst.msk [vmem:[%s1101_s4 + $0x38] sm:$0xf] %vm698_vm2, %v881_v5  ;;  %729 = vst.msk [vmem:[%s1101_s4 + $0x78] sm:$0xf] %vm698_vm2, %v897_v6  ;;  %v879_v13 = vpack.c.bf16 %v550_v7, %v550_v7  ;;  %v895_v14 = vpack.c.bf16 %v566_v8, %v566_v8  ;;  %v463_v15 = vadd.f32 %v1090_v23, %v462_v11 }
  0xff   : > { %v527_v16 = vadd.f32 %v1090_v23, %v526_v12  ;;  %v553_v17 = vmax.f32 %v471_v9, 0.0  ;;  %v569_v18 = vmax.f32 %v535_v10, 0.0 }
 0x100   : > { %711 = vst.msk [vmem:[%s1101_s4 + $0x30] sm:$0xf] %vm698_vm2, %v879_v13  ;;  %727 = vst.msk [vmem:[%s1101_s4 + $0x70] sm:$0xf] %vm698_vm2, %v895_v14  ;;  %v551_v19 = vmax.f32 %v463_v15, 0.0 }
 0x101   : > { %v567_v20 = vmax.f32 %v527_v16, 0.0  ;;  %v882_v21 = vpack.c.bf16 %v553_v17, %v553_v17  ;;  %v898_v22 = vpack.c.bf16 %v569_v18, %v569_v18 }
 0x102   : > { %v880_v24 = vpack.c.bf16 %v551_v19, %v551_v19 }
 0x103   : > { %v896_v25 = vpack.c.bf16 %v567_v20, %v567_v20  ;;  %714 = vst.msk [vmem:[%s1101_s4 + $0x3c] sm:$0xf] %vm698_vm2, %v882_v21  ;;  %730 = vst.msk [vmem:[%s1101_s4 + $0x7c] sm:$0xf] %vm698_vm2, %v898_v22 }
 0x104   : > { %712 = vst.msk [vmem:[%s1101_s4 + $0x34] sm:$0xf] %vm698_vm2, %v880_v24 }
 0x105   : > { %728 = vst.msk [vmem:[%s1101_s4 + $0x74] sm:$0xf] %vm698_vm2, %v896_v25 }
 0x106 PF: > { %s13_s12 = sadd.s32 1, %s1002_s12  }
 0x107   : > { %p10_p4 = scmp.ge.s32.totalorder %s13_s12, 4  }
 0x109   :  { %12 = sbr.rel (!%p10_p4) target bundleno = 1 (0x1), region = 62 }

// kernel: colornet_forward.17
= control target key start
LH: loop header
LB: loop body
LE: loop exit
PB: predicated region body
PF: predicated region fallthrough
CT: control target
= control target key end

     0   :  { %s1322_s15 = smov 0   ;;  %s1525_s0 = inlined_call_operand.vmem [shape: bf16[128,576], index: 0, kind: input, shape index: {}]   ;;  %s1526_s1 = inlined_call_operand.vmem [shape: bf16[576,64], index: 1, kind: input, shape index: {}]   ;;  %s1527_s2 = inlined_call_operand.vmem [shape: f32[1,64], index: 2, kind: input, shape index: {}]   ;;  %s1528_s3 = inlined_call_operand.vmem [shape: bf16[128,64], index: 3, kind: input, shape index: {}]   ;;  %s1529_s4 = inlined_call_operand.vmem [shape: bf16[128,64], index: 4, kind: output, shape index: {}]  }
   0x1 LB: > { %s995_s16 = sadd.s32 4294967295, %s1295_s15   ;;  %p999_p0 = scmp.ge.s32.totalorder %s1295_s15, 1  ;;  %s1295_s15 = sphi %s1322_s15, %s14_s15  }
   0x2   : > { %p175_p1 = scmp.lt.s32.totalorder %s1295_s15, 3 }
   0x4   : > { %p176_p2 = pnand %p999_p0, %p175_p1 }
   0x5   : > { %s1000_s23 = sshll.u32 (!%p176_p2), %s995_s16, 3 }
   0x6   : > { %179 = sbr.rel (%p176_p2) target bundleno = 286 (0x11e), region = 36  ;;  %p208_p3 = scmp.lt.s32.totalorder (!%p176_p2), %s1000_s23, 15 }
   0xb   : > { %v1225_v0 = vld [vmem:[%s1526_s1 + $0x78] sm:$0xff]   ;;  %v1229_v4 = vld [vmem:[%s1526_s1 + $0x70] sm:$0xff]   ;;  %v1233_v8 = vld [vmem:[%s1526_s1 + $0x68] sm:$0xff]   ;;  %s1531_s23 = smov (!%p208_p3, %s1000_s23), 15  ;;  %vm646_vm0 = vcmask 523264   ;;  %vm918_vm1 = vcmask 519168  }
   0xc   : > { %v1226_v1 = vld [vmem:[%s1526_s1 + $0xf8] sm:$0xff]   ;;  %1104 = vmatprep.subr.bf16.mxu0 %v1225_v0  ;;  %v1230_v5 = vld [vmem:[%s1526_s1 + $0xf0] sm:$0xff]   ;;  %v1234_v9 = vld [vmem:[%s1526_s1 + $0xe8] sm:$0xff]   ;;  %s1216_s21 = smul.u32 20, %s1531_s23 }
   0xd   : > { %v1227_v2 = vld [vmem:[%s1526_s1 + $0x38] sm:$0xff]   ;;  %1144 = vmatprep.subr.bf16.mxu1 %v1226_v1  ;;  %v1231_v6 = vld [vmem:[%s1526_s1 + $0x30] sm:$0xff]   ;;  %v1235_v10 = vld [vmem:[%s1526_s1 + $0x28] sm:$0xff]  }
   0xe   : > { %v1228_v3 = vld [vmem:[%s1526_s1 + $0xb8] sm:$0xff]   ;;  %1105 = vmatpush3.bf16.msra.mxu0 %v1227_v2  ;;  %v1232_v7 = vld [vmem:[%s1526_s1 + $0xb0] sm:$0xff]   ;;  %v1236_v11 = vld [vmem:[%s1526_s1 + $0xa8] sm:$0xff]   ;;  %s1428_s6 = scalar_lea.vmem %s1525_s0, %s1216_s21  ;;  %s1003_s21 = sshll.u32 %s1531_s23, 2 }
   0xf   : > { %1145 = vmatpush3.bf16.msra.mxu1 %v1228_v3  ;;  %1106 = vmatprep.subr.bf16.mxu0 %v1229_v4  ;;  %v1237_v12 = vld [vmem:[%s1526_s1 + $0x60] sm:$0xff]   ;;  %v1241_v16 = vld [vmem:[%s1526_s1 + $0x58] sm:$0xff]   ;;  %v1245_v20 = vld [vmem:[%s1526_s1 + $0x50] sm:$0xff]   ;;  %s218_s25 = scalar_lea.vmem %s1528_s3, %s1003_s21  ;;  %s1504_s30 = scalar_lea.vmem %s1529_s4, %s1003_s21 }
  0x10   : > { %1146 = vmatprep.subr.bf16.mxu1 %v1230_v5  ;;  %v1238_v13 = vld [vmem:[%s1526_s1 + $0xe0] sm:$0xff]   ;;  %v1242_v17 = vld [vmem:[%s1526_s1 + $0xd8] sm:$0xff]   ;;  %v1246_v21 = vld [vmem:[%s1526_s1 + $0xd0] sm:$0xff]  }
  0x11   : > { %v1239_v14 = vld [vmem:[%s1526_s1 + $0x20] sm:$0xff]   ;;  %v1243_v18 = vld [vmem:[%s1526_s1 + $0x18] sm:$0xff]   ;;  %v1247_v22 = vld [vmem:[%s1526_s1 + $0x10] sm:$0xff]  }
  0x12   : > { %1107 = vmatpush3.bf16.msra.mxu0 %v1231_v6  ;;  %v1240_v15 = vld [vmem:[%s1526_s1 + $0xa0] sm:$0xff]   ;;  %v1244_v19 = vld [vmem:[%s1526_s1 + $0x98] sm:$0xff]   ;;  %v1248_v23 = vld [vmem:[%s1526_s1 + $0x90] sm:$0xff]  }
  0x13   : > { %1147 = vmatpush3.bf16.msra.mxu1 %v1232_v7  ;;  %1108 = vmatprep.subr.bf16.mxu0 %v1233_v8  ;;  %v1249_v24 = vld [vmem:[%s1526_s1 + $0x48] sm:$0xff]   ;;  %v1253_v28 = vld [vmem:[%s1526_s1 + $0x40] sm:$0xff]   ;;  %v1263_v36 = vld [vmem:[%s1526_s1 + $0x118] sm:$0xff]  }
  0x14   : > { %1148 = vmatprep.subr.bf16.mxu1 %v1234_v9  ;;  %v1250_v25 = vld [vmem:[%s1526_s1 + $0xc8] sm:$0xff]   ;;  %v1254_v29 = vld [vmem:[%s1526_s1 + $0xc0] sm:$0xff]   ;;  %v1270_v39 = vld [vmem:[%s1526_s1 + $0x110] sm:$0xff]  }
  0x15   : > { %v1251_v26 = vld [vmem:[%s1526_s1 + $0x8] sm:$0xff]   ;;  %v1255_v30 = vld [vmem:[%s1526_s1] sm:$0xff]   ;;  %v1273_v43 = vld [vmem:[%s1428_s6 + $0x5c] ss:$20 sps:$4 sm:$0xff]  }
  0x16   : > { %1109 = vmatpush3.bf16.msra.mxu0 %v1235_v10  ;;  %v1252_v27 = vld [vmem:[%s1526_s1 + $0x88] sm:$0xff]   ;;  %v1256_v31 = vld [vmem:[%s1526_s1 + $0x80] sm:$0xff]   ;;  %v1278_v48 = vld [vmem:[%s1428_s6 + $0x7c] ss:$20 sps:$4 sm:$0xff]  }
  0x17   : > { %1149 = vmatpush3.bf16.msra.mxu1 %v1236_v11  ;;  %1110 = vmatprep.subr.bf16.mxu0 %v1237_v12  ;;  %v1257_v32 = vld [vmem:[%s1428_s6] ss:$20 sps:$4 sm:$0xff]   ;;  %v1259_v33 = vld [vmem:[%s1428_s6 + $0x4] ss:$20 sps:$4 sm:$0xff]   ;;  %v1260_v34 = vld [vmem:[%s1428_s6 + $0x8] ss:$20 sps:$4 sm:$0xff]  }
  0x18   : > { %1150 = vmatprep.subr.bf16.mxu1 %v1238_v13  ;;  %v1262_v35 = vld [vmem:[%s1428_s6 + $0xc] ss:$20 sps:$4 sm:$0xff]   ;;  %691 = vmatprep.mubr.bf16.mxu0 %v1259_v33  ;;  %v1266_v38 = vld [vmem:[%s1428_s6 + $0x34] ss:$20 sps:$4 sm:$0xff]   ;;  %v1269_v41 = vld [vmem:[%s1428_s6 + $0x30] ss:$20 sps:$4 sm:$0xff]  }
  0x19   : > { %756 = vmatprep.mubr.bf16.mxu1 %v1262_v35  ;;  %v1264_v37 = vld [vmem:[%s1428_s6 + $0x2c] ss:$20 sps:$4 sm:$0xff]   ;;  %v1268_v40 = vld [vmem:[%s1428_s6 + $0x28] ss:$20 sps:$4 sm:$0xff]   ;;  %v1275_v46 = vld [vmem:[%s1428_s6 + $0x50] ss:$20 sps:$4 sm:$0xff]  }
  0x1a   : > { %1111 = vmatpush3.bf16.msra.mxu0 %v1239_v14  ;;  %v1271_v42 = vld [vmem:[%s1428_s6 + $0x54] ss:$20 sps:$4 sm:$0xff]   ;;  %v1284_v45 = vld [vmem:[%s1526_s1 + $0x100] sm:$0xff]   ;;  %v1276_v47 = vld [vmem:[%s1428_s6 + $0x58] ss:$20 sps:$4 sm:$0xff]  }
  0x1b   : > { %1151 = vmatpush3.bf16.msra.mxu1 %v1240_v15  ;;  %1112 = vmatprep.subr.bf16.mxu0 %v1241_v16  ;;  %v1277_v44 = vld [vmem:[%s1526_s1 + $0x108] sm:$0xff]   ;;  %v1280_v49 = vld [vmem:[%s1428_s6 + $0x84] ss:$20 sps:$4 sm:$0xff]   ;;  %v1283_v51 = vld [vmem:[%s1428_s6 + $0x80] ss:$20 sps:$4 sm:$0xff]  }
  0x1c   : > { %1152 = vmatprep.subr.bf16.mxu1 %v1242_v17  ;;  %v1282_v50 = vld [vmem:[%s1428_s6 + $0x78] ss:$20 sps:$4 sm:$0xff]   ;;  %v1285_v52 = vld [vmem:[%s1428_s6 + $0x10] ss:$20 sps:$4 sm:$0xff]   ;;  %v1286_v53 = vld [vmem:[%s1428_s6 + $0x60] ss:$20 sps:$4 sm:$0xff]  }
  0x1d   : > { %v1287_v54 = vld [vmem:[%s1428_s6 + $0x38] ss:$20 sps:$4 sm:$0xff]   ;;  %v1288_v55 = vld [vmem:[%s1428_s6 + $0x88] ss:$20 sps:$4 sm:$0xff]  }
  0x1e   : > { %1113 = vmatpush3.bf16.msra.mxu0 %v1243_v18  ;;  %v1478_v17 = vld [vmem:[%s218_s25 + $0x8] sm:$0xff]   ;;  %v1480_v18 = vld [vmem:[%s218_s25 + $0x18] sm:$0xff]  }
  0x1f   : > { %1153 = vmatpush3.bf16.msra.mxu1 %v1244_v19  ;;  %1114 = vmatprep.subr.bf16.mxu0 %v1245_v20 }
  0x20   : > { %1154 = vmatprep.subr.bf16.mxu1 %v1246_v21  ;;  %v1482_v21 = vld [vmem:[%s218_s25] sm:$0xff]  }
  0x21   : > { %v1087_v33 = vunpack.c.l.bf16 %v1482_v21 }
  0x22   : > { %1115 = vmatpush3.bf16.msra.mxu0 %v1247_v22  ;;  %v1006_v22 = vld [vmem:[%s1527_s2] ss:$0 sm:$0xff] }
  0x23   : > { %1155 = vmatpush3.bf16.msra.mxu1 %v1248_v23  ;;  %1116 = vmatprep.subr.bf16.mxu0 %v1249_v24  ;;  %v1487_v24 = vld [vmem:[%s218_s25 + $0x10] sm:$0xff]  }
  0x24   : > { %1156 = vmatprep.subr.bf16.mxu1 %v1250_v25 }
  0x26   : > { %1117 = vmatpush3.bf16.msra.mxu0 %v1251_v26 }
  0x27   : > { %1157 = vmatpush3.bf16.msra.mxu1 %v1252_v27  ;;  %1118 = vmatprep.subr.bf16.mxu0 %v1253_v28  ;;  %v1091_v27 = vunpack.c.l.bf16 %v1478_v17  ;;  %v1099_v28 = vunpack.c.l.bf16 %v1480_v18 }
  0x28   : > { %1158 = vmatprep.subr.bf16.mxu1 %v1254_v29 }
  0x2a   : > { %1119 = vmatpush3.bf16.msra.mxu0 %v1255_v30 }
  0x2b   : > { %1159 = vmatpush3.bf16.msra.mxu1 %v1256_v31  ;;  %1192 = vmatprep.subr.bf16.mxu0 %v1263_v36 }
  0x2c   : > { %1208 = vmatprep.subr.bf16.mxu1 %v1263_v36 }
  0x2d   : > { %692 = vmatmul.mubr.bf16.vlgmr.msra.gmra.mxu0 %v1257_v32 }
  0x2e   : > { %757 = vmatmul.mubr.bf16.vlgmr.msra.gmra.mxu1 %v1260_v34  ;;  %1193 = vmatpush3.bf16.msra.mxu0 %v1263_v36 }
  0x2f   : > { %1212 = vmatpush3.bf16.msra.mxu1 %v1263_v36  ;;  %699 = vmatprep.mubr.bf16.mxu0 %v1264_v37  ;;  %v1095_v37 = vunpack.c.l.bf16 %v1487_v24 }
  0x30   : > { %764 = vmatprep.mubr.bf16.mxu1 %v1266_v38  ;;  %1194 = vmatprep.subr.bf16.mxu0 %v1270_v39  ;;  %v1092_v38 = vunpack.c.h.bf16 %v1478_v17  ;;  %v1096_v17 = vunpack.c.h.bf16 %v1487_v24 }
  0x31   : > { %1209 = vmatprep.subr.bf16.mxu1 %v1270_v39 }
  0x32   : > { %1195 = vmatpush3.bf16.msra.mxu0 %v1270_v39 }
  0x33   : > { %1213 = vmatpush3.bf16.msra.mxu1 %v1270_v39  ;;  %1196 = vmatprep.subr.bf16.mxu0 %v1277_v44 }
  0x34   : > { %1210 = vmatprep.subr.bf16.mxu1 %v1277_v44 }
  0x35   : > { %700 = vmatmul.mubr.bf16.gmra.mxu0 %v1268_v40 }
  0x36   : > { %765 = vmatmul.mubr.bf16.gmra.mxu1 %v1269_v41  ;;  %707 = vmatprep.mubr.bf16.mxu0 %v1271_v42 }
  0x37   : > { %772 = vmatprep.mubr.bf16.mxu1 %v1273_v43  ;;  %1197 = vmatpush3.bf16.msra.mxu0 %v1277_v44  ;;  %v1100_v43 = vunpack.c.h.bf16 %v1480_v18 }
  0x38   : > { %1214 = vmatpush3.bf16.msra.mxu1 %v1277_v44  ;;  %1198 = vmatprep.subr.bf16.mxu0 %v1284_v45 }
  0x39   : > { %1211 = vmatprep.subr.bf16.mxu1 %v1284_v45 }
  0x3b   : > { %1199 = vmatpush3.bf16.msra.mxu0 %v1284_v45 }
  0x3c   : > { %1215 = vmatpush3.bf16.msra.mxu1 %v1284_v45 }
  0x3d   : > { %708 = vmatmul.mubr.bf16.gmra.mxu0 %v1275_v46 }
  0x3e   : > { %773 = vmatmul.mubr.bf16.gmra.mxu1 %v1276_v47  ;;  %715 = vmatprep.mubr.bf16.mxu0 %v1278_v48 }
  0x3f   : > { %780 = vmatprep.mubr.bf16.mxu1 %v1280_v49 }
  0x45   : > { %716 = vmatmul.mubr.bf16.gmra.mxu0 %v1282_v50 }
  0x46   : > { %781 = vmatmul.mubr.bf16.gmra.mxu1 %v1283_v51  ;;  %1200 = vmatprep.mubr.msk.bf16.mxu0 %vm646_vm0, %v1285_v52 }
  0x47   : > { %1204 = vmatprep.mubr.msk.bf16.mxu1 %vm646_vm0, %v1286_v53 }
  0x4d   : > { %1201 = vmatmul.mubr.msk.bf16.vlgmr.msra.gmra.mxu0 %vm646_vm0, %v1287_v54 }
  0x4e   : > { %1205 = vmatmul.mubr.msk.bf16.vlgmr.msra.gmra.mxu1 %vm646_vm0, %v1288_v55 }
  0xed   : > { %v1120_v56 = vpop.f32.mrf.mxu0 }
  0xee   : > { %v1160_v57 = vpop.f32.mrf.mxu1 }
  0xef   : > { %v1121_v58 = vpop.f32.mrf.mxu0 }
  0xf0   : > { %v1161_v59 = vpop.f32.mrf.mxu1  ;;  %v1122_v19 = vadd.f32 %v1121_v58, %v1120_v56  ;;  %v1088_v58 = vunpack.c.h.bf16 %v1482_v21 }
  0xf1   : > { %v1123_v60 = vpop.f32.mrf.mxu0  ;;  %v1162_v44 = vadd.f32 %v1161_v59, %v1160_v57 }
  0xf2   : > { %v1468_v61 = vpop.f32.mrf.mxu1  ;;  %v694_v34 = vadd.f32 %v1122_v19, %v1006_v22 }
  0xf3   : > { %v1124_v62 = vpop.f32.mrf.mxu0 }
  0xf4   : > { %v1470_v63 = vpop.f32.mrf.mxu1  ;;  %v1125_v35 = vadd.f32 %v1124_v62, %v1123_v60  ;;  %v759_v56 = vadd.f32 %v1162_v44, %v694_v34 }
  0xf5   : > { %v1126_v0 = vpop.f32.mrf.mxu0  ;;  %v1165_v59 = vadd.f32 %v1470_v63, %v1468_v61 }
  0xf6   : > { %v1166_v1 = vpop.f32.mrf.mxu1  ;;  %v697_v53 = vadd.f32 %v1125_v35, %v1006_v22 }
  0xf7   : > { %v1127_v2 = vpop.f32.mrf.mxu0 }
  0xf8   : > { %v1167_v3 = vpop.f32.mrf.mxu1  ;;  %v1128_v15 = vadd.f32 %v1127_v2, %v1126_v0  ;;  %v762_v63 = vadd.f32 %v1165_v59, %v697_v53 }
  0xf9   : > { %v1129_v4 = vpop.f32.mrf.mxu0  ;;  %v1168_v39 = vadd.f32 %v1167_v3, %v1166_v1 }
  0xfa   : > { %v1169_v5 = vpop.f32.mrf.mxu1  ;;  %v702_v29 = vadd.f32 %v1128_v15, %v1006_v22 }
  0xfb   : > { %v1130_v6 = vpop.f32.mrf.mxu0 }
  0xfc   : > { %v1170_v7 = vpop.f32.mrf.mxu1  ;;  %v1131_v30 = vadd.f32 %v1130_v6, %v1129_v4  ;;  %v767_v51 = vadd.f32 %v1168_v39, %v702_v29 }
  0xfd   : > { %v1132_v8 = vpop.f32.mrf.mxu0  ;;  %v1171_v60 = vadd.f32 %v1170_v7, %v1169_v5 }
  0xfe   : > { %v1172_v9 = vpop.f32.mrf.mxu1  ;;  %v705_v48 = vadd.f32 %v1131_v30, %v1006_v22 }
  0xff   : > { %v1133_v10 = vpop.f32.mrf.mxu0 }
 0x100   : > { %v1173_v11 = vpop.f32.mrf.mxu1  ;;  %v1134_v25 = vadd.f32 %v1133_v10, %v1132_v8 }
 0x101   : > { %v1135_v12 = vpop.f32.mrf.mxu0  ;;  %v1174_v54 = vadd.f32 %v1173_v11, %v1172_v9  ;;  %v770_v11 = vadd.f32 %v1171_v60, %v705_v48 }
 0x102   : > { %v1175_v13 = vpop.f32.mrf.mxu1  ;;  %v710_v45 = vadd.f32 %v1134_v25, %v1006_v22 }
 0x103   : > { %v1136_v14 = vpop.f32.mrf.mxu0 }
 0x104   : > { %v1176_v16 = vpop.f32.mrf.mxu1  ;;  %v1137_v46 = vadd.f32 %v1136_v14, %v1135_v12  ;;  %v775_v6 = vadd.f32 %v1174_v54, %v710_v45 }
 0x105   : > { %v1138_v20 = vpop.f32.mrf.mxu0  ;;  %v1177_v14 = vadd.f32 %v1176_v16, %v1175_v13 }
 0x106   : > { %v1178_v23 = vpop.f32.mrf.mxu1  ;;  %v713_v2 = vadd.f32 %v1137_v46, %v1006_v22 }
 0x107   : > { %v1139_v26 = vpop.f32.mrf.mxu0 }
 0x108   : > { %v1140_v31 = vadd.f32 %v1139_v26, %v1138_v20  ;;  %v1179_v32 = vpop.f32.mrf.mxu1 }
 0x109   : > { %v1141_v36 = vpop.f32.mrf.mxu0  ;;  %v1180_v41 = vadd.f32 %v1179_v32, %v1178_v23  ;;  %v778_v23 = vadd.f32 %v1177_v14, %v713_v2 }
 0x10a   : > { %v718_v40 = vadd.f32 %v1140_v31, %v1006_v22  ;;  %v1181_v42 = vpop.f32.mrf.mxu1 }
 0x10b   : > { %v1142_v47 = vpop.f32.mrf.mxu0 }
 0x10c   : > { %v1143_v49 = vadd.f32 %v1142_v47, %v1141_v36  ;;  %v1182_v50 = vpop.f32.mrf.mxu1  ;;  %v783_v52 = vadd.f32 %v1180_v41, %v718_v40 }
 0x10d   : > { %v1202_v55 = vpop.f32.mrf.mxu0  ;;  %v1183_v0 = vadd.f32 %v1182_v50, %v1181_v42 }
 0x10e   : > { %v721_v62 = vadd.f32 %v1143_v49, %v1006_v22  ;;  %v832_v1 = vadd.f32 %v1202_v55, %v767_v51  ;;  %v1206_v57 = vpop.f32.mrf.mxu1 }
 0x10f   : > { %v848_v3 = vadd.f32 %v1206_v57, %v783_v52  ;;  %v823_v4 = vpop.f32.mrf.mxu0 }
 0x110   : > { %v872_v8 = vadd.f32 %v1091_v27, %v832_v1  ;;  %v824_v10 = vadd.f32 %v823_v4, %v759_v56  ;;  %v839_v9 = vpop.f32.mrf.mxu1  ;;  %v786_v12 = vadd.f32 %v1183_v0, %v721_v62 }
 0x111   : > { %v876_v15 = vadd.f32 %v1099_v28, %v848_v3  ;;  %v840_v5 = vadd.f32 %v839_v9, %v775_v6  ;;  %v1203_v7 = vpop.f32.mrf.mxu0 }
 0x112   : > { %v880_v18 = vmax.f32 %v872_v8, 0.0  ;;  %v870_v19 = vadd.f32 %v1087_v33, %v824_v10  ;;  %v835_v20 = vadd.f32 %v1203_v7, %v770_v11  ;;  %v1207_v61 = vpop.f32.mrf.mxu1 }
 0x113   : > { %v884_v21 = vmax.f32 %v876_v15, 0.0  ;;  %v874_v22 = vadd.f32 %v1095_v37, %v840_v5  ;;  %v851_v13 = vadd.f32 %v1207_v61, %v786_v12  ;;  %v826_v16 = vpop.f32.mrf.mxu0 }
 0x114   : > { %v1079_v25 = vpack.c.bf16 %v880_v18, %v880_v18  ;;  %v878_v24 = vmax.f32 %v870_v19, 0.0  ;;  %v873_v26 = vadd.f32 %v1092_v38, %v835_v20  ;;  %v827_v27 = vadd.f32 %v826_v16, %v762_v63  ;;  %v842_v28 = vpop.f32.mrf.mxu1 }
 0x115   : > { %v1083_v29 = vpack.c.bf16 %v884_v21, %v884_v21  ;;  %v882_v30 = vmax.f32 %v874_v22, 0.0  ;;  %v877_v31 = vadd.f32 %v1100_v43, %v851_v13  ;;  %v843_v32 = vadd.f32 %v842_v28, %v778_v23 }
 0x116   : > { %921 = vst.msk [vmem:[%s1504_s30 + $0x8] sm:$0xf] %vm918_vm1, %v1079_v25  ;;  %v1077_v33 = vpack.c.bf16 %v878_v24, %v878_v24  ;;  %v881_v34 = vmax.f32 %v873_v26, 0.0  ;;  %v871_v35 = vadd.f32 %v1088_v58, %v827_v27 }
 0x117   : > { %925 = vst.msk [vmem:[%s1504_s30 + $0x18] sm:$0xf] %vm918_vm1, %v1083_v29  ;;  %v1081_v36 = vpack.c.bf16 %v882_v30, %v882_v30  ;;  %v885_v37 = vmax.f32 %v877_v31, 0.0  ;;  %v875_v38 = vadd.f32 %v1096_v17, %v843_v32 }
 0x118   : > { %919 = vst.msk [vmem:[%s1504_s30] sm:$0xf] %vm918_vm1, %v1077_v33  ;;  %v1080_v39 = vpack.c.bf16 %v881_v34, %v881_v34  ;;  %v879_v40 = vmax.f32 %v871_v35, 0.0 }
 0x119   : > { %923 = vst.msk [vmem:[%s1504_s30 + $0x10] sm:$0xf] %vm918_vm1, %v1081_v36  ;;  %v1084_v41 = vpack.c.bf16 %v885_v37, %v885_v37  ;;  %v883_v42 = vmax.f32 %v875_v38, 0.0 }
 0x11a   : > { %922 = vst.msk [vmem:[%s1504_s30 + $0xc] sm:$0xf] %vm918_vm1, %v1080_v39  ;;  %v1078_v43 = vpack.c.bf16 %v879_v40, %v879_v40 }
 0x11b   : > { %926 = vst.msk [vmem:[%s1504_s30 + $0x1c] sm:$0xf] %vm918_vm1, %v1084_v41  ;;  %v1082_v44 = vpack.c.bf16 %v883_v42, %v883_v42 }
 0x11c   : > { %920 = vst.msk [vmem:[%s1504_s30 + $0x4] sm:$0xf] %vm918_vm1, %v1078_v43 }
 0x11d   : > { %924 = vst.msk [vmem:[%s1504_s30 + $0x14] sm:$0xf] %vm918_vm1, %v1082_v44 }
 0x11e PF: > { %s14_s15 = sadd.s32 1, %s1295_s15  }
 0x11f   : > { %p11_p4 = scmp.ge.s32.totalorder %s14_s15, 4  }
 0x121   :  { %13 = sbr.rel (!%p11_p4) target bundleno = 1 (0x1), region = 69 }

// kernel: colornet_forward.20
= control target key start
LH: loop header
LB: loop body
LE: loop exit
PB: predicated region body
PF: predicated region fallthrough
CT: control target
= control target key end

     0   :  { %vm68_vm0 = vcmask 523264   ;;  %s247_s1 = inlined_call_operand.vmem [shape: bf16[64,128], index: 1, kind: input, shape index: {}]   ;;  %s248_s0 = inlined_call_operand.vmem [shape: bf16[32,64], index: 0, kind: input, shape index: {}]   ;;  %s249_s2 = inlined_call_operand.vmem [shape: f32[1,128], index: 2, kind: input, shape index: {}]   ;;  %s250_s3 = inlined_call_operand.vmem [shape: bf16[32,128], index: 3, kind: output, shape index: {}]  }
   0x1   :  { %v194_v0 = vld [vmem:[%s247_s1 + $0x18] sm:$0xff]   ;;  %v195_v1 = vld [vmem:[%s247_s1 + $0x10] sm:$0xff]   ;;  %v196_v2 = vld [vmem:[%s247_s1 + $0x8] sm:$0xff]  }
   0x2   :  { %182 = vmatprep.subr.bf16.mxu0 %v194_v0  ;;  %v198_v3 = vld [vmem:[%s248_s0] sm:$0xff]   ;;  %v199_v5 = vld [vmem:[%s248_s0 + $0x8] sm:$0xff]  }
   0x3   :  { %183 = vmatpush3.bf16.msra.mxu0 %v194_v0  ;;  %190 = vmatprep.mubr.msk.bf16.mxu0 %vm68_vm0, %v198_v3  ;;  %v197_v4 = vld [vmem:[%s247_s1] sm:$0xff]  }
   0x4   :  { %184 = vmatprep.subr.bf16.mxu0 %v195_v1  ;;  %v148_v7 = vld [vmem:[%s249_s2] ss:$0 sm:$0xff] }
   0x7   :  { %185 = vmatpush3.bf16.msra.mxu0 %v195_v1 }
   0x8   :  { %186 = vmatprep.subr.bf16.mxu0 %v196_v2 }
   0xb   :  { %187 = vmatpush3.bf16.msra.mxu0 %v196_v2 }
   0xc   :  { %188 = vmatprep.subr.bf16.mxu0 %v197_v4 }
   0xf   :  { %189 = vmatpush3.bf16.msra.mxu0 %v197_v4 }
  0x12   :  { %191 = vmatmul.mubr.msk.bf16.vlgmr.msra.gmra.mxu0 %vm68_vm0, %v199_v5 }
  0xd2   :  { %v192_v6 = vpop.f32.mrf.mxu0 }
  0xd3   :  { %v118_v10 = vadd.f32 %v192_v6, %v148_v7 }
  0xd4   :  { %v109_v8 = vpop.f32.mrf.mxu0 }
  0xd5   :  { %v110_v13 = vadd.f32 %v148_v7, %v109_v8 }
  0xd6   :  { %v193_v9 = vpop.f32.mrf.mxu0 }
  0xd7   :  { %v121_v11 = vadd.f32 %v193_v9, %v148_v7 }
  0xd8   :  { %v112_v12 = vpop.f32.mrf.mxu0 }
  0xd9   :  { %v173_v14 = vpack.c.bf16 %v121_v11, %v118_v10  ;;  %v113_v15 = vadd.f32 %v148_v7, %v112_v12 }
  0xdb   :  { %175 = vst [vmem:[%s250_s3 + $0x8] sm:$0xff] %v173_v14   ;;  %v168_v16 = vpack.c.bf16 %v113_v15, %v110_v13 }
  0xdd   :  { %169 = vst [vmem:[%s250_s3] sm:$0xff] %v168_v16  }

// kernel: colornet_forward.16
= control target key start
LH: loop header
LB: loop body
LE: loop exit
PB: predicated region body
PF: predicated region fallthrough
CT: control target
= control target key end

     0   :  { %s1211_s12 = smov 0   ;;  %s1385_s0 = inlined_call_operand.vmem [shape: bf16[128,576], index: 0, kind: input, shape index: {}]   ;;  %s1386_s1 = inlined_call_operand.vmem [shape: bf16[576,64], index: 1, kind: input, shape index: {}]   ;;  %s1387_s2 = inlined_call_operand.vmem [shape: f32[1,64], index: 2, kind: input, shape index: {}]   ;;  %s1388_s3 = inlined_call_operand.vmem [shape: bf16[128,64], index: 3, kind: output, shape index: {}]  }
   0x1 LB: > { %s910_s13 = sadd.s32 4294967295, %s1189_s12   ;;  %p914_p0 = scmp.ge.s32.totalorder %s1189_s12, 1  ;;  %s1189_s12 = sphi %s1211_s12, %s13_s12  }
   0x2   : > { %p139_p1 = scmp.lt.s32.totalorder %s1189_s12, 3 }
   0x4   : > { %p140_p2 = pnand %p914_p0, %p139_p1 }
   0x5   : > { %s915_s19 = sshll.u32 (!%p140_p2), %s910_s13, 3 }
   0x6   : > { %143 = sbr.rel (%p140_p2) target bundleno = 284 (0x11c), region = 32  ;;  %p165_p3 = scmp.lt.s32.totalorder (!%p140_p2), %s915_s19, 15 }
   0xb   : > { %v1119_v0 = vld [vmem:[%s1386_s1 + $0x78] sm:$0xff]   ;;  %v1123_v4 = vld [vmem:[%s1386_s1 + $0x70] sm:$0xff]   ;;  %v1127_v8 = vld [vmem:[%s1386_s1 + $0x68] sm:$0xff]   ;;  %s1390_s19 = smov (!%p165_p3, %s915_s19), 15  ;;  %vm597_vm0 = vcmask 523264   ;;  %vm845_vm1 = vcmask 519168  }
   0xc   : > { %v1120_v1 = vld [vmem:[%s1386_s1 + $0xf8] sm:$0xff]   ;;  %998 = vmatprep.subr.bf16.mxu0 %v1119_v0  ;;  %v1124_v5 = vld [vmem:[%s1386_s1 + $0xf0] sm:$0xff]   ;;  %v1128_v9 = vld [vmem:[%s1386_s1 + $0xe8] sm:$0xff]   ;;  %s1110_s16 = smul.u32 20, %s1390_s19  ;;  %s918_s17 = sshll.u32 %s1390_s19, 2 }
   0xd   : > { %v1121_v2 = vld [vmem:[%s1386_s1 + $0x38] sm:$0xff]   ;;  %1038 = vmatprep.subr.bf16.mxu1 %v1120_v1  ;;  %v1125_v6 = vld [vmem:[%s1386_s1 + $0x30] sm:$0xff]   ;;  %v1129_v10 = vld [vmem:[%s1386_s1 + $0x28] sm:$0xff]   ;;  %s1364_s21 = scalar_lea.vmem %s1388_s3, %s918_s17 }
   0xe   : > { %v1122_v3 = vld [vmem:[%s1386_s1 + $0xb8] sm:$0xff]   ;;  %999 = vmatpush3.bf16.msra.mxu0 %v1121_v2  ;;  %v1126_v7 = vld [vmem:[%s1386_s1 + $0xb0] sm:$0xff]   ;;  %v1130_v11 = vld [vmem:[%s1386_s1 + $0xa8] sm:$0xff]   ;;  %s1317_s13 = scalar_lea.vmem %s1385_s0, %s1110_s16 }
   0xf   : > { %1039 = vmatpush3.bf16.msra.mxu1 %v1122_v3  ;;  %1000 = vmatprep.subr.bf16.mxu0 %v1123_v4  ;;  %v1131_v12 = vld [vmem:[%s1386_s1 + $0x60] sm:$0xff]   ;;  %v1135_v16 = vld [vmem:[%s1386_s1 + $0x58] sm:$0xff]   ;;  %v1139_v20 = vld [vmem:[%s1386_s1 + $0x50] sm:$0xff]  }
  0x10   : > { %1040 = vmatprep.subr.bf16.mxu1 %v1124_v5  ;;  %v1132_v13 = vld [vmem:[%s1386_s1 + $0xe0] sm:$0xff]   ;;  %v1136_v17 = vld [vmem:[%s1386_s1 + $0xd8] sm:$0xff]   ;;  %v1140_v21 = vld [vmem:[%s1386_s1 + $0xd0] sm:$0xff]  }
  0x11   : > { %v1133_v14 = vld [vmem:[%s1386_s1 + $0x20] sm:$0xff]   ;;  %v1137_v18 = vld [vmem:[%s1386_s1 + $0x18] sm:$0xff]   ;;  %v1141_v22 = vld [vmem:[%s1386_s1 + $0x10] sm:$0xff]  }
  0x12   : > { %1001 = vmatpush3.bf16.msra.mxu0 %v1125_v6  ;;  %v1134_v15 = vld [vmem:[%s1386_s1 + $0xa0] sm:$0xff]   ;;  %v1138_v19 = vld [vmem:[%s1386_s1 + $0x98] sm:$0xff]   ;;  %v1142_v23 = vld [vmem:[%s1386_s1 + $0x90] sm:$0xff]  }
  0x13   : > { %1041 = vmatpush3.bf16.msra.mxu1 %v1126_v7  ;;  %1002 = vmatprep.subr.bf16.mxu0 %v1127_v8  ;;  %v1143_v24 = vld [vmem:[%s1386_s1 + $0x48] sm:$0xff]   ;;  %v1147_v28 = vld [vmem:[%s1386_s1 + $0x40] sm:$0xff]   ;;  %v1157_v36 = vld [vmem:[%s1386_s1 + $0x118] sm:$0xff]  }
  0x14   : > { %1042 = vmatprep.subr.bf16.mxu1 %v1128_v9  ;;  %v1144_v25 = vld [vmem:[%s1386_s1 + $0xc8] sm:$0xff]   ;;  %v1148_v29 = vld [vmem:[%s1386_s1 + $0xc0] sm:$0xff]   ;;  %v1164_v39 = vld [vmem:[%s1386_s1 + $0x110] sm:$0xff]  }
  0x15   : > { %v1145_v26 = vld [vmem:[%s1386_s1 + $0x8] sm:$0xff]   ;;  %v1149_v30 = vld [vmem:[%s1386_s1] sm:$0xff]   ;;  %v1167_v43 = vld [vmem:[%s1317_s13 + $0x5c] ss:$20 sps:$4 sm:$0xff]  }
  0x16   : > { %1003 = vmatpush3.bf16.msra.mxu0 %v1129_v10  ;;  %v1146_v27 = vld [vmem:[%s1386_s1 + $0x88] sm:$0xff]   ;;  %v1150_v31 = vld [vmem:[%s1386_s1 + $0x80] sm:$0xff]   ;;  %v1172_v48 = vld [vmem:[%s1317_s13 + $0x7c] ss:$20 sps:$4 sm:$0xff]  }
  0x17   : > { %1043 = vmatpush3.bf16.msra.mxu1 %v1130_v11  ;;  %1004 = vmatprep.subr.bf16.mxu0 %v1131_v12  ;;  %v1151_v32 = vld [vmem:[%s1317_s13] ss:$20 sps:$4 sm:$0xff]   ;;  %v1153_v33 = vld [vmem:[%s1317_s13 + $0x4] ss:$20 sps:$4 sm:$0xff]   ;;  %v1154_v34 = vld [vmem:[%s1317_s13 + $0x8] ss:$20 sps:$4 sm:$0xff]  }
  0x18   : > { %1044 = vmatprep.subr.bf16.mxu1 %v1132_v13  ;;  %v1156_v35 = vld [vmem:[%s1317_s13 + $0xc] ss:$20 sps:$4 sm:$0xff]   ;;  %642 = vmatprep.mubr.bf16.mxu0 %v1153_v33  ;;  %v1160_v38 = vld [vmem:[%s1317_s13 + $0x34] ss:$20 sps:$4 sm:$0xff]   ;;  %v1163_v41 = vld [vmem:[%s1317_s13 + $0x30] ss:$20 sps:$4 sm:$0xff]  }
  0x19   : > { %707 = vmatprep.mubr.bf16.mxu1 %v1156_v35  ;;  %v1158_v37 = vld [vmem:[%s1317_s13 + $0x2c] ss:$20 sps:$4 sm:$0xff]   ;;  %v1162_v40 = vld [vmem:[%s1317_s13 + $0x28] ss:$20 sps:$4 sm:$0xff]   ;;  %v1169_v46 = vld [vmem:[%s1317_s13 + $0x50] ss:$20 sps:$4 sm:$0xff]  }
  0x1a   : > { %1005 = vmatpush3.bf16.msra.mxu0 %v1133_v14  ;;  %v1165_v42 = vld [vmem:[%s1317_s13 + $0x54] ss:$20 sps:$4 sm:$0xff]   ;;  %v1178_v45 = vld [vmem:[%s1386_s1 + $0x100] sm:$0xff]   ;;  %v1170_v47 = vld [vmem:[%s1317_s13 + $0x58] ss:$20 sps:$4 sm:$0xff]  }
  0x1b   : > { %1045 = vmatpush3.bf16.msra.mxu1 %v1134_v15  ;;  %1006 = vmatprep.subr.bf16.mxu0 %v1135_v16  ;;  %v1171_v44 = vld [vmem:[%s1386_s1 + $0x108] sm:$0xff]   ;;  %v1174_v49 = vld [vmem:[%s1317_s13 + $0x84] ss:$20 sps:$4 sm:$0xff]   ;;  %v1177_v51 = vld [vmem:[%s1317_s13 + $0x80] ss:$20 sps:$4 sm:$0xff]  }
  0x1c   : > { %1046 = vmatprep.subr.bf16.mxu1 %v1136_v17  ;;  %v1176_v50 = vld [vmem:[%s1317_s13 + $0x78] ss:$20 sps:$4 sm:$0xff]   ;;  %v1179_v52 = vld [vmem:[%s1317_s13 + $0x10] ss:$20 sps:$4 sm:$0xff]   ;;  %v1180_v53 = vld [vmem:[%s1317_s13 + $0x60] ss:$20 sps:$4 sm:$0xff]  }
  0x1d   : > { %v1181_v54 = vld [vmem:[%s1317_s13 + $0x38] ss:$20 sps:$4 sm:$0xff]   ;;  %v1182_v55 = vld [vmem:[%s1317_s13 + $0x88] ss:$20 sps:$4 sm:$0xff]  }
  0x1e   : > { %1007 = vmatpush3.bf16.msra.mxu0 %v1137_v18 }
  0x1f   : > { %1047 = vmatpush3.bf16.msra.mxu1 %v1138_v19  ;;  %1008 = vmatprep.subr.bf16.mxu0 %v1139_v20  ;;  %v919_v19 = vld [vmem:[%s1387_s2] ss:$0 sm:$0xff] }
  0x20   : > { %1048 = vmatprep.subr.bf16.mxu1 %v1140_v21 }
  0x22   : > { %1009 = vmatpush3.bf16.msra.mxu0 %v1141_v22 }
  0x23   : > { %1049 = vmatpush3.bf16.msra.mxu1 %v1142_v23  ;;  %1010 = vmatprep.subr.bf16.mxu0 %v1143_v24 }
  0x24   : > { %1050 = vmatprep.subr.bf16.mxu1 %v1144_v25 }
  0x26   : > { %1011 = vmatpush3.bf16.msra.mxu0 %v1145_v26 }
  0x27   : > { %1051 = vmatpush3.bf16.msra.mxu1 %v1146_v27  ;;  %1012 = vmatprep.subr.bf16.mxu0 %v1147_v28 }
  0x28   : > { %1052 = vmatprep.subr.bf16.mxu1 %v1148_v29 }
  0x2a   : > { %1013 = vmatpush3.bf16.msra.mxu0 %v1149_v30 }
  0x2b   : > { %1053 = vmatpush3.bf16.msra.mxu1 %v1150_v31  ;;  %1086 = vmatprep.subr.bf16.mxu0 %v1157_v36 }
  0x2c   : > { %1102 = vmatprep.subr.bf16.mxu1 %v1157_v36 }
  0x2d   : > { %643 = vmatmul.mubr.bf16.vlgmr.msra.gmra.mxu0 %v1151_v32 }
  0x2e   : > { %708 = vmatmul.mubr.bf16.vlgmr.msra.gmra.mxu1 %v1154_v34  ;;  %1087 = vmatpush3.bf16.msra.mxu0 %v1157_v36 }
  0x2f   : > { %1106 = vmatpush3.bf16.msra.mxu1 %v1157_v36  ;;  %650 = vmatprep.mubr.bf16.mxu0 %v1158_v37 }
  0x30   : > { %715 = vmatprep.mubr.bf16.mxu1 %v1160_v38  ;;  %1088 = vmatprep.subr.bf16.mxu0 %v1164_v39 }
  0x31   : > { %1103 = vmatprep.subr.bf16.mxu1 %v1164_v39 }
  0x32   : > { %1089 = vmatpush3.bf16.msra.mxu0 %v1164_v39 }
  0x33   : > { %1107 = vmatpush3.bf16.msra.mxu1 %v1164_v39  ;;  %1090 = vmatprep.subr.bf16.mxu0 %v1171_v44 }
  0x34   : > { %1104 = vmatprep.subr.bf16.mxu1 %v1171_v44 }
  0x35   : > { %651 = vmatmul.mubr.bf16.gmra.mxu0 %v1162_v40 }
  0x36   : > { %716 = vmatmul.mubr.bf16.gmra.mxu1 %v1163_v41  ;;  %658 = vmatprep.mubr.bf16.mxu0 %v1165_v42 }
  0x37   : > { %723 = vmatprep.mubr.bf16.mxu1 %v1167_v43  ;;  %1091 = vmatpush3.bf16.msra.mxu0 %v1171_v44 }
  0x38   : > { %1108 = vmatpush3.bf16.msra.mxu1 %v1171_v44  ;;  %1092 = vmatprep.subr.bf16.mxu0 %v1178_v45 }
  0x39   : > { %1105 = vmatprep.subr.bf16.mxu1 %v1178_v45 }
  0x3b   : > { %1093 = vmatpush3.bf16.msra.mxu0 %v1178_v45 }
  0x3c   : > { %1109 = vmatpush3.bf16.msra.mxu1 %v1178_v45 }
  0x3d   : > { %659 = vmatmul.mubr.bf16.gmra.mxu0 %v1169_v46 }
  0x3e   : > { %724 = vmatmul.mubr.bf16.gmra.mxu1 %v1170_v47  ;;  %666 = vmatprep.mubr.bf16.mxu0 %v1172_v48 }
  0x3f   : > { %731 = vmatprep.mubr.bf16.mxu1 %v1174_v49 }
  0x45   : > { %667 = vmatmul.mubr.bf16.gmra.mxu0 %v1176_v50 }
  0x46   : > { %732 = vmatmul.mubr.bf16.gmra.mxu1 %v1177_v51  ;;  %1094 = vmatprep.mubr.msk.bf16.mxu0 %vm597_vm0, %v1179_v52 }
  0x47   : > { %1098 = vmatprep.mubr.msk.bf16.mxu1 %vm597_vm0, %v1180_v53 }
  0x4d   : > { %1095 = vmatmul.mubr.msk.bf16.vlgmr.msra.gmra.mxu0 %vm597_vm0, %v1181_v54 }
  0x4e   : > { %1099 = vmatmul.mubr.msk.bf16.vlgmr.msra.gmra.mxu1 %vm597_vm0, %v1182_v55 }
  0xed   : > { %v1014_v56 = vpop.f32.mrf.mxu0 }
  0xee   : > { %v1054_v57 = vpop.f32.mrf.mxu1 }
  0xef   : > { %v1015_v58 = vpop.f32.mrf.mxu0 }
  0xf0   : > { %v1055_v59 = vpop.f32.mrf.mxu1  ;;  %v1016_v17 = vadd.f32 %v1015_v58, %v1014_v56 }
  0xf1   : > { %v1017_v60 = vpop.f32.mrf.mxu0  ;;  %v1056_v34 = vadd.f32 %v1055_v59, %v1054_v57 }
  0xf2   : > { %v1057_v61 = vpop.f32.mrf.mxu1  ;;  %v645_v27 = vadd.f32 %v1016_v17, %v919_v19 }
  0xf3   : > { %v1018_v62 = vpop.f32.mrf.mxu0 }
  0xf4   : > { %v1058_v63 = vpop.f32.mrf.mxu1  ;;  %v1019_v28 = vadd.f32 %v1018_v62, %v1017_v60  ;;  %v710_v46 = vadd.f32 %v1056_v34, %v645_v27 }
  0xf5   : > { %v1020_v0 = vpop.f32.mrf.mxu0  ;;  %v1059_v52 = vadd.f32 %v1058_v63, %v1057_v61 }
  0xf6   : > { %v1060_v1 = vpop.f32.mrf.mxu1  ;;  %v648_v43 = vadd.f32 %v1019_v28, %v919_v19 }
  0xf7   : > { %v1021_v2 = vpop.f32.mrf.mxu0 }
  0xf8   : > { %v1061_v3 = vpop.f32.mrf.mxu1  ;;  %v1022_v15 = vadd.f32 %v1021_v2, %v1020_v0 }
  0xf9   : > { %v1023_v4 = vpop.f32.mrf.mxu0  ;;  %v1062_v30 = vadd.f32 %v1061_v3, %v1060_v1 }
  0xfa   : > { %v1063_v5 = vpop.f32.mrf.mxu1  ;;  %v653_v23 = vadd.f32 %v1022_v15, %v919_v19 }
  0xfb   : > { %v1024_v6 = vpop.f32.mrf.mxu0 }
  0xfc   : > { %v1064_v7 = vpop.f32.mrf.mxu1  ;;  %v1025_v24 = vadd.f32 %v1024_v6, %v1023_v4  ;;  %v718_v41 = vadd.f32 %v1062_v30, %v653_v23  ;;  %v713_v6 = vadd.f32 %v1059_v52, %v648_v43 }
  0xfd   : > { %v1026_v8 = vpop.f32.mrf.mxu0  ;;  %v1065_v47 = vadd.f32 %v1064_v7, %v1063_v5 }
  0xfe   : > { %v1066_v9 = vpop.f32.mrf.mxu1  ;;  %v656_v38 = vadd.f32 %v1025_v24, %v919_v19 }
  0xff   : > { %v1027_v10 = vpop.f32.mrf.mxu0 }
 0x100   : > { %v1067_v11 = vpop.f32.mrf.mxu1  ;;  %v1028_v21 = vadd.f32 %v1027_v10, %v1026_v8  ;;  %v721_v60 = vadd.f32 %v1065_v47, %v656_v38 }
 0x101   : > { %v1029_v12 = vpop.f32.mrf.mxu0  ;;  %v1068_v44 = vadd.f32 %v1067_v11, %v1066_v9 }
 0x102   : > { %v1069_v13 = vpop.f32.mrf.mxu1  ;;  %v661_v35 = vadd.f32 %v1028_v21, %v919_v19 }
 0x103   : > { %v1030_v14 = vpop.f32.mrf.mxu0 }
 0x104   : > { %v1070_v16 = vpop.f32.mrf.mxu1  ;;  %v1031_v36 = vadd.f32 %v1030_v14, %v1029_v12  ;;  %v726_v56 = vadd.f32 %v1068_v44, %v661_v35 }
 0x105   : > { %v1032_v18 = vpop.f32.mrf.mxu0  ;;  %v1071_v0 = vadd.f32 %v1070_v16, %v1069_v13 }
 0x106   : > { %v1072_v20 = vpop.f32.mrf.mxu1  ;;  %v664_v53 = vadd.f32 %v1031_v36, %v919_v19 }
 0x107   : > { %v1033_v22 = vpop.f32.mrf.mxu0 }
 0x108   : > { %v1034_v25 = vadd.f32 %v1033_v22, %v1032_v18  ;;  %v1073_v26 = vpop.f32.mrf.mxu1  ;;  %v729_v11 = vadd.f32 %v1071_v0, %v664_v53 }
 0x109   : > { %v1035_v29 = vpop.f32.mrf.mxu0  ;;  %v1074_v32 = vadd.f32 %v1073_v26, %v1072_v20 }
 0x10a   : > { %v669_v31 = vadd.f32 %v1034_v25, %v919_v19  ;;  %v1075_v33 = vpop.f32.mrf.mxu1 }
 0x10b   : > { %v1036_v37 = vpop.f32.mrf.mxu0 }
 0x10c   : > { %v1037_v39 = vadd.f32 %v1036_v37, %v1035_v29  ;;  %v1076_v40 = vpop.f32.mrf.mxu1  ;;  %v734_v42 = vadd.f32 %v1074_v32, %v669_v31 }
 0x10d   : > { %v1096_v45 = vpop.f32.mrf.mxu0  ;;  %v1077_v49 = vadd.f32 %v1076_v40, %v1075_v33 }
 0x10e   : > { %v672_v48 = vadd.f32 %v1037_v39, %v919_v19  ;;  %v783_v50 = vadd.f32 %v1096_v45, %v718_v41  ;;  %v1100_v51 = vpop.f32.mrf.mxu1 }
 0x10f   : > { %v799_v54 = vadd.f32 %v1100_v51, %v734_v42  ;;  %v774_v55 = vpop.f32.mrf.mxu0 }
 0x110   : > { %v807_v57 = vmax.f32 %v783_v50, 0.0  ;;  %v775_v58 = vadd.f32 %v774_v55, %v710_v46  ;;  %v790_v59 = vpop.f32.mrf.mxu1  ;;  %v737_v62 = vadd.f32 %v1077_v49, %v672_v48 }
 0x111   : > { %v811_v1 = vmax.f32 %v799_v54, 0.0  ;;  %v791_v2 = vadd.f32 %v790_v59, %v726_v56  ;;  %v1097_v61 = vpop.f32.mrf.mxu0 }
 0x112   : > { %v992_v63 = vpack.c.bf16 %v807_v57, %v807_v57  ;;  %v805_v3 = vmax.f32 %v775_v58, 0.0  ;;  %v786_v4 = vadd.f32 %v1097_v61, %v721_v60  ;;  %v1101_v5 = vpop.f32.mrf.mxu1 }
 0x113   : > { %v996_v7 = vpack.c.bf16 %v811_v1, %v811_v1  ;;  %v809_v8 = vmax.f32 %v791_v2, 0.0  ;;  %v802_v9 = vadd.f32 %v1101_v5, %v737_v62  ;;  %v777_v10 = vpop.f32.mrf.mxu0 }
 0x114   : > { %848 = vst.msk [vmem:[%s1364_s21 + $0x8] sm:$0xf] %vm845_vm1, %v992_v63  ;;  %v990_v12 = vpack.c.bf16 %v805_v3, %v805_v3  ;;  %v808_v13 = vmax.f32 %v786_v4, 0.0  ;;  %v778_v14 = vadd.f32 %v777_v10, %v713_v6  ;;  %v793_v15 = vpop.f32.mrf.mxu1 }
 0x115   : > { %852 = vst.msk [vmem:[%s1364_s21 + $0x18] sm:$0xf] %vm845_vm1, %v996_v7  ;;  %v994_v16 = vpack.c.bf16 %v809_v8, %v809_v8  ;;  %v812_v17 = vmax.f32 %v802_v9, 0.0  ;;  %v794_v18 = vadd.f32 %v793_v15, %v729_v11 }
 0x116   : > { %846 = vst.msk [vmem:[%s1364_s21] sm:$0xf] %vm845_vm1, %v990_v12  ;;  %v993_v19 = vpack.c.bf16 %v808_v13, %v808_v13  ;;  %v806_v20 = vmax.f32 %v778_v14, 0.0 }
 0x117   : > { %850 = vst.msk [vmem:[%s1364_s21 + $0x10] sm:$0xf] %vm845_vm1, %v994_v16  ;;  %v997_v21 = vpack.c.bf16 %v812_v17, %v812_v17  ;;  %v810_v22 = vmax.f32 %v794_v18, 0.0 }
 0x118   : > { %849 = vst.msk [vmem:[%s1364_s21 + $0xc] sm:$0xf] %vm845_vm1, %v993_v19  ;;  %v991_v23 = vpack.c.bf16 %v806_v20, %v806_v20 }
 0x119   : > { %853 = vst.msk [vmem:[%s1364_s21 + $0x1c] sm:$0xf] %vm845_vm1, %v997_v21  ;;  %v995_v24 = vpack.c.bf16 %v810_v22, %v810_v22 }
 0x11a   : > { %847 = vst.msk [vmem:[%s1364_s21 + $0x4] sm:$0xf] %vm845_vm1, %v991_v23 }
 0x11b   : > { %851 = vst.msk [vmem:[%s1364_s21 + $0x14] sm:$0xf] %vm845_vm1, %v995_v24 }
 0x11c PF: > { %s13_s12 = sadd.s32 1, %s1189_s12  }
 0x11d   : > { %p10_p4 = scmp.ge.s32.totalorder %s13_s12, 4  }
 0x11f   :  { %12 = sbr.rel (!%p10_p4) target bundleno = 1 (0x1), region = 62 }

// kernel: colornet_forward.21
= control target key start
LH: loop header
LB: loop body
LE: loop exit
PB: predicated region body
PF: predicated region fallthrough
CT: control target
= control target key end

     0   :  { %vm372_vm0 = vcmask 523264   ;;  %s913_s1 = inlined_call_operand.vmem [shape: bf16[576,128], index: 1, kind: input, shape index: {}]   ;;  %s914_s0 = inlined_call_operand.vmem [shape: bf16[32,576], index: 0, kind: input, shape index: {}]   ;;  %s915_s2 = inlined_call_operand.vmem [shape: f32[1,128], index: 2, kind: input, shape index: {}]   ;;  %s916_s3 = inlined_call_operand.vmem [shape: bf16[32,128], index: 3, kind: output, shape index: {}]  }
   0x1   :  { %v696_v0 = vld [vmem:[%s913_s1 + $0x78] sm:$0xff]   ;;  %v700_v4 = vld [vmem:[%s913_s1 + $0x70] sm:$0xff]   ;;  %v704_v8 = vld [vmem:[%s913_s1 + $0x68] sm:$0xff]  }
   0x2   :  { %v697_v1 = vld [vmem:[%s913_s1 + $0xf8] sm:$0xff]   ;;  %622 = vmatprep.subr.bf16.mxu0 %v696_v0  ;;  %v701_v5 = vld [vmem:[%s913_s1 + $0xf0] sm:$0xff]   ;;  %v705_v9 = vld [vmem:[%s913_s1 + $0xe8] sm:$0xff]  }
   0x3   :  { %v698_v2 = vld [vmem:[%s913_s1 + $0x38] sm:$0xff]   ;;  %650 = vmatprep.subr.bf16.mxu1 %v697_v1  ;;  %v702_v6 = vld [vmem:[%s913_s1 + $0x30] sm:$0xff]   ;;  %v706_v10 = vld [vmem:[%s913_s1 + $0x28] sm:$0xff]  }
   0x4   :  { %v699_v3 = vld [vmem:[%s913_s1 + $0xb8] sm:$0xff]   ;;  %623 = vmatpush3.bf16.msra.mxu0 %v698_v2  ;;  %v703_v7 = vld [vmem:[%s913_s1 + $0xb0] sm:$0xff]   ;;  %v707_v11 = vld [vmem:[%s913_s1 + $0xa8] sm:$0xff]  }
   0x5   :  { %651 = vmatpush3.bf16.msra.mxu1 %v699_v3  ;;  %624 = vmatprep.subr.bf16.mxu0 %v700_v4  ;;  %v708_v12 = vld [vmem:[%s913_s1 + $0x60] sm:$0xff]   ;;  %v712_v16 = vld [vmem:[%s913_s1 + $0x58] sm:$0xff]   ;;  %v716_v20 = vld [vmem:[%s913_s1 + $0x50] sm:$0xff]  }
   0x6   :  { %652 = vmatprep.subr.bf16.mxu1 %v701_v5  ;;  %v709_v13 = vld [vmem:[%s913_s1 + $0xe0] sm:$0xff]   ;;  %v713_v17 = vld [vmem:[%s913_s1 + $0xd8] sm:$0xff]   ;;  %v717_v21 = vld [vmem:[%s913_s1 + $0xd0] sm:$0xff]  }
   0x7   :  { %v710_v14 = vld [vmem:[%s913_s1 + $0x20] sm:$0xff]   ;;  %v714_v18 = vld [vmem:[%s913_s1 + $0x18] sm:$0xff]   ;;  %v718_v22 = vld [vmem:[%s913_s1 + $0x10] sm:$0xff]  }
   0x8   :  { %625 = vmatpush3.bf16.msra.mxu0 %v702_v6  ;;  %v711_v15 = vld [vmem:[%s913_s1 + $0xa0] sm:$0xff]   ;;  %v715_v19 = vld [vmem:[%s913_s1 + $0x98] sm:$0xff]   ;;  %v719_v23 = vld [vmem:[%s913_s1 + $0x90] sm:$0xff]  }
   0x9   :  { %653 = vmatpush3.bf16.msra.mxu1 %v703_v7  ;;  %626 = vmatprep.subr.bf16.mxu0 %v704_v8  ;;  %v720_v24 = vld [vmem:[%s913_s1 + $0x48] sm:$0xff]   ;;  %v724_v28 = vld [vmem:[%s913_s1 + $0x40] sm:$0xff]   ;;  %v734_v36 = vld [vmem:[%s913_s1 + $0x118] sm:$0xff]  }
   0xa   :  { %654 = vmatprep.subr.bf16.mxu1 %v705_v9  ;;  %v721_v25 = vld [vmem:[%s913_s1 + $0xc8] sm:$0xff]   ;;  %v725_v29 = vld [vmem:[%s913_s1 + $0xc0] sm:$0xff]   ;;  %v735_v37 = vld [vmem:[%s913_s1 + $0x110] sm:$0xff]  }
   0xb   :  { %v722_v26 = vld [vmem:[%s913_s1 + $0x8] sm:$0xff]   ;;  %v726_v30 = vld [vmem:[%s913_s1] sm:$0xff]  }
   0xc   :  { %627 = vmatpush3.bf16.msra.mxu0 %v706_v10  ;;  %v723_v27 = vld [vmem:[%s913_s1 + $0x88] sm:$0xff]   ;;  %v727_v31 = vld [vmem:[%s913_s1 + $0x80] sm:$0xff]  }
   0xd   :  { %655 = vmatpush3.bf16.msra.mxu1 %v707_v11  ;;  %628 = vmatprep.subr.bf16.mxu0 %v708_v12  ;;  %v728_v32 = vld [vmem:[%s914_s0] ss:$20 sps:$4 sm:$0xff]   ;;  %v730_v33 = vld [vmem:[%s914_s0 + $0x4] ss:$20 sps:$4 sm:$0xff]   ;;  %v731_v34 = vld [vmem:[%s914_s0 + $0x8] ss:$20 sps:$4 sm:$0xff]  }
   0xe   :  { %656 = vmatprep.subr.bf16.mxu1 %v709_v13  ;;  %v733_v35 = vld [vmem:[%s914_s0 + $0xc] ss:$20 sps:$4 sm:$0xff]   ;;  %411 = vmatprep.mubr.bf16.mxu0 %v730_v33  ;;  %v738_v39 = vld [vmem:[%s914_s0 + $0x34] ss:$20 sps:$4 sm:$0xff]   ;;  %v741_v42 = vld [vmem:[%s914_s0 + $0x30] ss:$20 sps:$4 sm:$0xff]  }
   0xf   :  { %460 = vmatprep.mubr.bf16.mxu1 %v733_v35  ;;  %v736_v38 = vld [vmem:[%s914_s0 + $0x2c] ss:$20 sps:$4 sm:$0xff]   ;;  %v740_v40 = vld [vmem:[%s914_s0 + $0x28] ss:$20 sps:$4 sm:$0xff]   ;;  %v744_v43 = vld [vmem:[%s914_s0 + $0x10] ss:$20 sps:$4 sm:$0xff]  }
  0x10   :  { %629 = vmatpush3.bf16.msra.mxu0 %v710_v14  ;;  %v742_v41 = vld [vmem:[%s913_s1 + $0x108] sm:$0xff]   ;;  %v743_v44 = vld [vmem:[%s913_s1 + $0x100] sm:$0xff]  }
  0x11   :  { %657 = vmatpush3.bf16.msra.mxu1 %v711_v15  ;;  %630 = vmatprep.subr.bf16.mxu0 %v712_v16  ;;  %v745_v45 = vld [vmem:[%s914_s0 + $0x38] ss:$20 sps:$4 sm:$0xff]   ;;  %v554_v59 = vld [vmem:[%s915_s2] ss:$0 sm:$0xff] }
  0x12   :  { %658 = vmatprep.subr.bf16.mxu1 %v713_v17 }
  0x14   :  { %631 = vmatpush3.bf16.msra.mxu0 %v714_v18 }
  0x15   :  { %659 = vmatpush3.bf16.msra.mxu1 %v715_v19  ;;  %632 = vmatprep.subr.bf16.mxu0 %v716_v20 }
  0x16   :  { %660 = vmatprep.subr.bf16.mxu1 %v717_v21 }
  0x18   :  { %633 = vmatpush3.bf16.msra.mxu0 %v718_v22 }
  0x19   :  { %661 = vmatpush3.bf16.msra.mxu1 %v719_v23  ;;  %634 = vmatprep.subr.bf16.mxu0 %v720_v24 }
  0x1a   :  { %662 = vmatprep.subr.bf16.mxu1 %v721_v25 }
  0x1c   :  { %635 = vmatpush3.bf16.msra.mxu0 %v722_v26 }
  0x1d   :  { %663 = vmatpush3.bf16.msra.mxu1 %v723_v27  ;;  %636 = vmatprep.subr.bf16.mxu0 %v724_v28 }
  0x1e   :  { %664 = vmatprep.subr.bf16.mxu1 %v725_v29 }
  0x20   :  { %637 = vmatpush3.bf16.msra.mxu0 %v726_v30 }
  0x21   :  { %665 = vmatpush3.bf16.msra.mxu1 %v727_v31  ;;  %684 = vmatprep.subr.bf16.mxu0 %v734_v36 }
  0x23   :  { %412 = vmatmul.mubr.bf16.vlgmr.msra.gmra.mxu0 %v728_v32 }
  0x24   :  { %461 = vmatmul.mubr.bf16.vlgmr.msra.gmra.mxu1 %v731_v34  ;;  %685 = vmatpush3.bf16.msra.mxu0 %v734_v36 }
  0x25   :  { %686 = vmatprep.subr.bf16.mxu0 %v735_v37  ;;  %419 = vmatprep.mubr.bf16.mxu0 %v736_v38 }
  0x26   :  { %468 = vmatprep.mubr.bf16.mxu1 %v738_v39 }
  0x28   :  { %687 = vmatpush3.bf16.msra.mxu0 %v735_v37 }
  0x29   :  { %688 = vmatprep.subr.bf16.mxu0 %v742_v41 }
  0x2b   :  { %420 = vmatmul.mubr.bf16.gmra.mxu0 %v740_v40 }
  0x2c   :  { %469 = vmatmul.mubr.bf16.gmra.mxu1 %v741_v42  ;;  %692 = vmatprep.mubr.msk.bf16.mxu0 %vm372_vm0, %v744_v43 }
  0x2d   :  { %689 = vmatpush3.bf16.msra.mxu0 %v742_v41 }
  0x2e   :  { %690 = vmatprep.subr.bf16.mxu0 %v743_v44 }
  0x31   :  { %691 = vmatpush3.bf16.msra.mxu0 %v743_v44 }
  0x34   :  { %693 = vmatmul.mubr.msk.bf16.vlgmr.msra.gmra.mxu0 %vm372_vm0, %v745_v45 }
  0xe3   :  { %v638_v46 = vpop.f32.mrf.mxu0 }
  0xe4   :  { %v666_v47 = vpop.f32.mrf.mxu1 }
  0xe5   :  { %v639_v48 = vpop.f32.mrf.mxu0 }
  0xe6   :  { %v667_v49 = vpop.f32.mrf.mxu1  ;;  %v640_v60 = vadd.f32 %v639_v48, %v638_v46 }
  0xe7   :  { %v641_v50 = vpop.f32.mrf.mxu0  ;;  %v668_v6 = vadd.f32 %v667_v49, %v666_v47 }
  0xe8   :  { %v669_v51 = vpop.f32.mrf.mxu1  ;;  %v414_v5 = vadd.f32 %v640_v60, %v554_v59 }
  0xe9   :  { %v642_v52 = vpop.f32.mrf.mxu0 }
  0xea   :  { %v670_v53 = vpop.f32.mrf.mxu1  ;;  %v643_v1 = vadd.f32 %v642_v52, %v641_v50  ;;  %v463_v16 = vadd.f32 %v668_v6, %v414_v5 }
  0xeb   :  { %v644_v54 = vpop.f32.mrf.mxu0  ;;  %v671_v14 = vadd.f32 %v670_v53, %v669_v51 }
  0xec   :  { %v672_v55 = vpop.f32.mrf.mxu1  ;;  %v417_v11 = vadd.f32 %v643_v1, %v554_v59 }
  0xed   :  { %v645_v56 = vpop.f32.mrf.mxu0 }
  0xee   :  { %v646_v57 = vadd.f32 %v645_v56, %v644_v54  ;;  %v673_v58 = vpop.f32.mrf.mxu1  ;;  %v466_v20 = vadd.f32 %v671_v14, %v417_v11 }
  0xef   :  { %v674_v61 = vadd.f32 %v673_v58, %v672_v55  ;;  %v647_v62 = vpop.f32.mrf.mxu0 }
  0xf0   :  { %v422_v63 = vadd.f32 %v646_v57, %v554_v59  ;;  %v675_v0 = vpop.f32.mrf.mxu1 }
  0xf1   :  { %v648_v2 = vpop.f32.mrf.mxu0 }
  0xf2   :  { %v649_v3 = vadd.f32 %v648_v2, %v647_v62  ;;  %v676_v4 = vpop.f32.mrf.mxu1  ;;  %v471_v7 = vadd.f32 %v674_v61, %v422_v63 }
  0xf3   :  { %v677_v9 = vadd.f32 %v676_v4, %v675_v0 }
  0xf4   :  { %v425_v8 = vadd.f32 %v649_v3, %v554_v59  ;;  %v694_v10 = vpop.f32.mrf.mxu0 }
  0xf5   :  { %v520_v15 = vadd.f32 %v694_v10, %v471_v7 }
  0xf6   :  { %v511_v12 = vpop.f32.mrf.mxu0  ;;  %v474_v13 = vadd.f32 %v677_v9, %v425_v8 }
  0xf7   :  { %v512_v18 = vadd.f32 %v511_v12, %v463_v16  ;;  %v528_v22 = vmax.f32 %v520_v15, 0.0 }
  0xf8   :  { %v695_v17 = vpop.f32.mrf.mxu0 }
  0xf9   :  { %v523_v19 = vadd.f32 %v695_v17, %v474_v13  ;;  %v526_v25 = vmax.f32 %v512_v18, 0.0 }
  0xfa   :  { %v514_v21 = vpop.f32.mrf.mxu0 }
  0xfb   :  { %v529_v23 = vmax.f32 %v523_v19, 0.0  ;;  %v515_v24 = vadd.f32 %v514_v21, %v466_v20 }
  0xfd   :  { %v619_v26 = vpack.c.bf16 %v529_v23, %v528_v22  ;;  %v527_v27 = vmax.f32 %v515_v24, 0.0 }
  0xff   :  { %621 = vst [vmem:[%s916_s3 + $0x8] sm:$0xff] %v619_v26   ;;  %v614_v28 = vpack.c.bf16 %v527_v27, %v526_v25 }
 0x101   :  { %615 = vst [vmem:[%s916_s3] sm:$0xff] %v614_v28  }

// kernel: colornet_forward.23
= control target key start
LH: loop header
LB: loop body
LE: loop exit
PB: predicated region body
PF: predicated region fallthrough
CT: control target
= control target key end

     0   :  { %s1632_s1 = inlined_call_operand.vmem [shape: bf16[1152,128], index: 1, kind: input, shape index: {}]   ;;  %s1633_s0 = inlined_call_operand.vmem [shape: bf16[32,1152], index: 0, kind: input, shape index: {}]   ;;  %s1634_s2 = inlined_call_operand.vmem [shape: f32[1,128], index: 2, kind: input, shape index: {}]   ;;  %s1635_s3 = inlined_call_operand.vmem [shape: bf16[32,128], index: 3, kind: output, shape index: {}]  }
   0x1   :  { %v1235_v0 = vld [vmem:[%s1632_s1 + $0x78] sm:$0xff]   ;;  %v1239_v4 = vld [vmem:[%s1632_s1 + $0x70] sm:$0xff]   ;;  %v1243_v8 = vld [vmem:[%s1632_s1 + $0x68] sm:$0xff]  }
   0x2   :  { %v1236_v1 = vld [vmem:[%s1632_s1 + $0x38] sm:$0xff]   ;;  %1093 = vmatprep.subr.bf16.mxu0 %v1235_v0  ;;  %v1240_v5 = vld [vmem:[%s1632_s1 + $0x30] sm:$0xff]   ;;  %v1244_v9 = vld [vmem:[%s1632_s1 + $0x28] sm:$0xff]  }
   0x3   :  { %v1237_v2 = vld [vmem:[%s1632_s1 + $0xf8] sm:$0xff]   ;;  %1094 = vmatpush3.bf16.msra.mxu0 %v1236_v1  ;;  %v1241_v6 = vld [vmem:[%s1632_s1 + $0xf0] sm:$0xff]   ;;  %v1245_v10 = vld [vmem:[%s1632_s1 + $0xe8] sm:$0xff]  }
   0x4   :  { %v1238_v3 = vld [vmem:[%s1632_s1 + $0xb8] sm:$0xff]   ;;  %1121 = vmatprep.subr.bf16.mxu1 %v1237_v2  ;;  %1095 = vmatprep.subr.bf16.mxu0 %v1239_v4  ;;  %v1242_v7 = vld [vmem:[%s1632_s1 + $0xb0] sm:$0xff]   ;;  %v1246_v11 = vld [vmem:[%s1632_s1 + $0xa8] sm:$0xff]  }
   0x5   :  { %1122 = vmatpush3.bf16.msra.mxu1 %v1238_v3  ;;  %v1247_v12 = vld [vmem:[%s1632_s1 + $0x60] sm:$0xff]   ;;  %v1251_v16 = vld [vmem:[%s1632_s1 + $0x58] sm:$0xff]   ;;  %v1255_v20 = vld [vmem:[%s1632_s1 + $0x50] sm:$0xff]  }
   0x6   :  { %1123 = vmatprep.subr.bf16.mxu1 %v1241_v6  ;;  %v1248_v13 = vld [vmem:[%s1632_s1 + $0x20] sm:$0xff]   ;;  %v1252_v17 = vld [vmem:[%s1632_s1 + $0x18] sm:$0xff]   ;;  %v1256_v21 = vld [vmem:[%s1632_s1 + $0x10] sm:$0xff]  }
   0x7   :  { %1096 = vmatpush3.bf16.msra.mxu0 %v1240_v5  ;;  %v1249_v14 = vld [vmem:[%s1632_s1 + $0xe0] sm:$0xff]   ;;  %v1253_v18 = vld [vmem:[%s1632_s1 + $0xd8] sm:$0xff]   ;;  %v1257_v22 = vld [vmem:[%s1632_s1 + $0xd0] sm:$0xff]  }
   0x8   :  { %1097 = vmatprep.subr.bf16.mxu0 %v1243_v8  ;;  %v1250_v15 = vld [vmem:[%s1632_s1 + $0xa0] sm:$0xff]   ;;  %v1254_v19 = vld [vmem:[%s1632_s1 + $0x98] sm:$0xff]   ;;  %v1258_v23 = vld [vmem:[%s1632_s1 + $0x90] sm:$0xff]  }
   0x9   :  { %1124 = vmatpush3.bf16.msra.mxu1 %v1242_v7  ;;  %v1259_v24 = vld [vmem:[%s1632_s1 + $0x48] sm:$0xff]   ;;  %v1263_v28 = vld [vmem:[%s1632_s1 + $0x40] sm:$0xff]   ;;  %v1270_v34 = vld [vmem:[%s1632_s1 + $0x178] sm:$0xff]  }
   0xa   :  { %1125 = vmatprep.subr.bf16.mxu1 %v1245_v10  ;;  %v1260_v25 = vld [vmem:[%s1632_s1 + $0x8] sm:$0xff]   ;;  %v1264_v29 = vld [vmem:[%s1632_s1] sm:$0xff]   ;;  %v1274_v37 = vld [vmem:[%s1632_s1 + $0x138] sm:$0xff]  }
   0xb   :  { %1098 = vmatpush3.bf16.msra.mxu0 %v1244_v9  ;;  %v1261_v26 = vld [vmem:[%s1632_s1 + $0xc8] sm:$0xff]   ;;  %v1265_v30 = vld [vmem:[%s1632_s1 + $0xc0] sm:$0xff]   ;;  %v1275_v38 = vld [vmem:[%s1632_s1 + $0x1f8] sm:$0xff]  }
   0xc   :  { %1099 = vmatprep.subr.bf16.mxu0 %v1247_v12  ;;  %v1262_v27 = vld [vmem:[%s1632_s1 + $0x88] sm:$0xff]   ;;  %v1266_v31 = vld [vmem:[%s1633_s0] ss:$36 sps:$4 sm:$0xff]   ;;  %v1276_v39 = vld [vmem:[%s1632_s1 + $0x1b8] sm:$0xff]  }
   0xd   :  { %1126 = vmatpush3.bf16.msra.mxu1 %v1246_v11  ;;  %v1268_v32 = vld [vmem:[%s1633_s0 + $0x4] ss:$36 sps:$4 sm:$0xff]   ;;  %v1273_v36 = vld [vmem:[%s1633_s0 + $0xc] ss:$36 sps:$4 sm:$0xff]   ;;  %v1289_v52 = vld [vmem:[%s1632_s1 + $0x158] sm:$0xff]  }
   0xe   :  { %1127 = vmatprep.subr.bf16.mxu1 %v1249_v14  ;;  %v1269_v33 = vld [vmem:[%s1632_s1 + $0x80] sm:$0xff]   ;;  %742 = vmatprep.mubr.bf16.mxu0 %v1268_v32  ;;  %v1271_v35 = vld [vmem:[%s1633_s0 + $0x8] ss:$36 sps:$4 sm:$0xff]   ;;  %v1277_v40 = vld [vmem:[%s1632_s1 + $0x170] sm:$0xff]  }
   0xf   :  { %1100 = vmatpush3.bf16.msra.mxu0 %v1248_v13  ;;  %791 = vmatprep.mubr.bf16.mxu1 %v1273_v36  ;;  %v1278_v41 = vld [vmem:[%s1632_s1 + $0x130] sm:$0xff]   ;;  %v1281_v44 = vld [vmem:[%s1632_s1 + $0x168] sm:$0xff]   ;;  %v1285_v48 = vld [vmem:[%s1632_s1 + $0x160] sm:$0xff]  }
  0x10   :  { %1101 = vmatprep.subr.bf16.mxu0 %v1251_v16  ;;  %v1279_v42 = vld [vmem:[%s1632_s1 + $0x1f0] sm:$0xff]   ;;  %v1282_v45 = vld [vmem:[%s1632_s1 + $0x128] sm:$0xff]   ;;  %v1286_v49 = vld [vmem:[%s1632_s1 + $0x120] sm:$0xff]  }
  0x11   :  { %1128 = vmatpush3.bf16.msra.mxu1 %v1250_v15  ;;  %v1280_v43 = vld [vmem:[%s1632_s1 + $0x1b0] sm:$0xff]   ;;  %v1283_v46 = vld [vmem:[%s1632_s1 + $0x1e8] sm:$0xff]   ;;  %v1287_v50 = vld [vmem:[%s1632_s1 + $0x1e0] sm:$0xff]  }
  0x12   :  { %1129 = vmatprep.subr.bf16.mxu1 %v1253_v18  ;;  %v1284_v47 = vld [vmem:[%s1632_s1 + $0x1a8] sm:$0xff]   ;;  %v1288_v51 = vld [vmem:[%s1632_s1 + $0x1a0] sm:$0xff]   ;;  %v1290_v53 = vld [vmem:[%s1632_s1 + $0x118] sm:$0xff]  }
  0x13   :  { %1102 = vmatpush3.bf16.msra.mxu0 %v1252_v17  ;;  %v1291_v54 = vld [vmem:[%s1633_s0 + $0x4c] ss:$36 sps:$4 sm:$0xff]   ;;  %v1293_v55 = vld [vmem:[%s1632_s1 + $0x1d8] sm:$0xff]   ;;  %v1307_v4 = vld [vmem:[%s1632_s1 + $0x140] sm:$0xff]  }
  0x14   :  { %1103 = vmatprep.subr.bf16.mxu0 %v1255_v20  ;;  %v1294_v56 = vld [vmem:[%s1633_s0 + $0x48] ss:$36 sps:$4 sm:$0xff]   ;;  %v1295_v57 = vld [vmem:[%s1632_s1 + $0x198] sm:$0xff]   ;;  %v1298_v59 = vld [vmem:[%s1632_s1 + $0x150] sm:$0xff]  }
  0x15   :  { %1130 = vmatpush3.bf16.msra.mxu1 %v1254_v19  ;;  %v1296_v58 = vld [vmem:[%s1633_s0 + $0x54] ss:$36 sps:$4 sm:$0xff]   ;;  %v1303_v0 = vld [vmem:[%s1632_s1 + $0x148] sm:$0xff]   ;;  %v1308_v5 = vld [vmem:[%s1632_s1 + $0x100] sm:$0xff]  }
  0x16   :  { %1131 = vmatprep.subr.bf16.mxu1 %v1257_v22  ;;  %v1299_v60 = vld [vmem:[%s1633_s0 + $0x50] ss:$36 sps:$4 sm:$0xff]   ;;  %v1304_v1 = vld [vmem:[%s1632_s1 + $0x108] sm:$0xff]   ;;  %v1309_v6 = vld [vmem:[%s1632_s1 + $0x1c0] sm:$0xff]  }
  0x17   :  { %1104 = vmatpush3.bf16.msra.mxu0 %v1256_v21  ;;  %v1300_v61 = vld [vmem:[%s1632_s1 + $0x110] sm:$0xff]   ;;  %v1305_v2 = vld [vmem:[%s1632_s1 + $0x1c8] sm:$0xff]   ;;  %v1313_v9 = vld [vmem:[%s1632_s1 + $0x180] sm:$0xff]  }
  0x18   :  { %1105 = vmatprep.subr.bf16.mxu0 %v1259_v24  ;;  %v1301_v62 = vld [vmem:[%s1632_s1 + $0x1d0] sm:$0xff]   ;;  %v1306_v3 = vld [vmem:[%s1632_s1 + $0x188] sm:$0xff]   ;;  %v1314_v10 = vld [vmem:[%s1632_s1 + $0x238] sm:$0xff]  }
  0x19   :  { %1132 = vmatpush3.bf16.msra.mxu1 %v1258_v23  ;;  %v1302_v63 = vld [vmem:[%s1632_s1 + $0x190] sm:$0xff]   ;;  %v1315_v11 = vld [vmem:[%s1633_s0 + $0x18] ss:$36 sps:$4 sm:$0xff]   ;;  %v1322_v16 = vld [vmem:[%s1632_s1 + $0x228] sm:$0xff]  }
  0x1a   :  { %1133 = vmatprep.subr.bf16.mxu1 %v1261_v26  ;;  %v1310_v7 = vld [vmem:[%s1633_s0 + $0x10] ss:$36 sps:$4 sm:$0xff]   ;;  %v1317_v12 = vld [vmem:[%s1633_s0 + $0x1c] ss:$36 sps:$4 sm:$0xff]   ;;  %v1323_v17 = vld [vmem:[%s1633_s0 + $0x64] ss:$36 sps:$4 sm:$0xff]  }
  0x1b   :  { %1106 = vmatpush3.bf16.msra.mxu0 %v1260_v25  ;;  %v1312_v8 = vld [vmem:[%s1633_s0 + $0x14] ss:$36 sps:$4 sm:$0xff]   ;;  %v1319_v14 = vld [vmem:[%s1633_s0 + $0x5c] ss:$36 sps:$4 sm:$0xff]   ;;  %v1329_v23 = vld [vmem:[%s1632_s1 + $0x208] sm:$0xff]  }
  0x1c   :  { %1107 = vmatprep.subr.bf16.mxu0 %v1263_v28  ;;  %v1318_v13 = vld [vmem:[%s1632_s1 + $0x230] sm:$0xff]   ;;  %v1321_v15 = vld [vmem:[%s1633_s0 + $0x58] ss:$36 sps:$4 sm:$0xff]   ;;  %v1325_v18 = vld [vmem:[%s1633_s0 + $0x60] ss:$36 sps:$4 sm:$0xff]  }
  0x1d   :  { %1134 = vmatpush3.bf16.msra.mxu1 %v1262_v27  ;;  %v1326_v19 = vld [vmem:[%s1632_s1 + $0x220] sm:$0xff]   ;;  %v1327_v20 = vld [vmem:[%s1632_s1 + $0x218] sm:$0xff]   ;;  %v1328_v22 = vld [vmem:[%s1632_s1 + $0x210] sm:$0xff]  }
  0x1e   :  { %1135 = vmatprep.subr.bf16.mxu1 %v1265_v30  ;;  %v1331_v21 = vld [vmem:[%s1633_s0 + $0x20] ss:$36 sps:$4 sm:$0xff]   ;;  %v1332_v25 = vld [vmem:[%s1633_s0 + $0x68] ss:$36 sps:$4 sm:$0xff]  }
  0x1f   :  { %1108 = vmatpush3.bf16.msra.mxu0 %v1264_v29  ;;  %v1330_v24 = vld [vmem:[%s1632_s1 + $0x200] sm:$0xff]  }
  0x20   :  { %1149 = vmatprep.subr.bf16.mxu0 %v1270_v34 }
  0x21   :  { %1136 = vmatpush3.bf16.msra.mxu1 %v1269_v33 }
  0x22   :  { %743 = vmatmul.mubr.bf16.vlgmr.msra.gmra.mxu0 %v1266_v31  ;;  %1177 = vmatprep.subr.bf16.mxu1 %v1275_v38 }
  0x23   :  { %1150 = vmatpush3.bf16.msra.mxu0 %v1274_v37  ;;  %750 = vmatprep.mubr.bf16.mxu0 %v1291_v54 }
  0x24   :  { %792 = vmatmul.mubr.bf16.vlgmr.msra.gmra.mxu1 %v1271_v35  ;;  %1151 = vmatprep.subr.bf16.mxu0 %v1277_v40 }
  0x25   :  { %1178 = vmatpush3.bf16.msra.mxu1 %v1276_v39  ;;  %799 = vmatprep.mubr.bf16.mxu1 %v1296_v58 }
  0x26   :  { %1179 = vmatprep.subr.bf16.mxu1 %v1279_v42 }
  0x27   :  { %1152 = vmatpush3.bf16.msra.mxu0 %v1278_v41 }
  0x28   :  { %1153 = vmatprep.subr.bf16.mxu0 %v1281_v44 }
  0x29   :  { %1180 = vmatpush3.bf16.msra.mxu1 %v1280_v43 }
  0x2a   :  { %1181 = vmatprep.subr.bf16.mxu1 %v1283_v46  ;;  %751 = vmatmul.mubr.bf16.gmra.mxu0 %v1294_v56 }
  0x2b   :  { %1154 = vmatpush3.bf16.msra.mxu0 %v1282_v45  ;;  %840 = vmatprep.mubr.bf16.mxu0 %v1312_v8 }
  0x2c   :  { %1155 = vmatprep.subr.bf16.mxu0 %v1285_v48  ;;  %800 = vmatmul.mubr.bf16.gmra.mxu1 %v1299_v60 }
  0x2d   :  { %1182 = vmatpush3.bf16.msra.mxu1 %v1284_v47  ;;  %889 = vmatprep.mubr.bf16.mxu1 %v1317_v12 }
  0x2e   :  { %1183 = vmatprep.subr.bf16.mxu1 %v1287_v50 }
  0x2f   :  { %1156 = vmatpush3.bf16.msra.mxu0 %v1286_v49 }
  0x30   :  { %1157 = vmatprep.subr.bf16.mxu0 %v1289_v52 }
  0x31   :  { %1184 = vmatpush3.bf16.msra.mxu1 %v1288_v51 }
  0x32   :  { %1185 = vmatprep.subr.bf16.mxu1 %v1293_v55 }
  0x33   :  { %1158 = vmatpush3.bf16.msra.mxu0 %v1290_v53 }
  0x34   :  { %1159 = vmatprep.subr.bf16.mxu0 %v1298_v59 }
  0x35   :  { %1186 = vmatpush3.bf16.msra.mxu1 %v1295_v57  ;;  %v983_v57 = vld [vmem:[%s1634_s2] ss:$0 sm:$0xff] }
  0x36   :  { %1187 = vmatprep.subr.bf16.mxu1 %v1301_v62 }
  0x37   :  { %1160 = vmatpush3.bf16.msra.mxu0 %v1300_v61 }
  0x38   :  { %1161 = vmatprep.subr.bf16.mxu0 %v1303_v0 }
  0x39   :  { %1188 = vmatpush3.bf16.msra.mxu1 %v1302_v63 }
  0x3a   :  { %1189 = vmatprep.subr.bf16.mxu1 %v1305_v2 }
  0x3b   :  { %1162 = vmatpush3.bf16.msra.mxu0 %v1304_v1 }
  0x3c   :  { %1163 = vmatprep.subr.bf16.mxu0 %v1307_v4 }
  0x3d   :  { %1190 = vmatpush3.bf16.msra.mxu1 %v1306_v3 }
  0x3e   :  { %1191 = vmatprep.subr.bf16.mxu1 %v1309_v6 }
  0x3f   :  { %1164 = vmatpush3.bf16.msra.mxu0 %v1308_v5 }
  0x40   :  { %1215 = vmatprep.subr.bf16.mxu0 %v1314_v10 }
  0x41   :  { %1192 = vmatpush3.bf16.msra.mxu1 %v1313_v9 }
  0x42   :  { %841 = vmatmul.mubr.bf16.vlgmr.msra.gmra.mxu0 %v1310_v7 }
  0x43   :  { %1216 = vmatpush3.bf16.msra.mxu0 %v1314_v10  ;;  %848 = vmatprep.mubr.bf16.mxu0 %v1319_v14 }
  0x44   :  { %890 = vmatmul.mubr.bf16.vlgmr.msra.gmra.mxu1 %v1315_v11  ;;  %1217 = vmatprep.subr.bf16.mxu0 %v1318_v13 }
  0x45   :  { %897 = vmatprep.mubr.bf16.mxu1 %v1323_v17 }
  0x47   :  { %1218 = vmatpush3.bf16.msra.mxu0 %v1318_v13 }
  0x48   :  { %1219 = vmatprep.subr.bf16.mxu0 %v1322_v16 }
  0x4a   :  { %849 = vmatmul.mubr.bf16.gmra.mxu0 %v1321_v15 }
  0x4b   :  { %1220 = vmatpush3.bf16.msra.mxu0 %v1322_v16  ;;  %1231 = vmatprep.mubr.bf16.mxu0 %v1331_v21 }
  0x4c   :  { %898 = vmatmul.mubr.bf16.gmra.mxu1 %v1325_v18  ;;  %1221 = vmatprep.subr.bf16.mxu0 %v1326_v19 }
  0x4f   :  { %1222 = vmatpush3.bf16.msra.mxu0 %v1326_v19 }
  0x50   :  { %1223 = vmatprep.subr.bf16.mxu0 %v1327_v20 }
  0x53   :  { %1224 = vmatpush3.bf16.msra.mxu0 %v1327_v20 }
  0x54   :  { %1225 = vmatprep.subr.bf16.mxu0 %v1328_v22 }
  0x57   :  { %1226 = vmatpush3.bf16.msra.mxu0 %v1328_v22 }
  0x58   :  { %1227 = vmatprep.subr.bf16.mxu0 %v1329_v23 }
  0x5b   :  { %1228 = vmatpush3.bf16.msra.mxu0 %v1329_v23 }
  0x5c   :  { %1229 = vmatprep.subr.bf16.mxu0 %v1330_v24 }
  0x5f   :  { %1230 = vmatpush3.bf16.msra.mxu0 %v1330_v24 }
  0x62   :  { %1232 = vmatmul.mubr.bf16.vlgmr.msra.gmra.mxu0 %v1332_v25 }
  0xe2   :  { %v1109_v26 = vpop.f32.mrf.mxu0 }
  0xe4   :  { %v1137_v27 = vpop.f32.mrf.mxu1  ;;  %v1110_v28 = vpop.f32.mrf.mxu0 }
  0xe5   :  { %v1111_v54 = vadd.f32 %v1110_v28, %v1109_v26 }
  0xe6   :  { %v1138_v29 = vpop.f32.mrf.mxu1  ;;  %v1112_v30 = vpop.f32.mrf.mxu0 }
  0xe7   :  { %v745_v62 = vadd.f32 %v1111_v54, %v983_v57  ;;  %v1139_v63 = vadd.f32 %v1138_v29, %v1137_v27 }
  0xe8   :  { %v1140_v31 = vpop.f32.mrf.mxu1  ;;  %v1113_v32 = vpop.f32.mrf.mxu0 }
  0xe9   :  { %v1114_v59 = vadd.f32 %v1113_v32, %v1112_v30  ;;  %v794_v10 = vadd.f32 %v1139_v63, %v745_v62 }
  0xea   :  { %v1115_v33 = vpop.f32.mrf.mxu0  ;;  %v1141_v34 = vpop.f32.mrf.mxu1 }
  0xeb   :  { %v748_v5 = vadd.f32 %v1114_v59, %v983_v57  ;;  %v1142_v6 = vadd.f32 %v1141_v34, %v1140_v31 }
  0xec   :  { %v1143_v35 = vpop.f32.mrf.mxu1  ;;  %v1116_v36 = vpop.f32.mrf.mxu0 }
  0xed   :  { %v1117_v53 = vadd.f32 %v1116_v36, %v1115_v33  ;;  %v797_v16 = vadd.f32 %v1142_v6, %v748_v5 }
  0xee   :  { %v1144_v37 = vpop.f32.mrf.mxu1  ;;  %v1118_v38 = vpop.f32.mrf.mxu0 }
  0xef   :  { %v753_v60 = vadd.f32 %v1117_v53, %v983_v57  ;;  %v1145_v61 = vadd.f32 %v1144_v37, %v1143_v35 }
  0xf0   :  { %v1146_v39 = vpop.f32.mrf.mxu1  ;;  %v1119_v40 = vpop.f32.mrf.mxu0 }
  0xf1   :  { %v1120_v58 = vadd.f32 %v1119_v40, %v1118_v38  ;;  %v802_v7 = vadd.f32 %v1145_v61, %v753_v60 }
  0xf2   :  { %v1147_v42 = vpop.f32.mrf.mxu1 }
  0xf3   :  { %v756_v2 = vadd.f32 %v1120_v58, %v983_v57  ;;  %v1148_v3 = vadd.f32 %v1147_v42, %v1146_v39 }
  0xf5   :  { %v805_v12 = vadd.f32 %v1148_v3, %v756_v2 }
 0x102   :  { %v1165_v41 = vpop.f32.mrf.mxu0 }
 0x104   :  { %v1166_v43 = vpop.f32.mrf.mxu0  ;;  %v1193_v44 = vpop.f32.mrf.mxu1 }
 0x105   :  { %v1167_v8 = vadd.f32 %v1166_v43, %v1165_v41 }
 0x106   :  { %v1168_v45 = vpop.f32.mrf.mxu0  ;;  %v1194_v46 = vpop.f32.mrf.mxu1 }
 0x107   :  { %v843_v17 = vadd.f32 %v1167_v8, %v794_v10  ;;  %v1195_v18 = vadd.f32 %v1194_v46, %v1193_v44 }
 0x108   :  { %v1169_v47 = vpop.f32.mrf.mxu0  ;;  %v1196_v48 = vpop.f32.mrf.mxu1 }
 0x109   :  { %v1170_v13 = vadd.f32 %v1169_v47, %v1168_v45  ;;  %v892_v27 = vadd.f32 %v1195_v18, %v843_v17 }
 0x10a   :  { %v1171_v49 = vpop.f32.mrf.mxu0  ;;  %v1197_v50 = vpop.f32.mrf.mxu1 }
 0x10b   :  { %v846_v22 = vadd.f32 %v1170_v13, %v797_v16  ;;  %v1198_v23 = vadd.f32 %v1197_v50, %v1196_v48 }
 0x10c   :  { %v1172_v51 = vpop.f32.mrf.mxu0  ;;  %v1199_v52 = vpop.f32.mrf.mxu1 }
 0x10d   :  { %v1173_v4 = vadd.f32 %v1172_v51, %v1171_v49  ;;  %v895_v32 = vadd.f32 %v1198_v23, %v846_v22 }
 0x10e   :  { %v1174_v55 = vpop.f32.mrf.mxu0  ;;  %v1200_v56 = vpop.f32.mrf.mxu1 }
 0x10f   :  { %v851_v14 = vadd.f32 %v1173_v4, %v802_v7  ;;  %v1201_v15 = vadd.f32 %v1200_v56, %v1199_v52 }
 0x110   :  { %v1175_v0 = vpop.f32.mrf.mxu0  ;;  %v1202_v1 = vpop.f32.mrf.mxu1 }
 0x111   :  { %v1176_v9 = vadd.f32 %v1175_v0, %v1174_v55  ;;  %v900_v24 = vadd.f32 %v1201_v15, %v851_v14 }
 0x112   :  { %v1203_v11 = vpop.f32.mrf.mxu1 }
 0x113   :  { %v854_v19 = vadd.f32 %v1176_v9, %v805_v12  ;;  %v1204_v20 = vadd.f32 %v1203_v11, %v1202_v1 }
 0x115   :  { %v903_v28 = vadd.f32 %v1204_v20, %v854_v19 }
 0x122   :  { %v1233_v21 = vpop.f32.mrf.mxu0 }
 0x123   :  { %v949_v26 = vadd.f32 %v1233_v21, %v900_v24 }
 0x124   :  { %v940_v25 = vpop.f32.mrf.mxu0 }
 0x125   :  { %v941_v30 = vadd.f32 %v940_v25, %v892_v27  ;;  %v957_v34 = vmax.f32 %v949_v26, 0.0 }
 0x126   :  { %v1234_v29 = vpop.f32.mrf.mxu0 }
 0x127   :  { %v952_v31 = vadd.f32 %v1234_v29, %v903_v28  ;;  %v955_v37 = vmax.f32 %v941_v30, 0.0 }
 0x128   :  { %v943_v33 = vpop.f32.mrf.mxu0 }
 0x129   :  { %v958_v35 = vmax.f32 %v952_v31, 0.0  ;;  %v944_v36 = vadd.f32 %v943_v33, %v895_v32 }
 0x12b   :  { %v1090_v38 = vpack.c.bf16 %v958_v35, %v957_v34  ;;  %v956_v39 = vmax.f32 %v944_v36, 0.0 }
 0x12d   :  { %1092 = vst [vmem:[%s1635_s3 + $0x8] sm:$0xff] %v1090_v38   ;;  %v1085_v40 = vpack.c.bf16 %v956_v39, %v955_v37 }
 0x12f   :  { %1086 = vst [vmem:[%s1635_s3] sm:$0xff] %v1085_v40  }

// kernel: colornet_forward.22
= control target key start
LH: loop header
LB: loop body
LE: loop exit
PB: predicated region body
PF: predicated region fallthrough
CT: control target
= control target key end

     0   :  { %s1667_s1 = inlined_call_operand.vmem [shape: bf16[1152,128], index: 1, kind: input, shape index: {}]   ;;  %s1668_s0 = inlined_call_operand.vmem [shape: bf16[32,1152], index: 0, kind: input, shape index: {}]   ;;  %s1669_s2 = inlined_call_operand.vmem [shape: f32[1,128], index: 2, kind: input, shape index: {}]   ;;  %s1670_s3 = inlined_call_operand.vmem [shape: bf16[32,128], index: 3, kind: input, shape index: {}]   ;;  %s1671_s4 = inlined_call_operand.vmem [shape: bf16[32,128], index: 4, kind: output, shape index: {}]  }
   0x1   :  { %v1259_v0 = vld [vmem:[%s1667_s1 + $0x78] sm:$0xff]   ;;  %v1263_v4 = vld [vmem:[%s1667_s1 + $0x70] sm:$0xff]   ;;  %v1267_v8 = vld [vmem:[%s1667_s1 + $0x68] sm:$0xff]  }
   0x2   :  { %v1260_v1 = vld [vmem:[%s1667_s1 + $0x38] sm:$0xff]   ;;  %1117 = vmatprep.subr.bf16.mxu0 %v1259_v0  ;;  %v1264_v5 = vld [vmem:[%s1667_s1 + $0x30] sm:$0xff]   ;;  %v1268_v9 = vld [vmem:[%s1667_s1 + $0x28] sm:$0xff]  }
   0x3   :  { %v1261_v2 = vld [vmem:[%s1667_s1 + $0xf8] sm:$0xff]   ;;  %1118 = vmatpush3.bf16.msra.mxu0 %v1260_v1  ;;  %v1265_v6 = vld [vmem:[%s1667_s1 + $0xf0] sm:$0xff]   ;;  %v1269_v10 = vld [vmem:[%s1667_s1 + $0xe8] sm:$0xff]  }
   0x4   :  { %v1262_v3 = vld [vmem:[%s1667_s1 + $0xb8] sm:$0xff]   ;;  %1145 = vmatprep.subr.bf16.mxu1 %v1261_v2  ;;  %1119 = vmatprep.subr.bf16.mxu0 %v1263_v4  ;;  %v1266_v7 = vld [vmem:[%s1667_s1 + $0xb0] sm:$0xff]   ;;  %v1270_v11 = vld [vmem:[%s1667_s1 + $0xa8] sm:$0xff]  }
   0x5   :  { %1146 = vmatpush3.bf16.msra.mxu1 %v1262_v3  ;;  %v1271_v12 = vld [vmem:[%s1667_s1 + $0x60] sm:$0xff]   ;;  %v1275_v16 = vld [vmem:[%s1667_s1 + $0x58] sm:$0xff]   ;;  %v1279_v20 = vld [vmem:[%s1667_s1 + $0x50] sm:$0xff]  }
   0x6   :  { %1147 = vmatprep.subr.bf16.mxu1 %v1265_v6  ;;  %v1272_v13 = vld [vmem:[%s1667_s1 + $0x20] sm:$0xff]   ;;  %v1276_v17 = vld [vmem:[%s1667_s1 + $0x18] sm:$0xff]   ;;  %v1280_v21 = vld [vmem:[%s1667_s1 + $0x10] sm:$0xff]  }
   0x7   :  { %1120 = vmatpush3.bf16.msra.mxu0 %v1264_v5  ;;  %v1273_v14 = vld [vmem:[%s1667_s1 + $0xe0] sm:$0xff]   ;;  %v1277_v18 = vld [vmem:[%s1667_s1 + $0xd8] sm:$0xff]   ;;  %v1281_v22 = vld [vmem:[%s1667_s1 + $0xd0] sm:$0xff]  }
   0x8   :  { %1121 = vmatprep.subr.bf16.mxu0 %v1267_v8  ;;  %v1274_v15 = vld [vmem:[%s1667_s1 + $0xa0] sm:$0xff]   ;;  %v1278_v19 = vld [vmem:[%s1667_s1 + $0x98] sm:$0xff]   ;;  %v1282_v23 = vld [vmem:[%s1667_s1 + $0x90] sm:$0xff]  }
   0x9   :  { %1148 = vmatpush3.bf16.msra.mxu1 %v1266_v7  ;;  %v1283_v24 = vld [vmem:[%s1667_s1 + $0x48] sm:$0xff]   ;;  %v1287_v28 = vld [vmem:[%s1667_s1 + $0x40] sm:$0xff]   ;;  %v1294_v34 = vld [vmem:[%s1667_s1 + $0x178] sm:$0xff]  }
   0xa   :  { %1149 = vmatprep.subr.bf16.mxu1 %v1269_v10  ;;  %v1284_v25 = vld [vmem:[%s1667_s1 + $0x8] sm:$0xff]   ;;  %v1288_v29 = vld [vmem:[%s1667_s1] sm:$0xff]   ;;  %v1298_v37 = vld [vmem:[%s1667_s1 + $0x138] sm:$0xff]  }
   0xb   :  { %1122 = vmatpush3.bf16.msra.mxu0 %v1268_v9  ;;  %v1285_v26 = vld [vmem:[%s1667_s1 + $0xc8] sm:$0xff]   ;;  %v1289_v30 = vld [vmem:[%s1667_s1 + $0xc0] sm:$0xff]   ;;  %v1299_v38 = vld [vmem:[%s1667_s1 + $0x1f8] sm:$0xff]  }
   0xc   :  { %1123 = vmatprep.subr.bf16.mxu0 %v1271_v12  ;;  %v1286_v27 = vld [vmem:[%s1667_s1 + $0x88] sm:$0xff]   ;;  %v1290_v31 = vld [vmem:[%s1668_s0] ss:$36 sps:$4 sm:$0xff]   ;;  %v1300_v39 = vld [vmem:[%s1667_s1 + $0x1b8] sm:$0xff]  }
   0xd   :  { %1150 = vmatpush3.bf16.msra.mxu1 %v1270_v11  ;;  %v1292_v32 = vld [vmem:[%s1668_s0 + $0x4] ss:$36 sps:$4 sm:$0xff]   ;;  %v1297_v36 = vld [vmem:[%s1668_s0 + $0xc] ss:$36 sps:$4 sm:$0xff]   ;;  %v1313_v52 = vld [vmem:[%s1667_s1 + $0x158] sm:$0xff]  }
   0xe   :  { %1151 = vmatprep.subr.bf16.mxu1 %v1273_v14  ;;  %v1293_v33 = vld [vmem:[%s1667_s1 + $0x80] sm:$0xff]   ;;  %745 = vmatprep.mubr.bf16.mxu0 %v1292_v32  ;;  %v1295_v35 = vld [vmem:[%s1668_s0 + $0x8] ss:$36 sps:$4 sm:$0xff]   ;;  %v1301_v40 = vld [vmem:[%s1667_s1 + $0x170] sm:$0xff]  }
   0xf   :  { %1124 = vmatpush3.bf16.msra.mxu0 %v1272_v13  ;;  %794 = vmatprep.mubr.bf16.mxu1 %v1297_v36  ;;  %v1302_v41 = vld [vmem:[%s1667_s1 + $0x130] sm:$0xff]   ;;  %v1305_v44 = vld [vmem:[%s1667_s1 + $0x168] sm:$0xff]   ;;  %v1309_v48 = vld [vmem:[%s1667_s1 + $0x160] sm:$0xff]  }
  0x10   :  { %1125 = vmatprep.subr.bf16.mxu0 %v1275_v16  ;;  %v1303_v42 = vld [vmem:[%s1667_s1 + $0x1f0] sm:$0xff]   ;;  %v1306_v45 = vld [vmem:[%s1667_s1 + $0x128] sm:$0xff]   ;;  %v1310_v49 = vld [vmem:[%s1667_s1 + $0x120] sm:$0xff]  }
  0x11   :  { %1152 = vmatpush3.bf16.msra.mxu1 %v1274_v15  ;;  %v1304_v43 = vld [vmem:[%s1667_s1 + $0x1b0] sm:$0xff]   ;;  %v1307_v46 = vld [vmem:[%s1667_s1 + $0x1e8] sm:$0xff]   ;;  %v1311_v50 = vld [vmem:[%s1667_s1 + $0x1e0] sm:$0xff]  }
  0x12   :  { %1153 = vmatprep.subr.bf16.mxu1 %v1277_v18  ;;  %v1308_v47 = vld [vmem:[%s1667_s1 + $0x1a8] sm:$0xff]   ;;  %v1312_v51 = vld [vmem:[%s1667_s1 + $0x1a0] sm:$0xff]   ;;  %v1314_v53 = vld [vmem:[%s1667_s1 + $0x118] sm:$0xff]  }
  0x13   :  { %1126 = vmatpush3.bf16.msra.mxu0 %v1276_v17  ;;  %v1315_v54 = vld [vmem:[%s1668_s0 + $0x4c] ss:$36 sps:$4 sm:$0xff]   ;;  %v1317_v55 = vld [vmem:[%s1667_s1 + $0x1d8] sm:$0xff]   ;;  %v1331_v4 = vld [vmem:[%s1667_s1 + $0x140] sm:$0xff]  }
  0x14   :  { %1127 = vmatprep.subr.bf16.mxu0 %v1279_v20  ;;  %v1318_v56 = vld [vmem:[%s1668_s0 + $0x48] ss:$36 sps:$4 sm:$0xff]   ;;  %v1319_v57 = vld [vmem:[%s1667_s1 + $0x198] sm:$0xff]   ;;  %v1322_v59 = vld [vmem:[%s1667_s1 + $0x150] sm:$0xff]  }
  0x15   :  { %1154 = vmatpush3.bf16.msra.mxu1 %v1278_v19  ;;  %v1320_v58 = vld [vmem:[%s1668_s0 + $0x54] ss:$36 sps:$4 sm:$0xff]   ;;  %v1327_v0 = vld [vmem:[%s1667_s1 + $0x148] sm:$0xff]   ;;  %v1332_v5 = vld [vmem:[%s1667_s1 + $0x100] sm:$0xff]  }
  0x16   :  { %1155 = vmatprep.subr.bf16.mxu1 %v1281_v22  ;;  %v1323_v60 = vld [vmem:[%s1668_s0 + $0x50] ss:$36 sps:$4 sm:$0xff]   ;;  %v1328_v1 = vld [vmem:[%s1667_s1 + $0x108] sm:$0xff]   ;;  %v1333_v6 = vld [vmem:[%s1667_s1 + $0x1c0] sm:$0xff]  }
  0x17   :  { %1128 = vmatpush3.bf16.msra.mxu0 %v1280_v21  ;;  %v1324_v61 = vld [vmem:[%s1667_s1 + $0x110] sm:$0xff]   ;;  %v1329_v2 = vld [vmem:[%s1667_s1 + $0x1c8] sm:$0xff]   ;;  %v1337_v9 = vld [vmem:[%s1667_s1 + $0x180] sm:$0xff]  }
  0x18   :  { %1129 = vmatprep.subr.bf16.mxu0 %v1283_v24  ;;  %v1325_v62 = vld [vmem:[%s1667_s1 + $0x1d0] sm:$0xff]   ;;  %v1330_v3 = vld [vmem:[%s1667_s1 + $0x188] sm:$0xff]   ;;  %v1338_v10 = vld [vmem:[%s1667_s1 + $0x238] sm:$0xff]  }
  0x19   :  { %1156 = vmatpush3.bf16.msra.mxu1 %v1282_v23  ;;  %v1326_v63 = vld [vmem:[%s1667_s1 + $0x190] sm:$0xff]   ;;  %v1339_v11 = vld [vmem:[%s1668_s0 + $0x18] ss:$36 sps:$4 sm:$0xff]   ;;  %v1346_v16 = vld [vmem:[%s1667_s1 + $0x228] sm:$0xff]  }
  0x1a   :  { %1157 = vmatprep.subr.bf16.mxu1 %v1285_v26  ;;  %v1334_v7 = vld [vmem:[%s1668_s0 + $0x10] ss:$36 sps:$4 sm:$0xff]   ;;  %v1341_v12 = vld [vmem:[%s1668_s0 + $0x1c] ss:$36 sps:$4 sm:$0xff]   ;;  %v1347_v17 = vld [vmem:[%s1668_s0 + $0x64] ss:$36 sps:$4 sm:$0xff]  }
  0x1b   :  { %1130 = vmatpush3.bf16.msra.mxu0 %v1284_v25  ;;  %v1336_v8 = vld [vmem:[%s1668_s0 + $0x14] ss:$36 sps:$4 sm:$0xff]   ;;  %v1343_v14 = vld [vmem:[%s1668_s0 + $0x5c] ss:$36 sps:$4 sm:$0xff]   ;;  %v1353_v23 = vld [vmem:[%s1667_s1 + $0x208] sm:$0xff]  }
  0x1c   :  { %1131 = vmatprep.subr.bf16.mxu0 %v1287_v28  ;;  %v1342_v13 = vld [vmem:[%s1667_s1 + $0x230] sm:$0xff]   ;;  %v1345_v15 = vld [vmem:[%s1668_s0 + $0x58] ss:$36 sps:$4 sm:$0xff]   ;;  %v1349_v18 = vld [vmem:[%s1668_s0 + $0x60] ss:$36 sps:$4 sm:$0xff]  }
  0x1d   :  { %1158 = vmatpush3.bf16.msra.mxu1 %v1286_v27  ;;  %v1350_v19 = vld [vmem:[%s1667_s1 + $0x220] sm:$0xff]   ;;  %v1351_v20 = vld [vmem:[%s1667_s1 + $0x218] sm:$0xff]   ;;  %v1352_v22 = vld [vmem:[%s1667_s1 + $0x210] sm:$0xff]  }
  0x1e   :  { %1159 = vmatprep.subr.bf16.mxu1 %v1289_v30  ;;  %v1355_v21 = vld [vmem:[%s1668_s0 + $0x20] ss:$36 sps:$4 sm:$0xff]   ;;  %v1356_v25 = vld [vmem:[%s1668_s0 + $0x68] ss:$36 sps:$4 sm:$0xff]  }
  0x1f   :  { %1132 = vmatpush3.bf16.msra.mxu0 %v1288_v29  ;;  %v1354_v24 = vld [vmem:[%s1667_s1 + $0x200] sm:$0xff]  }
  0x20   :  { %1173 = vmatprep.subr.bf16.mxu0 %v1294_v34 }
  0x21   :  { %1160 = vmatpush3.bf16.msra.mxu1 %v1293_v33 }
  0x22   :  { %746 = vmatmul.mubr.bf16.vlgmr.msra.gmra.mxu0 %v1290_v31  ;;  %1201 = vmatprep.subr.bf16.mxu1 %v1299_v38 }
  0x23   :  { %1174 = vmatpush3.bf16.msra.mxu0 %v1298_v37  ;;  %753 = vmatprep.mubr.bf16.mxu0 %v1315_v54 }
  0x24   :  { %795 = vmatmul.mubr.bf16.vlgmr.msra.gmra.mxu1 %v1295_v35  ;;  %1175 = vmatprep.subr.bf16.mxu0 %v1301_v40 }
  0x25   :  { %1202 = vmatpush3.bf16.msra.mxu1 %v1300_v39  ;;  %802 = vmatprep.mubr.bf16.mxu1 %v1320_v58 }
  0x26   :  { %1203 = vmatprep.subr.bf16.mxu1 %v1303_v42 }
  0x27   :  { %1176 = vmatpush3.bf16.msra.mxu0 %v1302_v41 }
  0x28   :  { %1177 = vmatprep.subr.bf16.mxu0 %v1305_v44 }
  0x29   :  { %1204 = vmatpush3.bf16.msra.mxu1 %v1304_v43 }
  0x2a   :  { %1205 = vmatprep.subr.bf16.mxu1 %v1307_v46  ;;  %754 = vmatmul.mubr.bf16.gmra.mxu0 %v1318_v56 }
  0x2b   :  { %1178 = vmatpush3.bf16.msra.mxu0 %v1306_v45  ;;  %843 = vmatprep.mubr.bf16.mxu0 %v1336_v8 }
  0x2c   :  { %1179 = vmatprep.subr.bf16.mxu0 %v1309_v48  ;;  %803 = vmatmul.mubr.bf16.gmra.mxu1 %v1323_v60 }
  0x2d   :  { %1206 = vmatpush3.bf16.msra.mxu1 %v1308_v47  ;;  %892 = vmatprep.mubr.bf16.mxu1 %v1341_v12 }
  0x2e   :  { %1207 = vmatprep.subr.bf16.mxu1 %v1311_v50 }
  0x2f   :  { %1180 = vmatpush3.bf16.msra.mxu0 %v1310_v49 }
  0x30   :  { %1181 = vmatprep.subr.bf16.mxu0 %v1313_v52 }
  0x31   :  { %1208 = vmatpush3.bf16.msra.mxu1 %v1312_v51 }
  0x32   :  { %1209 = vmatprep.subr.bf16.mxu1 %v1317_v55  ;;  %v998_v55 = vld [vmem:[%s1669_s2] ss:$0 sm:$0xff] }
  0x33   :  { %1182 = vmatpush3.bf16.msra.mxu0 %v1314_v53 }
  0x34   :  { %1183 = vmatprep.subr.bf16.mxu0 %v1322_v59 }
  0x35   :  { %1210 = vmatpush3.bf16.msra.mxu1 %v1319_v57 }
  0x36   :  { %1211 = vmatprep.subr.bf16.mxu1 %v1325_v62 }
  0x37   :  { %1184 = vmatpush3.bf16.msra.mxu0 %v1324_v61 }
  0x38   :  { %1185 = vmatprep.subr.bf16.mxu0 %v1327_v0 }
  0x39   :  { %1212 = vmatpush3.bf16.msra.mxu1 %v1326_v63 }
  0x3a   :  { %1213 = vmatprep.subr.bf16.mxu1 %v1329_v2 }
  0x3b   :  { %1186 = vmatpush3.bf16.msra.mxu0 %v1328_v1 }
  0x3c   :  { %1187 = vmatprep.subr.bf16.mxu0 %v1331_v4 }
  0x3d   :  { %1214 = vmatpush3.bf16.msra.mxu1 %v1330_v3 }
  0x3e   :  { %1215 = vmatprep.subr.bf16.mxu1 %v1333_v6 }
  0x3f   :  { %1188 = vmatpush3.bf16.msra.mxu0 %v1332_v5 }
  0x40   :  { %1239 = vmatprep.subr.bf16.mxu0 %v1338_v10 }
  0x41   :  { %1216 = vmatpush3.bf16.msra.mxu1 %v1337_v9 }
  0x42   :  { %844 = vmatmul.mubr.bf16.vlgmr.msra.gmra.mxu0 %v1334_v7 }
  0x43   :  { %1240 = vmatpush3.bf16.msra.mxu0 %v1338_v10  ;;  %851 = vmatprep.mubr.bf16.mxu0 %v1343_v14 }
  0x44   :  { %893 = vmatmul.mubr.bf16.vlgmr.msra.gmra.mxu1 %v1339_v11  ;;  %1241 = vmatprep.subr.bf16.mxu0 %v1342_v13 }
  0x45   :  { %900 = vmatprep.mubr.bf16.mxu1 %v1347_v17 }
  0x47   :  { %1242 = vmatpush3.bf16.msra.mxu0 %v1342_v13 }
  0x48   :  { %1243 = vmatprep.subr.bf16.mxu0 %v1346_v16 }
  0x4a   :  { %852 = vmatmul.mubr.bf16.gmra.mxu0 %v1345_v15 }
  0x4b   :  { %1244 = vmatpush3.bf16.msra.mxu0 %v1346_v16  ;;  %1255 = vmatprep.mubr.bf16.mxu0 %v1355_v21 }
  0x4c   :  { %901 = vmatmul.mubr.bf16.gmra.mxu1 %v1349_v18  ;;  %1245 = vmatprep.subr.bf16.mxu0 %v1350_v19  ;;  %v1115_v18 = vld [vmem:[%s1670_s3 + $0x8] sm:$0xff]  }
  0x4f   :  { %1246 = vmatpush3.bf16.msra.mxu0 %v1350_v19 }
  0x50   :  { %1247 = vmatprep.subr.bf16.mxu0 %v1351_v20 }
  0x53   :  { %1248 = vmatpush3.bf16.msra.mxu0 %v1351_v20 }
  0x54   :  { %1249 = vmatprep.subr.bf16.mxu0 %v1352_v22 }
  0x57   :  { %1250 = vmatpush3.bf16.msra.mxu0 %v1352_v22 }
  0x58   :  { %1251 = vmatprep.subr.bf16.mxu0 %v1353_v23 }
  0x5b   :  { %1252 = vmatpush3.bf16.msra.mxu0 %v1353_v23 }
  0x5c   :  { %1253 = vmatprep.subr.bf16.mxu0 %v1354_v24 }
  0x5f   :  { %1254 = vmatpush3.bf16.msra.mxu0 %v1354_v24  ;;  %v1103_v24 = vunpack.c.l.bf16 %v1115_v18 }
  0x62   :  { %1256 = vmatmul.mubr.bf16.vlgmr.msra.gmra.mxu0 %v1356_v25  ;;  %v1098_v25 = vld [vmem:[%s1670_s3] sm:$0xff]  }
  0xe2   :  { %v1133_v26 = vpop.f32.mrf.mxu0 }
  0xe4   :  { %v1161_v27 = vpop.f32.mrf.mxu1  ;;  %v1134_v28 = vpop.f32.mrf.mxu0 }
  0xe5   :  { %v1135_v54 = vadd.f32 %v1134_v28, %v1133_v26 }
  0xe6   :  { %v1162_v29 = vpop.f32.mrf.mxu1  ;;  %v1136_v30 = vpop.f32.mrf.mxu0 }
  0xe7   :  { %v748_v61 = vadd.f32 %v1135_v54, %v998_v55  ;;  %v1163_v62 = vadd.f32 %v1162_v29, %v1161_v27 }
  0xe8   :  { %v1164_v31 = vpop.f32.mrf.mxu1  ;;  %v1137_v32 = vpop.f32.mrf.mxu0 }
  0xe9   :  { %v1138_v63 = vadd.f32 %v1137_v32, %v1136_v30  ;;  %v797_v7 = vadd.f32 %v1163_v62, %v748_v61  ;;  %v1099_v32 = vunpack.c.l.bf16 %v1098_v25 }
  0xea   :  { %v1139_v33 = vpop.f32.mrf.mxu0  ;;  %v1165_v34 = vpop.f32.mrf.mxu1 }
  0xeb   :  { %v751_v8 = vadd.f32 %v1138_v63, %v998_v55  ;;  %v1166_v9 = vadd.f32 %v1165_v34, %v1164_v31  ;;  %v1104_v34 = vunpack.c.h.bf16 %v1115_v18 }
  0xec   :  { %v1167_v35 = vpop.f32.mrf.mxu1  ;;  %v1140_v36 = vpop.f32.mrf.mxu0 }
  0xed   :  { %v1141_v53 = vadd.f32 %v1140_v36, %v1139_v33  ;;  %v800_v19 = vadd.f32 %v1166_v9, %v751_v8 }
  0xee   :  { %v1168_v37 = vpop.f32.mrf.mxu1  ;;  %v1142_v38 = vpop.f32.mrf.mxu0 }
  0xef   :  { %v756_v58 = vadd.f32 %v1141_v53, %v998_v55  ;;  %v1169_v59 = vadd.f32 %v1168_v37, %v1167_v35 }
  0xf0   :  { %v1170_v39 = vpop.f32.mrf.mxu1  ;;  %v1143_v40 = vpop.f32.mrf.mxu0 }
  0xf1   :  { %v1144_v60 = vadd.f32 %v1143_v40, %v1142_v38  ;;  %v805_v3 = vadd.f32 %v1169_v59, %v756_v58 }
  0xf2   :  { %v1171_v42 = vpop.f32.mrf.mxu1 }
  0xf3   :  { %v759_v4 = vadd.f32 %v1144_v60, %v998_v55  ;;  %v1172_v5 = vadd.f32 %v1171_v42, %v1170_v39  ;;  %v1100_v39 = vunpack.c.h.bf16 %v1098_v25 }
  0xf5   :  { %v808_v14 = vadd.f32 %v1172_v5, %v759_v4 }
 0x102   :  { %v1189_v41 = vpop.f32.mrf.mxu0 }
 0x104   :  { %v1190_v43 = vpop.f32.mrf.mxu0  ;;  %v1217_v44 = vpop.f32.mrf.mxu1 }
 0x105   :  { %v1191_v6 = vadd.f32 %v1190_v43, %v1189_v41 }
 0x106   :  { %v1192_v45 = vpop.f32.mrf.mxu0  ;;  %v1218_v46 = vpop.f32.mrf.mxu1 }
 0x107   :  { %v846_v15 = vadd.f32 %v1191_v6, %v797_v7  ;;  %v1219_v16 = vadd.f32 %v1218_v46, %v1217_v44 }
 0x108   :  { %v1193_v47 = vpop.f32.mrf.mxu0  ;;  %v1220_v48 = vpop.f32.mrf.mxu1 }
 0x109   :  { %v1194_v17 = vadd.f32 %v1193_v47, %v1192_v45  ;;  %v895_v29 = vadd.f32 %v1219_v16, %v846_v15 }
 0x10a   :  { %v1195_v49 = vpop.f32.mrf.mxu0  ;;  %v1221_v50 = vpop.f32.mrf.mxu1 }
 0x10b   :  { %v849_v26 = vadd.f32 %v1194_v17, %v800_v19  ;;  %v1222_v27 = vadd.f32 %v1221_v50, %v1220_v48 }
 0x10c   :  { %v1196_v51 = vpop.f32.mrf.mxu0  ;;  %v1223_v52 = vpop.f32.mrf.mxu1 }
 0x10d   :  { %v1197_v0 = vadd.f32 %v1196_v51, %v1195_v49  ;;  %v898_v38 = vadd.f32 %v1222_v27, %v849_v26 }
 0x10e   :  { %v1198_v56 = vpop.f32.mrf.mxu0  ;;  %v1224_v57 = vpop.f32.mrf.mxu1 }
 0x10f   :  { %v854_v10 = vadd.f32 %v1197_v0, %v805_v3  ;;  %v1225_v11 = vadd.f32 %v1224_v57, %v1223_v52 }
 0x110   :  { %v1199_v1 = vpop.f32.mrf.mxu0  ;;  %v1226_v2 = vpop.f32.mrf.mxu1 }
 0x111   :  { %v1200_v12 = vadd.f32 %v1199_v1, %v1198_v56  ;;  %v903_v22 = vadd.f32 %v1225_v11, %v854_v10 }
 0x112   :  { %v1227_v13 = vpop.f32.mrf.mxu1 }
 0x113   :  { %v857_v20 = vadd.f32 %v1200_v12, %v808_v14  ;;  %v1228_v21 = vadd.f32 %v1227_v13, %v1226_v2 }
 0x115   :  { %v906_v33 = vadd.f32 %v1228_v21, %v857_v20 }
 0x122   :  { %v1257_v23 = vpop.f32.mrf.mxu0 }
 0x123   :  { %v952_v28 = vadd.f32 %v1257_v23, %v903_v22 }
 0x124   :  { %v943_v30 = vpop.f32.mrf.mxu0 }
 0x125   :  { %v944_v31 = vadd.f32 %v943_v30, %v895_v29  ;;  %v968_v36 = vadd.f32 %v1103_v24, %v952_v28 }
 0x126   :  { %v1258_v35 = vpop.f32.mrf.mxu0 }
 0x127   :  { %v955_v37 = vadd.f32 %v1258_v35, %v906_v33  ;;  %v966_v41 = vadd.f32 %v1099_v32, %v944_v31  ;;  %v972_v44 = vmax.f32 %v968_v36, 0.0 }
 0x128   :  { %v946_v40 = vpop.f32.mrf.mxu0 }
 0x129   :  { %v969_v42 = vadd.f32 %v1104_v34, %v955_v37  ;;  %v947_v43 = vadd.f32 %v946_v40, %v898_v38  ;;  %v970_v47 = vmax.f32 %v966_v41, 0.0 }
 0x12b   :  { %v973_v45 = vmax.f32 %v969_v42, 0.0  ;;  %v967_v46 = vadd.f32 %v1100_v39, %v947_v43 }
 0x12d   :  { %v1113_v48 = vpack.c.bf16 %v973_v45, %v972_v44  ;;  %v971_v49 = vmax.f32 %v967_v46, 0.0 }
 0x12f   :  { %1116 = vst [vmem:[%s1671_s4 + $0x8] sm:$0xff] %v1113_v48   ;;  %v1108_v50 = vpack.c.bf16 %v971_v49, %v970_v47 }
 0x131   :  { %1109 = vst [vmem:[%s1671_s4] sm:$0xff] %v1108_v50  }

// kernel: colornet_forward.26
= control target key start
LH: loop header
LB: loop body
LE: loop exit
PB: predicated region body
PF: predicated region fallthrough
CT: control target
= control target key end

     0   :  { %s1924_s12 = smov 0   ;;  %s2282_s0 = inlined_call_operand.vmem [shape: bf16[128,1152], index: 0, kind: input, shape index: {}]   ;;  %s2283_s1 = inlined_call_operand.vmem [shape: bf16[1152,64], index: 1, kind: input, shape index: {}]   ;;  %s2284_s2 = inlined_call_operand.vmem [shape: f32[1,64], index: 2, kind: input, shape index: {}]   ;;  %s2285_s3 = inlined_call_operand.vmem [shape: bf16[128,64], index: 3, kind: output, shape index: {}]  }
   0x1 LB: > { %s1415_s13 = sadd.s32 4294967295, %s1902_s12   ;;  %p1419_p0 = scmp.ge.s32.totalorder %s1902_s12, 1  ;;  %s1902_s12 = sphi %s1924_s12, %s13_s12  }
   0x2   : > { %p139_p1 = scmp.lt.s32.totalorder %s1902_s12, 3 }
   0x4   : > { %p140_p2 = pnand %p1419_p0, %p139_p1 }
   0x6   : > { %143 = sbr.rel (%p140_p2) target bundleno = 317 (0x13d), region = 32 }
   0xb   : > { %v1772_v0 = vld [vmem:[%s2283_s1 + $0x78] sm:$0xff]   ;;  %v1776_v4 = vld [vmem:[%s2283_s1 + $0x70] sm:$0xff]   ;;  %v1780_v8 = vld [vmem:[%s2283_s1 + $0x68] sm:$0xff]   ;;  %s1420_s19 = sshll.u32 %s1415_s13, 3  ;;  %vm1350_vm0 = vcmask 519168  }
   0xc   : > { %v1773_v1 = vld [vmem:[%s2283_s1 + $0xf8] sm:$0xff]   ;;  %1551 = vmatprep.subr.bf16.mxu0 %v1772_v0  ;;  %v1777_v5 = vld [vmem:[%s2283_s1 + $0xf0] sm:$0xff]   ;;  %v1781_v9 = vld [vmem:[%s2283_s1 + $0xe8] sm:$0xff]   ;;  %p165_p3 = scmp.lt.s32.totalorder %s1420_s19, 15 }
   0xd   : > { %v1774_v2 = vld [vmem:[%s2283_s1 + $0x38] sm:$0xff]   ;;  %1591 = vmatprep.subr.bf16.mxu1 %v1773_v1  ;;  %v1778_v6 = vld [vmem:[%s2283_s1 + $0x30] sm:$0xff]   ;;  %v1782_v10 = vld [vmem:[%s2283_s1 + $0x28] sm:$0xff]  }
   0xe   : > { %v1775_v3 = vld [vmem:[%s2283_s1 + $0xb8] sm:$0xff]   ;;  %1552 = vmatpush3.bf16.msra.mxu0 %v1774_v2  ;;  %v1779_v7 = vld [vmem:[%s2283_s1 + $0xb0] sm:$0xff]   ;;  %v1783_v11 = vld [vmem:[%s2283_s1 + $0xa8] sm:$0xff]   ;;  %s2295_s19 = smov (!%p165_p3, %s1420_s19), 15 }
   0xf   : > { %1592 = vmatpush3.bf16.msra.mxu1 %v1775_v3  ;;  %1553 = vmatprep.subr.bf16.mxu0 %v1776_v4  ;;  %v1784_v12 = vld [vmem:[%s2283_s1 + $0x60] sm:$0xff]   ;;  %v1788_v16 = vld [vmem:[%s2283_s1 + $0x58] sm:$0xff]   ;;  %v1792_v20 = vld [vmem:[%s2283_s1 + $0x50] sm:$0xff]   ;;  %s1763_s16 = smul.u32 36, %s2295_s19 }
  0x10   : > { %1593 = vmatprep.subr.bf16.mxu1 %v1777_v5  ;;  %v1785_v13 = vld [vmem:[%s2283_s1 + $0xe0] sm:$0xff]   ;;  %v1789_v17 = vld [vmem:[%s2283_s1 + $0xd8] sm:$0xff]   ;;  %v1793_v21 = vld [vmem:[%s2283_s1 + $0xd0] sm:$0xff]  }
  0x11   : > { %v1786_v14 = vld [vmem:[%s2283_s1 + $0x20] sm:$0xff]   ;;  %v1790_v18 = vld [vmem:[%s2283_s1 + $0x18] sm:$0xff]   ;;  %v1794_v22 = vld [vmem:[%s2283_s1 + $0x10] sm:$0xff]   ;;  %s2030_s13 = scalar_lea.vmem %s2282_s0, %s1763_s16  ;;  %s1423_s16 = sshll.u32 %s2295_s19, 2 }
  0x12   : > { %1554 = vmatpush3.bf16.msra.mxu0 %v1778_v6  ;;  %v1787_v15 = vld [vmem:[%s2283_s1 + $0xa0] sm:$0xff]   ;;  %v1791_v19 = vld [vmem:[%s2283_s1 + $0x98] sm:$0xff]   ;;  %v1795_v23 = vld [vmem:[%s2283_s1 + $0x90] sm:$0xff]   ;;  %s2261_s18 = scalar_lea.vmem %s2285_s3, %s1423_s16 }
  0x13   : > { %1594 = vmatpush3.bf16.msra.mxu1 %v1779_v7  ;;  %1555 = vmatprep.subr.bf16.mxu0 %v1780_v8  ;;  %v1796_v24 = vld [vmem:[%s2283_s1 + $0x48] sm:$0xff]   ;;  %v1800_v28 = vld [vmem:[%s2283_s1 + $0x40] sm:$0xff]   ;;  %v1810_v36 = vld [vmem:[%s2283_s1 + $0x178] sm:$0xff]  }
  0x14   : > { %1595 = vmatprep.subr.bf16.mxu1 %v1781_v9  ;;  %v1797_v25 = vld [vmem:[%s2283_s1 + $0xc8] sm:$0xff]   ;;  %v1801_v29 = vld [vmem:[%s2283_s1 + $0xc0] sm:$0xff]   ;;  %v1811_v37 = vld [vmem:[%s2283_s1 + $0x1f8] sm:$0xff]  }
  0x15   : > { %v1798_v26 = vld [vmem:[%s2283_s1 + $0x8] sm:$0xff]   ;;  %v1802_v30 = vld [vmem:[%s2283_s1] sm:$0xff]   ;;  %v1812_v38 = vld [vmem:[%s2283_s1 + $0x138] sm:$0xff]  }
  0x16   : > { %1556 = vmatpush3.bf16.msra.mxu0 %v1782_v10  ;;  %v1799_v27 = vld [vmem:[%s2283_s1 + $0x88] sm:$0xff]   ;;  %v1803_v31 = vld [vmem:[%s2283_s1 + $0x80] sm:$0xff]   ;;  %v1813_v39 = vld [vmem:[%s2283_s1 + $0x1b8] sm:$0xff]  }
  0x17   : > { %1596 = vmatpush3.bf16.msra.mxu1 %v1783_v11  ;;  %1557 = vmatprep.subr.bf16.mxu0 %v1784_v12  ;;  %v1804_v32 = vld [vmem:[%s2030_s13] ss:$36 sps:$4 sm:$0xff]   ;;  %v1807_v34 = vld [vmem:[%s2030_s13 + $0x8] ss:$36 sps:$4 sm:$0xff]   ;;  %v1814_v40 = vld [vmem:[%s2283_s1 + $0x170] sm:$0xff]  }
  0x18   : > { %1597 = vmatprep.subr.bf16.mxu1 %v1785_v13  ;;  %v1806_v33 = vld [vmem:[%s2030_s13 + $0x4] ss:$36 sps:$4 sm:$0xff]   ;;  %v1809_v35 = vld [vmem:[%s2030_s13 + $0xc] ss:$36 sps:$4 sm:$0xff]   ;;  %v1820_v45 = vld [vmem:[%s2030_s13 + $0x54] ss:$36 sps:$4 sm:$0xff]  }
  0x19   : > { %1017 = vmatprep.mubr.bf16.mxu0 %v1806_v33  ;;  %1082 = vmatprep.mubr.bf16.mxu1 %v1809_v35  ;;  %v1815_v41 = vld [vmem:[%s2283_s1 + $0x1f0] sm:$0xff]   ;;  %v1822_v46 = vld [vmem:[%s2030_s13 + $0x48] ss:$36 sps:$4 sm:$0xff]   ;;  %v1828_v52 = vld [vmem:[%s2283_s1 + $0x160] sm:$0xff]  }
  0x1a   : > { %1558 = vmatpush3.bf16.msra.mxu0 %v1786_v14  ;;  %v1816_v42 = vld [vmem:[%s2283_s1 + $0x130] sm:$0xff]   ;;  %v1824_v48 = vld [vmem:[%s2283_s1 + $0x168] sm:$0xff]   ;;  %v1829_v53 = vld [vmem:[%s2283_s1 + $0x1e0] sm:$0xff]  }
  0x1b   : > { %1598 = vmatpush3.bf16.msra.mxu1 %v1787_v15  ;;  %1559 = vmatprep.subr.bf16.mxu0 %v1788_v16  ;;  %v1817_v43 = vld [vmem:[%s2283_s1 + $0x1b0] sm:$0xff]   ;;  %v1825_v49 = vld [vmem:[%s2283_s1 + $0x1e8] sm:$0xff]   ;;  %v1830_v54 = vld [vmem:[%s2283_s1 + $0x120] sm:$0xff]  }
  0x1c   : > { %1599 = vmatprep.subr.bf16.mxu1 %v1789_v17  ;;  %v1818_v44 = vld [vmem:[%s2030_s13 + $0x4c] ss:$36 sps:$4 sm:$0xff]   ;;  %v1831_v55 = vld [vmem:[%s2283_s1 + $0x1a0] sm:$0xff]   ;;  %v1832_v56 = vld [vmem:[%s2030_s13 + $0x94] ss:$36 sps:$4 sm:$0xff]  }
  0x1d   : > { %v1823_v47 = vld [vmem:[%s2030_s13 + $0x50] ss:$36 sps:$4 sm:$0xff]   ;;  %v1826_v50 = vld [vmem:[%s2283_s1 + $0x128] sm:$0xff]   ;;  %v1834_v57 = vld [vmem:[%s2030_s13 + $0x9c] ss:$36 sps:$4 sm:$0xff]  }
  0x1e   : > { %1560 = vmatpush3.bf16.msra.mxu0 %v1790_v18  ;;  %v1827_v51 = vld [vmem:[%s2283_s1 + $0x1a8] sm:$0xff]   ;;  %v1836_v58 = vld [vmem:[%s2030_s13 + $0x90] ss:$36 sps:$4 sm:$0xff]   ;;  %v1837_v59 = vld [vmem:[%s2030_s13 + $0x98] ss:$36 sps:$4 sm:$0xff]  }
  0x1f   : > { %1600 = vmatpush3.bf16.msra.mxu1 %v1791_v19  ;;  %1561 = vmatprep.subr.bf16.mxu0 %v1792_v20  ;;  %v1838_v60 = vld [vmem:[%s2283_s1 + $0x158] sm:$0xff]   ;;  %v1842_v0 = vld [vmem:[%s2283_s1 + $0x150] sm:$0xff]   ;;  %v1848_v5 = vld [vmem:[%s2030_s13 + $0xe4] ss:$36 sps:$4 sm:$0xff]  }
  0x20   : > { %1601 = vmatprep.subr.bf16.mxu1 %v1793_v21  ;;  %v1839_v61 = vld [vmem:[%s2283_s1 + $0x1d8] sm:$0xff]   ;;  %v1843_v1 = vld [vmem:[%s2283_s1 + $0x1d0] sm:$0xff]   ;;  %v1851_v7 = vld [vmem:[%s2030_s13 + $0xe0] ss:$36 sps:$4 sm:$0xff]  }
  0x21   : > { %v1840_v62 = vld [vmem:[%s2283_s1 + $0x118] sm:$0xff]   ;;  %v1844_v2 = vld [vmem:[%s2283_s1 + $0x110] sm:$0xff]   ;;  %v1852_v8 = vld [vmem:[%s2283_s1 + $0x148] sm:$0xff]  }
  0x22   : > { %1562 = vmatpush3.bf16.msra.mxu0 %v1794_v22  ;;  %v1841_v63 = vld [vmem:[%s2283_s1 + $0x198] sm:$0xff]   ;;  %v1845_v3 = vld [vmem:[%s2283_s1 + $0x190] sm:$0xff]   ;;  %v1853_v9 = vld [vmem:[%s2283_s1 + $0x1c8] sm:$0xff]  }
  0x23   : > { %1602 = vmatpush3.bf16.msra.mxu1 %v1795_v23  ;;  %1563 = vmatprep.subr.bf16.mxu0 %v1796_v24  ;;  %v1846_v4 = vld [vmem:[%s2030_s13 + $0xdc] ss:$36 sps:$4 sm:$0xff]   ;;  %v1854_v10 = vld [vmem:[%s2283_s1 + $0x108] sm:$0xff]   ;;  %v1860_v16 = vld [vmem:[%s2030_s13 + $0x10] ss:$36 sps:$4 sm:$0xff]  }
  0x24   : > { %1603 = vmatprep.subr.bf16.mxu1 %v1797_v25  ;;  %v1850_v6 = vld [vmem:[%s2030_s13 + $0xd8] ss:$36 sps:$4 sm:$0xff]   ;;  %v1855_v11 = vld [vmem:[%s2283_s1 + $0x188] sm:$0xff]   ;;  %v1856_v12 = vld [vmem:[%s2283_s1 + $0x140] sm:$0xff]  }
  0x25   : > { %v1857_v13 = vld [vmem:[%s2283_s1 + $0x1c0] sm:$0xff]   ;;  %v1862_v17 = vld [vmem:[%s2030_s13 + $0x14] ss:$36 sps:$4 sm:$0xff]   ;;  %v1884_v33 = vld [vmem:[%s2030_s13 + $0xec] ss:$36 sps:$4 sm:$0xff]  }
  0x26   : > { %1564 = vmatpush3.bf16.msra.mxu0 %v1798_v26  ;;  %v1858_v14 = vld [vmem:[%s2283_s1 + $0x100] sm:$0xff]   ;;  %v1863_v18 = vld [vmem:[%s2030_s13 + $0x18] ss:$36 sps:$4 sm:$0xff]   ;;  %v1867_v21 = vld [vmem:[%s2283_s1 + $0x230] sm:$0xff]  }
  0x27   : > { %1604 = vmatpush3.bf16.msra.mxu1 %v1799_v27  ;;  %1565 = vmatprep.subr.bf16.mxu0 %v1800_v28  ;;  %v1859_v15 = vld [vmem:[%s2283_s1 + $0x180] sm:$0xff]   ;;  %v1866_v20 = vld [vmem:[%s2283_s1 + $0x238] sm:$0xff]   ;;  %v1874_v26 = vld [vmem:[%s2283_s1 + $0x228] sm:$0xff]  }
  0x28   : > { %1605 = vmatprep.subr.bf16.mxu1 %v1801_v29  ;;  %v1865_v19 = vld [vmem:[%s2030_s13 + $0x1c] ss:$36 sps:$4 sm:$0xff]   ;;  %v1870_v23 = vld [vmem:[%s2030_s13 + $0x64] ss:$36 sps:$4 sm:$0xff]   ;;  %v1878_v28 = vld [vmem:[%s2030_s13 + $0xac] ss:$36 sps:$4 sm:$0xff]  }
  0x29   : > { %v1868_v22 = vld [vmem:[%s2030_s13 + $0x5c] ss:$36 sps:$4 sm:$0xff]   ;;  %v1876_v27 = vld [vmem:[%s2030_s13 + $0xa4] ss:$36 sps:$4 sm:$0xff]   ;;  %v1883_v35 = vld [vmem:[%s2283_s1 + $0x210] sm:$0xff]  }
  0x2a   : > { %1566 = vmatpush3.bf16.msra.mxu0 %v1802_v30  ;;  %v1872_v24 = vld [vmem:[%s2030_s13 + $0x58] ss:$36 sps:$4 sm:$0xff]   ;;  %v1873_v25 = vld [vmem:[%s2030_s13 + $0x60] ss:$36 sps:$4 sm:$0xff]  }
  0x2b   : > { %1606 = vmatpush3.bf16.msra.mxu1 %v1803_v31  ;;  %1631 = vmatprep.subr.bf16.mxu0 %v1810_v36  ;;  %v1875_v29 = vld [vmem:[%s2283_s1 + $0x220] sm:$0xff]   ;;  %v1881_v31 = vld [vmem:[%s2030_s13 + $0xa8] ss:$36 sps:$4 sm:$0xff]  }
  0x2c   : > { %1671 = vmatprep.subr.bf16.mxu1 %v1811_v37  ;;  %v1880_v30 = vld [vmem:[%s2030_s13 + $0xa0] ss:$36 sps:$4 sm:$0xff]   ;;  %v1888_v36 = vld [vmem:[%s2030_s13 + $0xe8] ss:$36 sps:$4 sm:$0xff]  }
  0x2d   : > { %1018 = vmatmul.mubr.bf16.vlgmr.msra.gmra.mxu0 %v1804_v32  ;;  %v1882_v32 = vld [vmem:[%s2283_s1 + $0x218] sm:$0xff]   ;;  %v1890_v37 = vld [vmem:[%s2283_s1 + $0x208] sm:$0xff]  }
  0x2e   : > { %1083 = vmatmul.mubr.bf16.vlgmr.msra.gmra.mxu1 %v1807_v34  ;;  %1632 = vmatpush3.bf16.msra.mxu0 %v1812_v38  ;;  %v1886_v34 = vld [vmem:[%s2030_s13 + $0xf4] ss:$36 sps:$4 sm:$0xff]  }
  0x2f   : > { %1672 = vmatpush3.bf16.msra.mxu1 %v1813_v39  ;;  %1633 = vmatprep.subr.bf16.mxu0 %v1814_v40  ;;  %v1889_v38 = vld [vmem:[%s2030_s13 + $0xf0] ss:$36 sps:$4 sm:$0xff]   ;;  %v1892_v39 = vld [vmem:[%s2030_s13 + $0x20] ss:$36 sps:$4 sm:$0xff]  }
  0x30   : > { %1673 = vmatprep.subr.bf16.mxu1 %v1815_v41  ;;  %1025 = vmatprep.mubr.bf16.mxu0 %v1818_v44  ;;  %v1893_v40 = vld [vmem:[%s2030_s13 + $0xb0] ss:$36 sps:$4 sm:$0xff]   ;;  %v1891_v41 = vld [vmem:[%s2283_s1 + $0x200] sm:$0xff]  }
  0x31   : > { %1090 = vmatprep.mubr.bf16.mxu1 %v1820_v45 }
  0x32   : > { %1634 = vmatpush3.bf16.msra.mxu0 %v1816_v42  ;;  %v1894_v42 = vld [vmem:[%s2030_s13 + $0x68] ss:$36 sps:$4 sm:$0xff]  }
  0x33   : > { %1674 = vmatpush3.bf16.msra.mxu1 %v1817_v43  ;;  %1635 = vmatprep.subr.bf16.mxu0 %v1824_v48  ;;  %v1895_v43 = vld [vmem:[%s2030_s13 + $0xf8] ss:$36 sps:$4 sm:$0xff]  }
  0x34   : > { %1675 = vmatprep.subr.bf16.mxu1 %v1825_v49 }
  0x35   : > { %1026 = vmatmul.mubr.bf16.gmra.mxu0 %v1822_v46 }
  0x36   : > { %1091 = vmatmul.mubr.bf16.gmra.mxu1 %v1823_v47  ;;  %1636 = vmatpush3.bf16.msra.mxu0 %v1826_v50 }
  0x37   : > { %1676 = vmatpush3.bf16.msra.mxu1 %v1827_v51  ;;  %1637 = vmatprep.subr.bf16.mxu0 %v1828_v52 }
  0x38   : > { %1677 = vmatprep.subr.bf16.mxu1 %v1829_v53  ;;  %1033 = vmatprep.mubr.bf16.mxu0 %v1832_v56 }
  0x39   : > { %1098 = vmatprep.mubr.bf16.mxu1 %v1834_v57 }
  0x3a   : > { %1638 = vmatpush3.bf16.msra.mxu0 %v1830_v54 }
  0x3b   : > { %1678 = vmatpush3.bf16.msra.mxu1 %v1831_v55  ;;  %1639 = vmatprep.subr.bf16.mxu0 %v1838_v60 }
  0x3c   : > { %1679 = vmatprep.subr.bf16.mxu1 %v1839_v61 }
  0x3d   : > { %1034 = vmatmul.mubr.bf16.gmra.mxu0 %v1836_v58 }
  0x3e   : > { %1099 = vmatmul.mubr.bf16.gmra.mxu1 %v1837_v59  ;;  %1640 = vmatpush3.bf16.msra.mxu0 %v1840_v62 }
  0x3f   : > { %1680 = vmatpush3.bf16.msra.mxu1 %v1841_v63  ;;  %1641 = vmatprep.subr.bf16.mxu0 %v1842_v0 }
  0x40   : > { %1681 = vmatprep.subr.bf16.mxu1 %v1843_v1  ;;  %1041 = vmatprep.mubr.bf16.mxu0 %v1846_v4 }
  0x41   : > { %1106 = vmatprep.mubr.bf16.mxu1 %v1848_v5 }
  0x42   : > { %1642 = vmatpush3.bf16.msra.mxu0 %v1844_v2 }
  0x43   : > { %1682 = vmatpush3.bf16.msra.mxu1 %v1845_v3  ;;  %1643 = vmatprep.subr.bf16.mxu0 %v1852_v8 }
  0x44   : > { %1683 = vmatprep.subr.bf16.mxu1 %v1853_v9 }
  0x45   : > { %1042 = vmatmul.mubr.bf16.gmra.mxu0 %v1850_v6 }
  0x46   : > { %1107 = vmatmul.mubr.bf16.gmra.mxu1 %v1851_v7  ;;  %1644 = vmatpush3.bf16.msra.mxu0 %v1854_v10 }
  0x47   : > { %1684 = vmatpush3.bf16.msra.mxu1 %v1855_v11  ;;  %1645 = vmatprep.subr.bf16.mxu0 %v1856_v12 }
  0x48   : > { %1685 = vmatprep.subr.bf16.mxu1 %v1857_v13  ;;  %1147 = vmatprep.mubr.bf16.mxu0 %v1862_v17 }
  0x49   : > { %1212 = vmatprep.mubr.bf16.mxu1 %v1865_v19 }
  0x4a   : > { %1646 = vmatpush3.bf16.msra.mxu0 %v1858_v14 }
  0x4b   : > { %1686 = vmatpush3.bf16.msra.mxu1 %v1859_v15  ;;  %1723 = vmatprep.subr.bf16.mxu0 %v1866_v20 }
  0x4c   : > { %1747 = vmatprep.subr.bf16.mxu1 %v1866_v20 }
  0x4d   : > { %1148 = vmatmul.mubr.bf16.vlgmr.msra.gmra.mxu0 %v1860_v16 }
  0x4e   : > { %1213 = vmatmul.mubr.bf16.vlgmr.msra.gmra.mxu1 %v1863_v18  ;;  %1724 = vmatpush3.bf16.msra.mxu0 %v1866_v20 }
  0x4f   : > { %1755 = vmatpush3.bf16.msra.mxu1 %v1866_v20  ;;  %1725 = vmatprep.subr.bf16.mxu0 %v1867_v21 }
  0x50   : > { %1748 = vmatprep.subr.bf16.mxu1 %v1867_v21  ;;  %1155 = vmatprep.mubr.bf16.mxu0 %v1868_v22 }
  0x51   : > { %1220 = vmatprep.mubr.bf16.mxu1 %v1870_v23 }
  0x52   : > { %1726 = vmatpush3.bf16.msra.mxu0 %v1867_v21 }
  0x53   : > { %1756 = vmatpush3.bf16.msra.mxu1 %v1867_v21  ;;  %1727 = vmatprep.subr.bf16.mxu0 %v1874_v26 }
  0x54   : > { %1749 = vmatprep.subr.bf16.mxu1 %v1874_v26 }
  0x55   : > { %1156 = vmatmul.mubr.bf16.gmra.mxu0 %v1872_v24 }
  0x56   : > { %1221 = vmatmul.mubr.bf16.gmra.mxu1 %v1873_v25  ;;  %1163 = vmatprep.mubr.bf16.mxu0 %v1876_v27 }
  0x57   : > { %1728 = vmatpush3.bf16.msra.mxu0 %v1874_v26  ;;  %1228 = vmatprep.mubr.bf16.mxu1 %v1878_v28 }
  0x58   : > { %1757 = vmatpush3.bf16.msra.mxu1 %v1874_v26  ;;  %1729 = vmatprep.subr.bf16.mxu0 %v1875_v29 }
  0x59   : > { %1750 = vmatprep.subr.bf16.mxu1 %v1875_v29 }
  0x5b   : > { %1730 = vmatpush3.bf16.msra.mxu0 %v1875_v29 }
  0x5c   : > { %1758 = vmatpush3.bf16.msra.mxu1 %v1875_v29  ;;  %1731 = vmatprep.subr.bf16.mxu0 %v1882_v32 }
  0x5d   : > { %1164 = vmatmul.mubr.bf16.gmra.mxu0 %v1880_v30  ;;  %1751 = vmatprep.subr.bf16.mxu1 %v1882_v32  ;;  %v1424_v30 = vld [vmem:[%s2284_s2] ss:$0 sm:$0xff] }
  0x5e   : > { %1229 = vmatmul.mubr.bf16.gmra.mxu1 %v1881_v31  ;;  %1171 = vmatprep.mubr.bf16.mxu0 %v1884_v33 }
  0x5f   : > { %1732 = vmatpush3.bf16.msra.mxu0 %v1882_v32  ;;  %1236 = vmatprep.mubr.bf16.mxu1 %v1886_v34 }
  0x60   : > { %1759 = vmatpush3.bf16.msra.mxu1 %v1882_v32  ;;  %1733 = vmatprep.subr.bf16.mxu0 %v1883_v35 }
  0x61   : > { %1752 = vmatprep.subr.bf16.mxu1 %v1883_v35 }
  0x63   : > { %1734 = vmatpush3.bf16.msra.mxu0 %v1883_v35 }
  0x64   : > { %1760 = vmatpush3.bf16.msra.mxu1 %v1883_v35  ;;  %1735 = vmatprep.subr.bf16.mxu0 %v1890_v37 }
  0x65   : > { %1172 = vmatmul.mubr.bf16.gmra.mxu0 %v1888_v36  ;;  %1753 = vmatprep.subr.bf16.mxu1 %v1890_v37 }
  0x66   : > { %1237 = vmatmul.mubr.bf16.gmra.mxu1 %v1889_v38  ;;  %1739 = vmatprep.mubr.bf16.mxu0 %v1892_v39 }
  0x67   : > { %1736 = vmatpush3.bf16.msra.mxu0 %v1890_v37  ;;  %1743 = vmatprep.mubr.bf16.mxu1 %v1893_v40 }
  0x68   : > { %1761 = vmatpush3.bf16.msra.mxu1 %v1890_v37  ;;  %1737 = vmatprep.subr.bf16.mxu0 %v1891_v41 }
  0x69   : > { %1754 = vmatprep.subr.bf16.mxu1 %v1891_v41 }
  0x6b   : > { %1738 = vmatpush3.bf16.msra.mxu0 %v1891_v41 }
  0x6c   : > { %1762 = vmatpush3.bf16.msra.mxu1 %v1891_v41 }
  0x6e   : > { %1740 = vmatmul.mubr.bf16.vlgmr.msra.gmra.mxu0 %v1894_v42 }
  0x6f   : > { %1744 = vmatmul.mubr.bf16.vlgmr.msra.gmra.mxu1 %v1895_v43 }
  0xed   : > { %v1567_v44 = vpop.f32.mrf.mxu0 }
  0xee   : > { %v1607_v45 = vpop.f32.mrf.mxu1 }
  0xef   : > { %v1568_v46 = vpop.f32.mrf.mxu0 }
  0xf0   : > { %v1608_v47 = vpop.f32.mrf.mxu1  ;;  %v1569_v27 = vadd.f32 %v1568_v46, %v1567_v44 }
  0xf1   : > { %v1570_v48 = vpop.f32.mrf.mxu0  ;;  %v1609_v40 = vadd.f32 %v1608_v47, %v1607_v45 }
  0xf2   : > { %v2194_v49 = vpop.f32.mrf.mxu1  ;;  %v1020_v35 = vadd.f32 %v1569_v27, %v1424_v30 }
  0xf3   : > { %v1571_v50 = vpop.f32.mrf.mxu0 }
  0xf4   : > { %v2196_v51 = vpop.f32.mrf.mxu1  ;;  %v1572_v36 = vadd.f32 %v1571_v50, %v1570_v48 }
  0xf5   : > { %v1573_v52 = vpop.f32.mrf.mxu0  ;;  %v1612_v48 = vadd.f32 %v2196_v51, %v2194_v49 }
  0xf6   : > { %v1613_v53 = vpop.f32.mrf.mxu1 }
  0xf7   : > { %v1574_v54 = vpop.f32.mrf.mxu0 }
  0xf8   : > { %v1614_v55 = vpop.f32.mrf.mxu1  ;;  %v1575_v31 = vadd.f32 %v1574_v54, %v1573_v52 }
  0xf9   : > { %v1576_v56 = vpop.f32.mrf.mxu0  ;;  %v1615_v52 = vadd.f32 %v1614_v55, %v1613_v53 }
  0xfa   : > { %v2198_v57 = vpop.f32.mrf.mxu1  ;;  %v1028_v41 = vadd.f32 %v1575_v31, %v1424_v30 }
  0xfb   : > { %v1577_v58 = vpop.f32.mrf.mxu0 }
  0xfc   : > { %v2200_v59 = vpop.f32.mrf.mxu1  ;;  %v1578_v39 = vadd.f32 %v1577_v58, %v1576_v56  ;;  %v1093_v45 = vadd.f32 %v1615_v52, %v1028_v41 }
  0xfd   : > { %v1579_v60 = vpop.f32.mrf.mxu0 }
  0xfe   : > { %v2202_v61 = vpop.f32.mrf.mxu1  ;;  %v1031_v50 = vadd.f32 %v1578_v39, %v1424_v30 }
  0xff   : > { %v1580_v62 = vpop.f32.mrf.mxu0 }
 0x100   : > { %v2204_v63 = vpop.f32.mrf.mxu1  ;;  %v1581_v42 = vadd.f32 %v1580_v62, %v1579_v60 }
 0x101   : > { %v1582_v0 = vpop.f32.mrf.mxu0  ;;  %v1621_v31 = vadd.f32 %v2204_v63, %v2202_v61 }
 0x102   : > { %v2206_v1 = vpop.f32.mrf.mxu1  ;;  %v1036_v47 = vadd.f32 %v1581_v42, %v1424_v30 }
 0x103   : > { %v1583_v2 = vpop.f32.mrf.mxu0 }
 0x104   : > { %v2208_v3 = vpop.f32.mrf.mxu1  ;;  %v1584_v58 = vadd.f32 %v1583_v2, %v1582_v0 }
 0x105   : > { %v1585_v4 = vpop.f32.mrf.mxu0 }
 0x106   : > { %v1625_v5 = vpop.f32.mrf.mxu1 }
 0x107   : > { %v1586_v6 = vpop.f32.mrf.mxu0 }
 0x108   : > { %v1626_v7 = vpop.f32.mrf.mxu1  ;;  %v1587_v34 = vadd.f32 %v1586_v6, %v1585_v4 }
 0x109   : > { %v1588_v8 = vpop.f32.mrf.mxu0  ;;  %v1627_v4 = vadd.f32 %v1626_v7, %v1625_v5 }
 0x10a   : > { %v1628_v9 = vpop.f32.mrf.mxu1 }
 0x10b   : > { %v1589_v10 = vpop.f32.mrf.mxu0 }
 0x10c   : > { %v1629_v11 = vpop.f32.mrf.mxu1  ;;  %v1590_v43 = vadd.f32 %v1589_v10, %v1588_v8  ;;  %v1618_v8 = vadd.f32 %v2200_v59, %v2198_v57 }
 0x10d   : > { %v1647_v12 = vpop.f32.mrf.mxu0  ;;  %v1630_v49 = vadd.f32 %v1629_v11, %v1628_v9  ;;  %v1624_v9 = vadd.f32 %v2208_v3, %v2206_v1 }
 0x10e   : > { %v2210_v13 = vpop.f32.mrf.mxu1  ;;  %v1047_v60 = vadd.f32 %v1590_v43, %v1424_v30 }
 0x10f   : > { %v1648_v14 = vpop.f32.mrf.mxu0 }
 0x110   : > { %v2212_v15 = vpop.f32.mrf.mxu1  ;;  %v1649_v53 = vadd.f32 %v1648_v14, %v1647_v12 }
 0x111   : > { %v2214_v16 = vpop.f32.mrf.mxu0 }
 0x112   : > { %v2216_v17 = vpop.f32.mrf.mxu1 }
 0x113   : > { %2286 = vst [vmem:[#allocation2_spill] sm:$0xff] %v2216_v17  ;;  %v2218_v18 = vpop.f32.mrf.mxu0  ;;  %v1085_v17 = vadd.f32 %v1609_v40, %v1020_v35  ;;  %v1039_v35 = vadd.f32 %v1584_v58, %v1424_v30 }
 0x114   : > { %v2220_v19 = vpop.f32.mrf.mxu1  ;;  %v1652_v14 = vadd.f32 %v2218_v18, %v2214_v16 }
 0x115   : > { %2287 = vst [vmem:[#allocation3_spill] sm:$0xff] %v2220_v19  ;;  %v1653_v20 = vpop.f32.mrf.mxu0  ;;  %v1044_v19 = vadd.f32 %v1587_v34, %v1424_v30  ;;  %v1101_v34 = vadd.f32 %v1621_v31, %v1036_v47  ;;  %v1150_v12 = vadd.f32 %v1649_v53, %v1085_v17 }
 0x116   : > { %v2222_v21 = vpop.f32.mrf.mxu1 }
 0x117   : > { %v1654_v22 = vpop.f32.mrf.mxu0  ;;  %v1109_v10 = vadd.f32 %v1627_v4, %v1044_v19 }
 0x118   : > { %v1694_v23 = vpop.f32.mrf.mxu1  ;;  %v1655_v56 = vadd.f32 %v1654_v22, %v1653_v20  ;;  %v1096_v20 = vadd.f32 %v1618_v8, %v1031_v50 }
 0x119   : > { %v1656_v24 = vpop.f32.mrf.mxu0  ;;  %v1695_v61 = vadd.f32 %v1694_v23, %v2222_v21 }
 0x11a   : > { %v2224_v25 = vpop.f32.mrf.mxu1  ;;  %v1158_v22 = vadd.f32 %v1655_v56, %v1093_v45  ;;  %v2292_v52 = vld [vmem:[#allocation2_spill] sm:$0xff] }
 0x11b   : > { %2288 = vst [vmem:[#allocation4_spill] sm:$0xff] %v2224_v25  ;;  %v1657_v26 = vpop.f32.mrf.mxu0 }
 0x11c   : > { %v2226_v28 = vpop.f32.mrf.mxu1  ;;  %v1658_v0 = vadd.f32 %v1657_v26, %v1656_v24  ;;  %v1689_v26 = vadd.f32 %v2212_v15, %v2210_v13  ;;  %v1223_v17 = vadd.f32 %v1695_v61, %v1158_v22 }
 0x11d   : > { %2289 = vst [vmem:[#allocation5_spill] sm:$0xff] %v2226_v28  ;;  %v1659_v29 = vpop.f32.mrf.mxu0  ;;  %v1023_v28 = vadd.f32 %v1572_v36, %v1424_v30  ;;  %v1112_v36 = vadd.f32 %v1630_v49, %v1047_v60  ;;  %v1104_v30 = vadd.f32 %v1624_v9, %v1039_v35 }
 0x11e   : > { %v2231_v32 = vpop.f32.mrf.mxu1 }
 0x11f   : > { %v1660_v33 = vpop.f32.mrf.mxu0  ;;  %v1088_v27 = vadd.f32 %v1612_v48, %v1023_v28  ;;  %v1161_v28 = vadd.f32 %v1658_v0, %v1096_v20  ;;  %v2293_v48 = vld [vmem:[#allocation3_spill] sm:$0xff] }
 0x120   : > { %v1700_v37 = vpop.f32.mrf.mxu1  ;;  %v1661_v51 = vadd.f32 %v1660_v33, %v1659_v29  ;;  %v1692_v50 = vadd.f32 %v2293_v48, %v2292_v52 }
 0x121   : > { %v1662_v38 = vpop.f32.mrf.mxu0  ;;  %v1701_v16 = vadd.f32 %v1700_v37, %v2231_v32  ;;  %v1153_v23 = vadd.f32 %v1652_v14, %v1088_v27 }
 0x122   : > { %v2233_v44 = vpop.f32.mrf.mxu1  ;;  %v1166_v11 = vadd.f32 %v1661_v51, %v1101_v34  ;;  %v2290_v33 = vld [vmem:[#allocation4_spill] sm:$0xff] }
 0x123   : > { %v1663_v46 = vpop.f32.mrf.mxu0  ;;  %v1218_v53 = vadd.f32 %v1692_v50, %v1153_v23 }
 0x124   : > { %v2235_v54 = vpop.f32.mrf.mxu1  ;;  %v1664_v19 = vadd.f32 %v1663_v46, %v1662_v38  ;;  %v2291_v40 = vld [vmem:[#allocation5_spill] sm:$0xff]  ;;  %v1215_v38 = vadd.f32 %v1689_v26, %v1150_v12  ;;  %v1231_v13 = vadd.f32 %v1701_v16, %v1166_v11 }
 0x125   : > { %v1665_v25 = vpop.f32.mrf.mxu0  ;;  %v1698_v41 = vadd.f32 %v2291_v40, %v2290_v33  ;;  %v1704_v45 = vadd.f32 %v2235_v54, %v2233_v44 }
 0x126   : > { %v1705_v62 = vpop.f32.mrf.mxu1  ;;  %v1169_v42 = vadd.f32 %v1664_v19, %v1104_v30 }
 0x127   : > { %v1666_v6 = vpop.f32.mrf.mxu0  ;;  %v1226_v56 = vadd.f32 %v1698_v41, %v1161_v28 }
 0x128   : > { %v1667_v55 = vadd.f32 %v1666_v6, %v1665_v25  ;;  %v1706_v5 = vpop.f32.mrf.mxu1  ;;  %v1234_v31 = vadd.f32 %v1704_v45, %v1169_v42 }
 0x129   : > { %v1668_v7 = vpop.f32.mrf.mxu0  ;;  %v1707_v39 = vadd.f32 %v1706_v5, %v1705_v62 }
 0x12a   : > { %v1174_v2 = vadd.f32 %v1667_v55, %v1109_v10  ;;  %v1708_v57 = vpop.f32.mrf.mxu1 }
 0x12b   : > { %v1669_v59 = vpop.f32.mrf.mxu0 }
 0x12c   : > { %v1670_v63 = vadd.f32 %v1669_v59, %v1668_v7  ;;  %v1709_v24 = vpop.f32.mrf.mxu1  ;;  %v1239_v25 = vadd.f32 %v1707_v39, %v1174_v2 }
 0x12d   : > { %v1710_v18 = vadd.f32 %v1709_v24, %v1708_v57 }
 0x12e   : > { %v1177_v29 = vadd.f32 %v1670_v63, %v1112_v36  ;;  %v1741_v21 = vpop.f32.mrf.mxu0 }
 0x12f   : > { %v1288_v1 = vadd.f32 %v1741_v21, %v1223_v17  ;;  %v1745_v3 = vpop.f32.mrf.mxu1 }
 0x130   : > { %v1304_v43 = vadd.f32 %v1745_v3, %v1239_v25  ;;  %v1279_v46 = vpop.f32.mrf.mxu0  ;;  %v1242_v15 = vadd.f32 %v1710_v18, %v1177_v29 }
 0x131   : > { %v1312_v4 = vmax.f32 %v1288_v1, 0.0  ;;  %v1280_v32 = vadd.f32 %v1279_v46, %v1215_v38  ;;  %v1295_v37 = vpop.f32.mrf.mxu1 }
 0x132   : > { %v1316_v47 = vmax.f32 %v1304_v43, 0.0  ;;  %v1296_v58 = vadd.f32 %v1295_v37, %v1231_v13  ;;  %v1742_v60 = vpop.f32.mrf.mxu0 }
 0x133   : > { %v1545_v62 = vpack.c.bf16 %v1312_v4, %v1312_v4  ;;  %v1310_v6 = vmax.f32 %v1280_v32, 0.0  ;;  %v1291_v8 = vadd.f32 %v1742_v60, %v1226_v56  ;;  %v1746_v10 = vpop.f32.mrf.mxu1 }
 0x134   : > { %v1549_v55 = vpack.c.bf16 %v1316_v47, %v1316_v47  ;;  %v1314_v27 = vmax.f32 %v1296_v58, 0.0  ;;  %v1307_v44 = vadd.f32 %v1746_v10, %v1242_v15  ;;  %v1282_v54 = vpop.f32.mrf.mxu0 }
 0x135   : > { %1353 = vst.msk [vmem:[%s2261_s18 + $0x8] sm:$0xf] %vm1350_vm0, %v1545_v62  ;;  %v1543_v49 = vpack.c.bf16 %v1310_v6, %v1310_v6  ;;  %v1313_v51 = vmax.f32 %v1291_v8, 0.0  ;;  %v1283_v5 = vadd.f32 %v1282_v54, %v1218_v53  ;;  %v1298_v7 = vpop.f32.mrf.mxu1 }
 0x136   : > { %1357 = vst.msk [vmem:[%s2261_s18 + $0x18] sm:$0xf] %vm1350_vm0, %v1549_v55  ;;  %v1547_v20 = vpack.c.bf16 %v1314_v27, %v1314_v27  ;;  %v1317_v22 = vmax.f32 %v1307_v44, 0.0  ;;  %v1299_v0 = vadd.f32 %v1298_v7, %v1234_v31 }
 0x137   : > { %1351 = vst.msk [vmem:[%s2261_s18] sm:$0xf] %vm1350_vm0, %v1543_v49  ;;  %v1546_v2 = vpack.c.bf16 %v1313_v51, %v1313_v51  ;;  %v1311_v34 = vmax.f32 %v1283_v5, 0.0 }
 0x138   : > { %1355 = vst.msk [vmem:[%s2261_s18 + $0x10] sm:$0xf] %vm1350_vm0, %v1547_v20  ;;  %v1550_v35 = vpack.c.bf16 %v1317_v22, %v1317_v22  ;;  %v1315_v36 = vmax.f32 %v1299_v0, 0.0 }
 0x139   : > { %1354 = vst.msk [vmem:[%s2261_s18 + $0xc] sm:$0xf] %vm1350_vm0, %v1546_v2  ;;  %v1544_v39 = vpack.c.bf16 %v1311_v34, %v1311_v34 }
 0x13a   : > { %1358 = vst.msk [vmem:[%s2261_s18 + $0x1c] sm:$0xf] %vm1350_vm0, %v1550_v35  ;;  %v1548_v57 = vpack.c.bf16 %v1315_v36, %v1315_v36 }
 0x13b   : > { %1352 = vst.msk [vmem:[%s2261_s18 + $0x4] sm:$0xf] %vm1350_vm0, %v1544_v39 }
 0x13c   : > { %1356 = vst.msk [vmem:[%s2261_s18 + $0x14] sm:$0xf] %vm1350_vm0, %v1548_v57 }
 0x13d PF: > { %s13_s12 = sadd.s32 1, %s1902_s12  }
 0x13e   : > { %p10_p4 = scmp.ge.s32.totalorder %s13_s12, 4  }
 0x140   :  { %12 = sbr.rel (!%p10_p4) target bundleno = 1 (0x1), region = 62 }

// kernel: colornet_forward.28
= control target key start
LH: loop header
LB: loop body
LE: loop exit
PB: predicated region body
PF: predicated region fallthrough
CT: control target
= control target key end

     0   :  { %s2443_s12 = smov 0   ;;  %s3013_s0 = inlined_call_operand.vmem [shape: bf16[512,576], index: 0, kind: input, shape index: {}]   ;;  %s3014_s1 = inlined_call_operand.vmem [shape: bf16[576,32], index: 1, kind: input, shape index: {}]   ;;  %s3015_s2 = inlined_call_operand.vmem [shape: f32[1,32], index: 2, kind: input, shape index: {}]   ;;  %s3016_s3 = inlined_call_operand.vmem [shape: bf16[512,32], index: 3, kind: output, shape index: {}]  }
   0x1 LB: > { %s1750_s13 = sadd.s32 4294967295, %s2421_s12   ;;  %p1754_p0 = scmp.ge.s32.totalorder %s2421_s12, 1  ;;  %s2421_s12 = sphi %s2443_s12, %s13_s12  }
   0x2   : > { %p139_p1 = scmp.lt.s32.totalorder %s2421_s12, 3 }
   0x4   : > { %p140_p2 = pnand %p1754_p0, %p139_p1 }
   0x6   : > { %143 = sbr.rel (%p140_p2) target bundleno = 406 (0x196), region = 32 }
   0xb   : > { %v2267_v0 = vld [vmem:[%s3014_s1 + $0x78] sm:$0xff]   ;;  %s1755_s16 = sshll.u32 %s1750_s13, 5  ;;  %v2269_v2 = vld [vmem:[%s3014_s1 + $0x70] sm:$0xff]   ;;  %v2271_v4 = vld [vmem:[%s3014_s1 + $0x68] sm:$0xff]   ;;  %vm969_vm0 = vcmask 523264   ;;  %vm1661_vm1 = vcmask 257024  }
   0xc   : > { %v2268_v1 = vld [vmem:[%s3014_s1 + $0x38] sm:$0xff]   ;;  %1958 = vmatprep.subr.bf16.mxu0 %v2267_v0  ;;  %2242 = vmatprep.subr.bf16.mxu1 %v2267_v0  ;;  %p165_p3 = scmp.lt.s32.totalorder %s1755_s16, 63  ;;  %v2270_v3 = vld [vmem:[%s3014_s1 + $0x30] sm:$0xff]   ;;  %v2272_v5 = vld [vmem:[%s3014_s1 + $0x28] sm:$0xff]  }
   0xd   : > { %1959 = vmatpush3.bf16.msra.mxu0 %v2268_v1  ;;  %2250 = vmatpush3.bf16.msra.mxu1 %v2268_v1  ;;  %v2273_v6 = vld [vmem:[%s3014_s1 + $0x60] sm:$0xff]   ;;  %v2275_v8 = vld [vmem:[%s3014_s1 + $0x58] sm:$0xff]   ;;  %v2277_v10 = vld [vmem:[%s3014_s1 + $0x50] sm:$0xff]  }
   0xe   : > { %1960 = vmatprep.subr.bf16.mxu0 %v2269_v2  ;;  %2243 = vmatprep.subr.bf16.mxu1 %v2269_v2  ;;  %s3058_s16 = smov (!%p165_p3, %s1755_s16), 63  ;;  %v2274_v7 = vld [vmem:[%s3014_s1 + $0x20] sm:$0xff]   ;;  %v2276_v9 = vld [vmem:[%s3014_s1 + $0x18] sm:$0xff]   ;;  %v2278_v13 = vld [vmem:[%s3014_s1 + $0x10] sm:$0xff]  }
   0xf   : > { %s2258_s29 = smul.u32 20, %s3058_s16  ;;  %v2279_v14 = vld [vmem:[%s3014_s1 + $0x48] sm:$0xff]   ;;  %v2281_v16 = vld [vmem:[%s3014_s1 + $0x40] sm:$0xff]   ;;  %v2289_v18 = vld [vmem:[%s3014_s1 + $0xf8] sm:$0xff]   ;;  %s1758_s19 = sshll.u32 %s3058_s16, 2 }
  0x10   : > { %v2280_v15 = vld [vmem:[%s3014_s1 + $0x8] sm:$0xff]   ;;  %v2282_v17 = vld [vmem:[%s3014_s1] sm:$0xff]   ;;  %v2292_v19 = vld [vmem:[%s3014_s1 + $0x118] sm:$0xff]   ;;  %s2826_s22 = scalar_lea.vmem %s3016_s3, %s1758_s19 }
  0x11   : > { %1961 = vmatpush3.bf16.msra.mxu0 %v2270_v3  ;;  %2251 = vmatpush3.bf16.msra.mxu1 %v2270_v3  ;;  %s2484_s9 = scalar_lea.vmem %s3013_s0, %s2258_s29  ;;  %v2290_v22 = vld [vmem:[%s3014_s1 + $0xb8] sm:$0xff]   ;;  %v2291_v23 = vld [vmem:[%s3014_s1 + $0xf0] sm:$0xff]   ;;  %v2300_v28 = vld [vmem:[%s3014_s1 + $0xe8] sm:$0xff]  }
  0x12   : > { %1962 = vmatprep.subr.bf16.mxu0 %v2271_v4  ;;  %2244 = vmatprep.subr.bf16.mxu1 %v2271_v4  ;;  %v2285_v11 = vld [vmem:[%s2484_s9 + $0x4] ss:$20 sps:$4 sm:$0xff]   ;;  %v2283_v20 = vld [vmem:[%s2484_s9] ss:$20 sps:$4 sm:$0xff]   ;;  %v2298_v27 = vld [vmem:[%s2484_s9 + $0x28] ss:$20 sps:$4 sm:$0xff]  }
  0x13   : > { %v2288_v12 = vld [vmem:[%s2484_s9 + $0x1e4] ss:$20 sps:$4 sm:$0xff]   ;;  %1050 = vmatprep.mubr.bf16.mxu0 %v2285_v11  ;;  %v2286_v21 = vld [vmem:[%s2484_s9 + $0x1e0] ss:$20 sps:$4 sm:$0xff]   ;;  %v2299_v29 = vld [vmem:[%s2484_s9 + $0x208] ss:$20 sps:$4 sm:$0xff]  }
  0x14   : > { %1146 = vmatprep.mubr.bf16.mxu1 %v2288_v12  ;;  %v2294_v24 = vld [vmem:[%s2484_s9 + $0x2c] ss:$20 sps:$4 sm:$0xff]   ;;  %v2293_v26 = vld [vmem:[%s3014_s1 + $0xb0] sm:$0xff]   ;;  %v2310_v37 = vld [vmem:[%s3014_s1 + $0xd8] sm:$0xff]  }
  0x15   : > { %1963 = vmatpush3.bf16.msra.mxu0 %v2272_v5  ;;  %2252 = vmatpush3.bf16.msra.mxu1 %v2272_v5  ;;  %v2296_v25 = vld [vmem:[%s2484_s9 + $0x20c] ss:$20 sps:$4 sm:$0xff]   ;;  %v2304_v32 = vld [vmem:[%s2484_s9 + $0x54] ss:$20 sps:$4 sm:$0xff]   ;;  %v2308_v36 = vld [vmem:[%s2484_s9 + $0x50] ss:$20 sps:$4 sm:$0xff]  }
  0x16   : > { %1964 = vmatprep.subr.bf16.mxu0 %v2273_v6  ;;  %2245 = vmatprep.subr.bf16.mxu1 %v2273_v6  ;;  %v2301_v30 = vld [vmem:[%s3014_s1 + $0xa8] sm:$0xff]   ;;  %v2302_v31 = vld [vmem:[%s3014_s1 + $0xe0] sm:$0xff]   ;;  %v2323_v35 = vld [vmem:[%s3014_s1 + $0x110] sm:$0xff]  }
  0x17   : > { %v2306_v33 = vld [vmem:[%s2484_s9 + $0x234] ss:$20 sps:$4 sm:$0xff]   ;;  %v2303_v34 = vld [vmem:[%s3014_s1 + $0xa0] sm:$0xff]   ;;  %v2311_v39 = vld [vmem:[%s3014_s1 + $0x98] sm:$0xff]  }
  0x18   : > { %v2309_v38 = vld [vmem:[%s2484_s9 + $0x230] ss:$20 sps:$4 sm:$0xff]   ;;  %v2318_v44 = vld [vmem:[%s2484_s9 + $0x78] ss:$20 sps:$4 sm:$0xff]   ;;  %v2327_v53 = vld [vmem:[%s2484_s9 + $0x8] ss:$20 sps:$4 sm:$0xff]  }
  0x19   : > { %1965 = vmatpush3.bf16.msra.mxu0 %v2274_v7  ;;  %2253 = vmatpush3.bf16.msra.mxu1 %v2274_v7  ;;  %v2312_v40 = vld [vmem:[%s3014_s1 + $0xd0] sm:$0xff]   ;;  %v2319_v45 = vld [vmem:[%s2484_s9 + $0x258] ss:$20 sps:$4 sm:$0xff]   ;;  %v2322_v49 = vld [vmem:[%s3014_s1 + $0xc0] sm:$0xff]  }
  0x1a   : > { %1966 = vmatprep.subr.bf16.mxu0 %v2275_v8  ;;  %2246 = vmatprep.subr.bf16.mxu1 %v2275_v8  ;;  %v2314_v41 = vld [vmem:[%s2484_s9 + $0x7c] ss:$20 sps:$4 sm:$0xff]   ;;  %v2320_v46 = vld [vmem:[%s3014_s1 + $0xc8] sm:$0xff]   ;;  %v2325_v50 = vld [vmem:[%s2484_s9 + $0xa4] ss:$20 sps:$4 sm:$0xff]  }
  0x1b   : > { %v2316_v42 = vld [vmem:[%s2484_s9 + $0x25c] ss:$20 sps:$4 sm:$0xff]   ;;  %v2343_v47 = vld [vmem:[%s3014_s1 + $0x108] sm:$0xff]   ;;  %v2324_v52 = vld [vmem:[%s3014_s1 + $0x80] sm:$0xff]  }
  0x1c   : > { %v2313_v43 = vld [vmem:[%s3014_s1 + $0x90] sm:$0xff]   ;;  %v2321_v48 = vld [vmem:[%s3014_s1 + $0x88] sm:$0xff]   ;;  %v2362_v56 = vld [vmem:[%s3014_s1 + $0x100] sm:$0xff]  }
  0x1d   : > { %1967 = vmatpush3.bf16.msra.mxu0 %v2276_v9  ;;  %2254 = vmatpush3.bf16.msra.mxu1 %v2276_v9  ;;  %v2329_v51 = vld [vmem:[%s2484_s9 + $0xc] ss:$20 sps:$4 sm:$0xff]   ;;  %v2333_v57 = vld [vmem:[%s2484_s9 + $0x34] ss:$20 sps:$4 sm:$0xff]   ;;  %v2336_v59 = vld [vmem:[%s2484_s9 + $0x30] ss:$20 sps:$4 sm:$0xff]  }
  0x1e   : > { %1968 = vmatprep.subr.bf16.mxu0 %v2277_v10  ;;  %2247 = vmatprep.subr.bf16.mxu1 %v2277_v10  ;;  %v2330_v54 = vld [vmem:[%s2484_s9 + $0xa0] ss:$20 sps:$4 sm:$0xff]   ;;  %v2335_v58 = vld [vmem:[%s2484_s9 + $0xc8] ss:$20 sps:$4 sm:$0xff]   ;;  %v2341_v62 = vld [vmem:[%s2484_s9 + $0xf0] ss:$20 sps:$4 sm:$0xff]  }
  0x1f   : > { %v2331_v55 = vld [vmem:[%s2484_s9 + $0xcc] ss:$20 sps:$4 sm:$0xff]   ;;  %v2337_v60 = vld [vmem:[%s2484_s9 + $0xf4] ss:$20 sps:$4 sm:$0xff]   ;;  %v2339_v61 = vld [vmem:[%s2484_s9 + $0x5c] ss:$20 sps:$4 sm:$0xff]  }
  0x20   : > { %v2342_v63 = vld [vmem:[%s2484_s9 + $0x58] ss:$20 sps:$4 sm:$0xff]   ;;  %v2344_v0 = vld [vmem:[%s2484_s9 + $0x11c] ss:$20 sps:$4 sm:$0xff]   ;;  %v2349_v3 = vld [vmem:[%s2484_s9 + $0x80] ss:$20 sps:$4 sm:$0xff]  }
  0x21   : > { %1969 = vmatpush3.bf16.msra.mxu0 %v2278_v13  ;;  %2255 = vmatpush3.bf16.msra.mxu1 %v2278_v13  ;;  %v2346_v1 = vld [vmem:[%s2484_s9 + $0x84] ss:$20 sps:$4 sm:$0xff]   ;;  %v2352_v5 = vld [vmem:[%s2484_s9 + $0xac] ss:$20 sps:$4 sm:$0xff]   ;;  %v2355_v7 = vld [vmem:[%s2484_s9 + $0xa8] ss:$20 sps:$4 sm:$0xff]  }
  0x22   : > { %1970 = vmatprep.subr.bf16.mxu0 %v2279_v14  ;;  %2248 = vmatprep.subr.bf16.mxu1 %v2279_v14  ;;  %v2348_v2 = vld [vmem:[%s2484_s9 + $0x118] ss:$20 sps:$4 sm:$0xff]   ;;  %v2354_v6 = vld [vmem:[%s2484_s9 + $0x140] ss:$20 sps:$4 sm:$0xff]   ;;  %v2360_v10 = vld [vmem:[%s2484_s9 + $0x168] ss:$20 sps:$4 sm:$0xff]  }
  0x23   : > { %v2350_v4 = vld [vmem:[%s2484_s9 + $0x144] ss:$20 sps:$4 sm:$0xff]   ;;  %v2356_v8 = vld [vmem:[%s2484_s9 + $0x16c] ss:$20 sps:$4 sm:$0xff]   ;;  %v2358_v9 = vld [vmem:[%s2484_s9 + $0xd4] ss:$20 sps:$4 sm:$0xff]  }
  0x24   : > { %v2361_v11 = vld [vmem:[%s2484_s9 + $0xd0] ss:$20 sps:$4 sm:$0xff]   ;;  %v2363_v12 = vld [vmem:[%s2484_s9 + $0x194] ss:$20 sps:$4 sm:$0xff]  }
  0x25   : > { %1971 = vmatpush3.bf16.msra.mxu0 %v2280_v15  ;;  %2256 = vmatpush3.bf16.msra.mxu1 %v2280_v15  ;;  %v2365_v13 = vld [vmem:[%s2484_s9 + $0xfc] ss:$20 sps:$4 sm:$0xff]   ;;  %v2368_v15 = vld [vmem:[%s2484_s9 + $0xf8] ss:$20 sps:$4 sm:$0xff]  }
  0x26   : > { %1972 = vmatprep.subr.bf16.mxu0 %v2281_v16  ;;  %2249 = vmatprep.subr.bf16.mxu1 %v2281_v16  ;;  %v2367_v14 = vld [vmem:[%s2484_s9 + $0x190] ss:$20 sps:$4 sm:$0xff]  }
  0x27   : > { %v2369_v16 = vld [vmem:[%s2484_s9 + $0x1bc] ss:$20 sps:$4 sm:$0xff]  }
  0x29   : > { %1973 = vmatpush3.bf16.msra.mxu0 %v2282_v17  ;;  %2257 = vmatpush3.bf16.msra.mxu1 %v2282_v17  ;;  %v2371_v17 = vld [vmem:[%s2484_s9 + $0x124] ss:$20 sps:$4 sm:$0xff]  }
  0x2a   : > { %2070 = vmatprep.subr.bf16.mxu1 %v2289_v18  ;;  %2202 = vmatprep.subr.bf16.mxu0 %v2292_v19  ;;  %v2373_v18 = vld [vmem:[%s2484_s9 + $0x1b8] ss:$20 sps:$4 sm:$0xff]  }
  0x2c   : > { %1051 = vmatmul.mubr.bf16.vlgmr.msra.gmra.mxu0 %v2283_v20  ;;  %1147 = vmatmul.mubr.bf16.vlgmr.msra.gmra.mxu1 %v2286_v21  ;;  %v2375_v20 = vld [vmem:[%s2484_s9 + $0x14c] ss:$20 sps:$4 sm:$0xff]   ;;  %v2377_v21 = vld [vmem:[%s2484_s9 + $0x10] ss:$20 sps:$4 sm:$0xff]  }
  0x2d   : > { %2071 = vmatpush3.bf16.msra.mxu1 %v2290_v22  ;;  %2203 = vmatpush3.bf16.msra.mxu0 %v2292_v19  ;;  %v2374_v19 = vld [vmem:[%s2484_s9 + $0x120] ss:$20 sps:$4 sm:$0xff]   ;;  %v2378_v22 = vld [vmem:[%s2484_s9 + $0x148] ss:$20 sps:$4 sm:$0xff]  }
  0x2e   : > { %2072 = vmatprep.subr.bf16.mxu1 %v2291_v23  ;;  %1058 = vmatprep.mubr.bf16.mxu0 %v2294_v24  ;;  %v2379_v23 = vld [vmem:[%s2484_s9 + $0x38] ss:$20 sps:$4 sm:$0xff]   ;;  %v2380_v24 = vld [vmem:[%s2484_s9 + $0x174] ss:$20 sps:$4 sm:$0xff]  }
  0x2f   : > { %1154 = vmatprep.mubr.bf16.mxu1 %v2296_v25  ;;  %2204 = vmatprep.subr.bf16.mxu0 %v2323_v35  ;;  %v2382_v25 = vld [vmem:[%s2484_s9 + $0x60] ss:$20 sps:$4 sm:$0xff]  }
  0x31   : > { %2073 = vmatpush3.bf16.msra.mxu1 %v2293_v26  ;;  %2205 = vmatpush3.bf16.msra.mxu0 %v2323_v35  ;;  %v2383_v26 = vld [vmem:[%s2484_s9 + $0x170] ss:$20 sps:$4 sm:$0xff]   ;;  %v2394_v35 = vld [vmem:[%s2484_s9 + $0x128] ss:$20 sps:$4 sm:$0xff]  }
  0x32   : > { %2074 = vmatprep.subr.bf16.mxu1 %v2300_v28  ;;  %2206 = vmatprep.subr.bf16.mxu0 %v2343_v47  ;;  %v2385_v28 = vld [vmem:[%s2484_s9 + $0x19c] ss:$20 sps:$4 sm:$0xff]  }
  0x34   : > { %1059 = vmatmul.mubr.bf16.gmra.mxu0 %v2298_v27  ;;  %1155 = vmatmul.mubr.bf16.gmra.mxu1 %v2299_v29  ;;  %v2384_v27 = vld [vmem:[%s2484_s9 + $0x88] ss:$20 sps:$4 sm:$0xff]   ;;  %v2387_v29 = vld [vmem:[%s2484_s9 + $0xb0] ss:$20 sps:$4 sm:$0xff]  }
  0x35   : > { %2075 = vmatpush3.bf16.msra.mxu1 %v2301_v30  ;;  %1066 = vmatprep.mubr.bf16.mxu0 %v2304_v32  ;;  %v2388_v30 = vld [vmem:[%s2484_s9 + $0x198] ss:$20 sps:$4 sm:$0xff]  }
  0x36   : > { %2076 = vmatprep.subr.bf16.mxu1 %v2302_v31  ;;  %1162 = vmatprep.mubr.bf16.mxu1 %v2306_v33  ;;  %v2389_v31 = vld [vmem:[%s2484_s9 + $0xd8] ss:$20 sps:$4 sm:$0xff]   ;;  %v2392_v33 = vld [vmem:[%s2484_s9 + $0x100] ss:$20 sps:$4 sm:$0xff]  }
  0x37   : > { %2207 = vmatpush3.bf16.msra.mxu0 %v2343_v47  ;;  %v2390_v32 = vld [vmem:[%s2484_s9 + $0x1c4] ss:$20 sps:$4 sm:$0xff]  }
  0x38   : > { %2208 = vmatprep.subr.bf16.mxu0 %v2362_v56  ;;  %v2409_v47 = vld [vmem:[%s2484_s9 + $0x218] ss:$20 sps:$4 sm:$0xff]  }
  0x39   : > { %2077 = vmatpush3.bf16.msra.mxu1 %v2303_v34  ;;  %v2393_v34 = vld [vmem:[%s2484_s9 + $0x1c0] ss:$20 sps:$4 sm:$0xff]  }
  0x3a   : > { %2078 = vmatprep.subr.bf16.mxu1 %v2310_v37  ;;  %v2397_v37 = vld [vmem:[%s2484_s9 + $0x150] ss:$20 sps:$4 sm:$0xff]  }
  0x3b   : > { %2209 = vmatpush3.bf16.msra.mxu0 %v2362_v56 }
  0x3c   : > { %1067 = vmatmul.mubr.bf16.gmra.mxu0 %v2308_v36  ;;  %1163 = vmatmul.mubr.bf16.gmra.mxu1 %v2309_v38  ;;  %v2395_v36 = vld [vmem:[%s2484_s9 + $0x1ec] ss:$20 sps:$4 sm:$0xff]   ;;  %v2398_v38 = vld [vmem:[%s2484_s9 + $0x1e8] ss:$20 sps:$4 sm:$0xff]  }
  0x3d   : > { %2079 = vmatpush3.bf16.msra.mxu1 %v2311_v39  ;;  %1074 = vmatprep.mubr.bf16.mxu0 %v2314_v41  ;;  %v2399_v39 = vld [vmem:[%s2484_s9 + $0x178] ss:$20 sps:$4 sm:$0xff]   ;;  %v2402_v41 = vld [vmem:[%s2484_s9 + $0x1a0] ss:$20 sps:$4 sm:$0xff]  }
  0x3e   : > { %2080 = vmatprep.subr.bf16.mxu1 %v2312_v40  ;;  %1170 = vmatprep.mubr.bf16.mxu1 %v2316_v42  ;;  %v2400_v40 = vld [vmem:[%s2484_s9 + $0x214] ss:$20 sps:$4 sm:$0xff]   ;;  %v2403_v42 = vld [vmem:[%s2484_s9 + $0x210] ss:$20 sps:$4 sm:$0xff]  }
  0x41   : > { %2081 = vmatpush3.bf16.msra.mxu1 %v2313_v43  ;;  %v2404_v43 = vld [vmem:[%s2484_s9 + $0x1c8] ss:$20 sps:$4 sm:$0xff]  }
  0x42   : > { %2082 = vmatprep.subr.bf16.mxu1 %v2320_v46  ;;  %v2408_v46 = vld [vmem:[%s2484_s9 + $0x238] ss:$20 sps:$4 sm:$0xff]  }
  0x44   : > { %1075 = vmatmul.mubr.bf16.gmra.mxu0 %v2318_v44  ;;  %1171 = vmatmul.mubr.bf16.gmra.mxu1 %v2319_v45  ;;  %v2405_v44 = vld [vmem:[%s2484_s9 + $0x23c] ss:$20 sps:$4 sm:$0xff]  }
  0x45   : > { %2083 = vmatpush3.bf16.msra.mxu1 %v2321_v48  ;;  %1082 = vmatprep.mubr.bf16.mxu0 %v2325_v50  ;;  %v2407_v45 = vld [vmem:[%s2484_s9 + $0x1f0] ss:$20 sps:$4 sm:$0xff]   ;;  %v2413_v50 = vld [vmem:[%s2484_s9 + $0x260] ss:$20 sps:$4 sm:$0xff]  }
  0x46   : > { %2084 = vmatprep.subr.bf16.mxu1 %v2322_v49  ;;  %1211 = vmatprep.mubr.bf16.mxu1 %v2329_v51  ;;  %v2410_v48 = vld [vmem:[%s2484_s9 + $0x264] ss:$20 sps:$4 sm:$0xff]   ;;  %v2412_v49 = vld [vmem:[%s2484_s9 + $0x240] ss:$20 sps:$4 sm:$0xff]   ;;  %v2414_v51 = vld [vmem:[%s2484_s9 + $0x268] ss:$20 sps:$4 sm:$0xff]  }
  0x49   : > { %2085 = vmatpush3.bf16.msra.mxu1 %v2324_v52 }
  0x4c   : > { %1083 = vmatmul.mubr.bf16.gmra.mxu0 %v2330_v54  ;;  %1212 = vmatmul.mubr.bf16.vlgmr.msra.gmra.mxu1 %v2327_v53 }
  0x4d   : > { %1090 = vmatprep.mubr.bf16.mxu0 %v2331_v55  ;;  %1219 = vmatprep.mubr.bf16.mxu1 %v2333_v57 }
  0x54   : > { %1091 = vmatmul.mubr.bf16.gmra.mxu0 %v2335_v58  ;;  %1220 = vmatmul.mubr.bf16.gmra.mxu1 %v2336_v59 }
  0x55   : > { %1098 = vmatprep.mubr.bf16.mxu0 %v2337_v60  ;;  %1227 = vmatprep.mubr.bf16.mxu1 %v2339_v61 }
  0x5c   : > { %1099 = vmatmul.mubr.bf16.gmra.mxu0 %v2341_v62  ;;  %1228 = vmatmul.mubr.bf16.gmra.mxu1 %v2342_v63 }
  0x5d   : > { %1106 = vmatprep.mubr.bf16.mxu0 %v2344_v0  ;;  %1235 = vmatprep.mubr.bf16.mxu1 %v2346_v1 }
  0x64   : > { %1107 = vmatmul.mubr.bf16.gmra.mxu0 %v2348_v2  ;;  %1236 = vmatmul.mubr.bf16.gmra.mxu1 %v2349_v3 }
  0x65   : > { %1114 = vmatprep.mubr.bf16.mxu0 %v2350_v4  ;;  %1243 = vmatprep.mubr.bf16.mxu1 %v2352_v5 }
  0x6c   : > { %1115 = vmatmul.mubr.bf16.gmra.mxu0 %v2354_v6  ;;  %1244 = vmatmul.mubr.bf16.gmra.mxu1 %v2355_v7 }
  0x6d   : > { %1122 = vmatprep.mubr.bf16.mxu0 %v2356_v8  ;;  %1251 = vmatprep.mubr.bf16.mxu1 %v2358_v9 }
  0x74   : > { %1123 = vmatmul.mubr.bf16.gmra.mxu0 %v2360_v10  ;;  %1252 = vmatmul.mubr.bf16.gmra.mxu1 %v2361_v11 }
  0x75   : > { %1130 = vmatprep.mubr.bf16.mxu0 %v2363_v12  ;;  %1259 = vmatprep.mubr.bf16.mxu1 %v2365_v13 }
  0x7c   : > { %1131 = vmatmul.mubr.bf16.gmra.mxu0 %v2367_v14  ;;  %1260 = vmatmul.mubr.bf16.gmra.mxu1 %v2368_v15 }
  0x7d   : > { %1138 = vmatprep.mubr.bf16.mxu0 %v2369_v16  ;;  %1267 = vmatprep.mubr.bf16.mxu1 %v2371_v17 }
  0x84   : > { %1139 = vmatmul.mubr.bf16.gmra.mxu0 %v2373_v18  ;;  %1268 = vmatmul.mubr.bf16.gmra.mxu1 %v2374_v19 }
  0x85   : > { %1275 = vmatprep.mubr.bf16.mxu1 %v2375_v20  ;;  %2210 = vmatprep.mubr.msk.bf16.mxu0 %vm969_vm0, %v2377_v21 }
  0x8c   : > { %1276 = vmatmul.mubr.bf16.gmra.mxu1 %v2378_v22  ;;  %2211 = vmatmul.mubr.msk.bf16.vlgmr.msra.gmra.mxu0 %vm969_vm0, %v2379_v23 }
  0x8d   : > { %1283 = vmatprep.mubr.bf16.mxu1 %v2380_v24  ;;  %2214 = vmatprep.mubr.msk.bf16.mxu0 %vm969_vm0, %v2382_v25 }
  0x94   : > { %1284 = vmatmul.mubr.bf16.gmra.mxu1 %v2383_v26  ;;  %2215 = vmatmul.mubr.msk.bf16.gmra.mxu0 %vm969_vm0, %v2384_v27 }
  0x95   : > { %1291 = vmatprep.mubr.bf16.mxu1 %v2385_v28  ;;  %2218 = vmatprep.mubr.msk.bf16.mxu0 %vm969_vm0, %v2387_v29 }
  0x9c   : > { %1292 = vmatmul.mubr.bf16.gmra.mxu1 %v2388_v30  ;;  %2219 = vmatmul.mubr.msk.bf16.gmra.mxu0 %vm969_vm0, %v2389_v31 }
  0x9d   : > { %1299 = vmatprep.mubr.bf16.mxu1 %v2390_v32  ;;  %2222 = vmatprep.mubr.msk.bf16.mxu0 %vm969_vm0, %v2392_v33 }
  0xa4   : > { %1300 = vmatmul.mubr.bf16.gmra.mxu1 %v2393_v34  ;;  %2223 = vmatmul.mubr.msk.bf16.gmra.mxu0 %vm969_vm0, %v2394_v35 }
  0xa5   : > { %1307 = vmatprep.mubr.bf16.mxu1 %v2395_v36  ;;  %2226 = vmatprep.mubr.msk.bf16.mxu0 %vm969_vm0, %v2397_v37 }
  0xac   : > { %1308 = vmatmul.mubr.bf16.gmra.mxu1 %v2398_v38  ;;  %2227 = vmatmul.mubr.msk.bf16.gmra.mxu0 %vm969_vm0, %v2399_v39 }
  0xad   : > { %1315 = vmatprep.mubr.bf16.mxu1 %v2400_v40  ;;  %2230 = vmatprep.mubr.msk.bf16.mxu0 %vm969_vm0, %v2402_v41 }
  0xb4   : > { %1316 = vmatmul.mubr.bf16.gmra.mxu1 %v2403_v42  ;;  %2231 = vmatmul.mubr.msk.bf16.gmra.mxu0 %vm969_vm0, %v2404_v43 }
  0xb5   : > { %1323 = vmatprep.mubr.bf16.mxu1 %v2405_v44  ;;  %2234 = vmatprep.mubr.msk.bf16.mxu0 %vm969_vm0, %v2407_v45 }
  0xbc   : > { %1324 = vmatmul.mubr.bf16.gmra.mxu1 %v2408_v46  ;;  %2235 = vmatmul.mubr.msk.bf16.gmra.mxu0 %vm969_vm0, %v2409_v47 }
  0xbd   : > { %1331 = vmatprep.mubr.bf16.mxu1 %v2410_v48  ;;  %2238 = vmatprep.mubr.msk.bf16.mxu0 %vm969_vm0, %v2412_v49 }
  0xc4   : > { %1332 = vmatmul.mubr.bf16.gmra.mxu1 %v2413_v50  ;;  %2239 = vmatmul.mubr.msk.bf16.gmra.mxu0 %vm969_vm0, %v2414_v51 }
  0xec   : > { %v1974_v52 = vpop.f32.mrf.mxu0  ;;  %v2046_v53 = vpop.f32.mrf.mxu1 }
  0xee   : > { %v1975_v54 = vpop.f32.mrf.mxu0  ;;  %v2047_v55 = vpop.f32.mrf.mxu1 }
  0xef   : > { %v2663_v56 = vadd.f32 %v1975_v54, %v1974_v52  ;;  %v2665_v57 = vadd.f32 %v2047_v55, %v2046_v53 }
  0xf0   : > { %v1977_v58 = vpop.f32.mrf.mxu0  ;;  %v2049_v59 = vpop.f32.mrf.mxu1 }
  0xf1   : > { %3017 = vst [vmem:[#allocation2_spill] sm:$0xff] %v2665_v57 }
  0xf2   : > { %v1978_v60 = vpop.f32.mrf.mxu0  ;;  %v2050_v61 = vpop.f32.mrf.mxu1 }
  0xf3   : > { %v2667_v62 = vadd.f32 %v1978_v60, %v1977_v58  ;;  %v2669_v63 = vadd.f32 %v2050_v61, %v2049_v59 }
  0xf4   : > { %v1980_v0 = vpop.f32.mrf.mxu0  ;;  %v2052_v1 = vpop.f32.mrf.mxu1 }
  0xf5   : > { %3018 = vst [vmem:[#allocation3_spill] sm:$0xff] %v2669_v63 }
  0xf6   : > { %v1981_v2 = vpop.f32.mrf.mxu0  ;;  %v2053_v3 = vpop.f32.mrf.mxu1 }
  0xf7   : > { %v2671_v4 = vadd.f32 %v1981_v2, %v1980_v0  ;;  %v2673_v5 = vadd.f32 %v2053_v3, %v2052_v1 }
  0xf8   : > { %v1983_v6 = vpop.f32.mrf.mxu0  ;;  %v2055_v7 = vpop.f32.mrf.mxu1 }
  0xf9   : > { %3019 = vst [vmem:[#allocation4_spill] sm:$0xff] %v2673_v5  ;;  %v2794_v5 = vld [vmem:[%s3015_s2] ss:$0 sm:$0xff] }
  0xfa   : > { %v1984_v8 = vpop.f32.mrf.mxu0  ;;  %v2056_v9 = vpop.f32.mrf.mxu1 }
  0xfb   : > { %v2675_v10 = vadd.f32 %v1984_v8, %v1983_v6  ;;  %v2677_v11 = vadd.f32 %v2056_v9, %v2055_v7 }
  0xfc   : > { %v1986_v12 = vpop.f32.mrf.mxu0  ;;  %v2058_v13 = vpop.f32.mrf.mxu1 }
  0xfd   : > { %3020 = vst [vmem:[#allocation5_spill] sm:$0xff] %v2677_v11 }
  0xfe   : > { %v1987_v14 = vpop.f32.mrf.mxu0  ;;  %v2059_v15 = vpop.f32.mrf.mxu1 }
  0xff   : > { %v2679_v16 = vadd.f32 %v1987_v14, %v1986_v12  ;;  %v2681_v17 = vadd.f32 %v2059_v15, %v2058_v13 }
 0x100   : > { %v1989_v18 = vpop.f32.mrf.mxu0  ;;  %v2061_v19 = vpop.f32.mrf.mxu1 }
 0x101   : > { %3021 = vst [vmem:[#allocation6_spill] sm:$0xff] %v2681_v17 }
 0x102   : > { %v1990_v20 = vpop.f32.mrf.mxu0  ;;  %v2062_v21 = vpop.f32.mrf.mxu1 }
 0x103   : > { %v2683_v22 = vadd.f32 %v1990_v20, %v1989_v18  ;;  %v2685_v23 = vadd.f32 %v2062_v21, %v2061_v19 }
 0x104   : > { %v1992_v24 = vpop.f32.mrf.mxu0  ;;  %v2064_v25 = vpop.f32.mrf.mxu1 }
 0x105   : > { %3022 = vst [vmem:[#allocation7_spill] sm:$0xff] %v2685_v23 }
 0x106   : > { %v1993_v26 = vpop.f32.mrf.mxu0  ;;  %v2065_v27 = vpop.f32.mrf.mxu1 }
 0x107   : > { %v2687_v28 = vadd.f32 %v1993_v26, %v1992_v24  ;;  %v2689_v29 = vadd.f32 %v2065_v27, %v2064_v25 }
 0x108   : > { %v1995_v30 = vpop.f32.mrf.mxu0  ;;  %v2067_v31 = vpop.f32.mrf.mxu1 }
 0x109   : > { %3023 = vst [vmem:[#allocation8_spill] sm:$0xff] %v2689_v29 }
 0x10a   : > { %v1996_v32 = vpop.f32.mrf.mxu0  ;;  %v2068_v33 = vpop.f32.mrf.mxu1 }
 0x10b   : > { %v2691_v34 = vadd.f32 %v1996_v32, %v1995_v30  ;;  %v2693_v35 = vadd.f32 %v2068_v33, %v2067_v31 }
 0x10c   : > { %v1998_v36 = vpop.f32.mrf.mxu0  ;;  %v2695_v37 = vpop.f32.mrf.mxu1 }
 0x10d   : > { %3024 = vst [vmem:[#allocation9_spill] sm:$0xff] %v2693_v35 }
 0x10e   : > { %v1999_v38 = vpop.f32.mrf.mxu0  ;;  %v2697_v39 = vpop.f32.mrf.mxu1 }
 0x10f   : > { %v2699_v40 = vadd.f32 %v1999_v38, %v1998_v36 }
 0x110   : > { %v2001_v41 = vpop.f32.mrf.mxu0  ;;  %v2701_v42 = vpop.f32.mrf.mxu1 }
 0x112   : > { %v2002_v43 = vpop.f32.mrf.mxu0  ;;  %v2703_v44 = vpop.f32.mrf.mxu1 }
 0x113   : > { %v2705_v45 = vadd.f32 %v2002_v43, %v2001_v41 }
 0x114   : > { %v2004_v46 = vpop.f32.mrf.mxu0  ;;  %v2092_v47 = vpop.f32.mrf.mxu1 }
 0x116   : > { %v2005_v48 = vpop.f32.mrf.mxu0  ;;  %v2093_v49 = vpop.f32.mrf.mxu1 }
 0x117   : > { %v2707_v50 = vadd.f32 %v2005_v48, %v2004_v46  ;;  %v2094_v57 = vadd.f32 %v2093_v49, %v2092_v47  ;;  %v1053_v47 = vadd.f32 %v2663_v56, %v2794_v5 }
 0x118   : > { %v2007_v51 = vpop.f32.mrf.mxu0  ;;  %v2095_v52 = vpop.f32.mrf.mxu1 }
 0x11a   : > { %v2008_v53 = vpop.f32.mrf.mxu0  ;;  %v2096_v54 = vpop.f32.mrf.mxu1 }
 0x11b   : > { %v2709_v55 = vadd.f32 %v2008_v53, %v2007_v51  ;;  %v2097_v49 = vadd.f32 %v2096_v54, %v2095_v52 }
 0x11c   : > { %v2010_v58 = vpop.f32.mrf.mxu0  ;;  %v2711_v59 = vpop.f32.mrf.mxu1 }
 0x11e   : > { %v2011_v60 = vpop.f32.mrf.mxu0  ;;  %v2713_v61 = vpop.f32.mrf.mxu1 }
 0x11f   : > { %v2715_v0 = vadd.f32 %v2011_v60, %v2010_v58 }
 0x120   : > { %v2013_v1 = vpop.f32.mrf.mxu0  ;;  %v2717_v2 = vpop.f32.mrf.mxu1 }
 0x122   : > { %v2014_v3 = vpop.f32.mrf.mxu0  ;;  %v2719_v6 = vpop.f32.mrf.mxu1 }
 0x123   : > { %v2721_v7 = vadd.f32 %v2014_v3, %v2013_v1 }
 0x124   : > { %v2723_v8 = vpop.f32.mrf.mxu0  ;;  %v2104_v9 = vpop.f32.mrf.mxu1 }
 0x126   : > { %v2725_v12 = vpop.f32.mrf.mxu0  ;;  %v2105_v13 = vpop.f32.mrf.mxu1 }
 0x127   : > { %v2106_v52 = vadd.f32 %v2105_v13, %v2104_v9  ;;  %v2100_v9 = vadd.f32 %v2713_v61, %v2711_v59  ;;  %v1080_v61 = vadd.f32 %v2691_v34, %v2794_v5 }
 0x128   : > { %v2727_v14 = vpop.f32.mrf.mxu0  ;;  %v2729_v15 = vpop.f32.mrf.mxu1 }
 0x12a   : > { %v2731_v18 = vpop.f32.mrf.mxu0  ;;  %v2733_v19 = vpop.f32.mrf.mxu1 }
 0x12c   : > { %v2735_v20 = vpop.f32.mrf.mxu0  ;;  %v2737_v21 = vpop.f32.mrf.mxu1 }
 0x12e   : > { %v2739_v24 = vpop.f32.mrf.mxu0  ;;  %v2741_v25 = vpop.f32.mrf.mxu1 }
 0x130   : > { %v2743_v26 = vpop.f32.mrf.mxu0  ;;  %v2745_v27 = vpop.f32.mrf.mxu1 }
 0x131   : > { %3025 = vst [vmem:[#allocation10_spill] sm:$0xff] %v2743_v26 }
 0x132   : > { %v2747_v30 = vpop.f32.mrf.mxu0  ;;  %v2749_v31 = vpop.f32.mrf.mxu1 }
 0x133   : > { %3026 = vst [vmem:[#allocation11_spill] sm:$0xff] %v2747_v30 }
 0x134   : > { %v2751_v32 = vpop.f32.mrf.mxu0  ;;  %v2753_v33 = vpop.f32.mrf.mxu1 }
 0x136   : > { %v2755_v36 = vpop.f32.mrf.mxu0  ;;  %v2757_v38 = vpop.f32.mrf.mxu1 }
 0x138   : > { %v2759_v41 = vpop.f32.mrf.mxu0  ;;  %v2761_v43 = vpop.f32.mrf.mxu1 }
 0x139   : > { %3027 = vst [vmem:[#allocation12_spill] sm:$0xff] %v2759_v41 }
 0x13a   : > { %v2763_v46 = vpop.f32.mrf.mxu0  ;;  %v2765_v48 = vpop.f32.mrf.mxu1 }
 0x13b   : > { %3028 = vst [vmem:[#allocation13_spill] sm:$0xff] %v2763_v46 }
 0x13c   : > { %v2767_v51 = vpop.f32.mrf.mxu0  ;;  %v2769_v53 = vpop.f32.mrf.mxu1 }
 0x13d   : > { %3029 = vst [vmem:[#allocation14_spill] sm:$0xff] %v2767_v51  ;;  %v2088_v51 = vadd.f32 %v2697_v39, %v2695_v37 }
 0x13e   : > { %v2771_v58 = vpop.f32.mrf.mxu0  ;;  %v2773_v60 = vpop.f32.mrf.mxu1 }
 0x13f   : > { %3030 = vst [vmem:[#allocation15_spill] sm:$0xff] %v2771_v58  ;;  %v1061_v58 = vadd.f32 %v2671_v4, %v2794_v5  ;;  %v1064_v4 = vadd.f32 %v2675_v10, %v2794_v5  ;;  %v1214_v39 = vadd.f32 %v2088_v51, %v1053_v47  ;;  %v2109_v51 = vadd.f32 %v2733_v19, %v2729_v15 }
 0x140   : > { %v2775_v1 = vpop.f32.mrf.mxu0  ;;  %v2777_v3 = vpop.f32.mrf.mxu1 }
 0x141   : > { %3031 = vst [vmem:[#allocation16_spill] sm:$0xff] %v2775_v1  ;;  %v1222_v30 = vadd.f32 %v2094_v57, %v1061_v58  ;;  %v1225_v58 = vadd.f32 %v2097_v49, %v1064_v4  ;;  %v1241_v34 = vadd.f32 %v2109_v51, %v1080_v61  ;;  %v2121_v51 = vadd.f32 %v2765_v48, %v2761_v43 }
 0x142   : > { %v2779_v35 = vpop.f32.mrf.mxu0  ;;  %v2781_v29 = vpop.f32.mrf.mxu1 }
 0x143   : > { %3032 = vst [vmem:[#allocation17_spill] sm:$0xff] %v2779_v35 }
 0x144   : > { %v2783_v23 = vpop.f32.mrf.mxu0  ;;  %v2785_v17 = vpop.f32.mrf.mxu1 }
 0x145   : > { %3033 = vst [vmem:[#allocation18_spill] sm:$0xff] %v2783_v23 }
 0x146   : > { %v2787_v63 = vpop.f32.mrf.mxu0  ;;  %v2789_v11 = vpop.f32.mrf.mxu1 }
 0x147   : > { %3034 = vst [vmem:[#allocation19_spill] sm:$0xff] %v2787_v63 }
 0x148   : > { %v2796_v1 = vpop.f32.mrf.mxu0  ;;  %v2798_v35 = vpop.f32.mrf.mxu1 }
 0x149   : > { %3035 = vst [vmem:[#allocation20_spill] sm:$0xff] %v2796_v1  ;;  %v2091_v1 = vadd.f32 %v2703_v44, %v2701_v42  ;;  %v1077_v42 = vadd.f32 %v2687_v28, %v2794_v5  ;;  %v1069_v28 = vadd.f32 %v2679_v16, %v2794_v5 }
 0x14a   : > { %v2804_v63 = vpop.f32.mrf.mxu0  ;;  %v2806_v23 = vpop.f32.mrf.mxu1 }
 0x14b   : > { %3036 = vst [vmem:[#allocation21_spill] sm:$0xff] %v2804_v63  ;;  %v1056_v63 = vadd.f32 %v2667_v62, %v2794_v5  ;;  %v1238_v59 = vadd.f32 %v2106_v52, %v1077_v42 }
 0x14c   : > { %v2812_v26 = vpop.f32.mrf.mxu1  ;;  %v2212_v46 = vpop.f32.mrf.mxu0 }
 0x14d   : > { %v1383_v37 = vadd.f32 %v2212_v46, %v1222_v30  ;;  %v1217_v44 = vadd.f32 %v2091_v1, %v1056_v63 }
 0x14e   : > { %v2819_v41 = vpop.f32.mrf.mxu1  ;;  %v1374_v56 = vpop.f32.mrf.mxu0 }
 0x14f   : > { %v1503_v57 = vmax.f32 %v1383_v37, 0.0  ;;  %v1375_v54 = vadd.f32 %v1374_v56, %v1214_v39  ;;  %v2103_v37 = vadd.f32 %v2719_v6, %v2717_v2  ;;  %v2118_v2 = vadd.f32 %v2757_v38, %v2753_v33 }
 0x150   : > { %v2828_v10 = vpop.f32.mrf.mxu1  ;;  %v2213_v62 = vpop.f32.mrf.mxu0 }
 0x151   : > { %v1928_v13 = vpack.c.bf16 %v1503_v57, %v1503_v57  ;;  %v1501_v30 = vmax.f32 %v1375_v54, 0.0  ;;  %v1386_v46 = vadd.f32 %v2213_v62, %v1225_v58  ;;  %v1230_v57 = vadd.f32 %v2100_v9, %v1069_v28 }
 0x152   : > { %v2836_v47 = vpop.f32.mrf.mxu1  ;;  %v1377_v49 = vpop.f32.mrf.mxu0  ;;  %v1072_v54 = vadd.f32 %v2683_v22, %v2794_v5  ;;  %v1085_v28 = vadd.f32 %v2699_v40, %v2794_v5  ;;  %v2115_v40 = vadd.f32 %v2749_v31, %v2745_v27 }
 0x153   : > { %1664 = vst.msk [vmem:[%s2826_s22 + $0x8] sm:$0xf] %vm1661_vm1, %v1928_v13  ;;  %v1926_v4 = vpack.c.bf16 %v1501_v30, %v1501_v30  ;;  %v1504_v63 = vmax.f32 %v1386_v46, 0.0  ;;  %v1378_v1 = vadd.f32 %v1377_v49, %v1217_v44  ;;  %v1093_v44 = vadd.f32 %v2707_v50, %v2794_v5 }
 0x154   : > { %v2844_v16 = vpop.f32.mrf.mxu1  ;;  %v2216_v39 = vpop.f32.mrf.mxu0  ;;  %v1233_v22 = vadd.f32 %v2103_v37, %v1072_v54  ;;  %v2112_v30 = vadd.f32 %v2741_v25, %v2737_v21 }
 0x155   : > { %1662 = vst.msk [vmem:[%s2826_s22] sm:$0xf] %vm1661_vm1, %v1926_v4  ;;  %v1929_v15 = vpack.c.bf16 %v1504_v63, %v1504_v63  ;;  %v1502_v19 = vmax.f32 %v1378_v1, 0.0  ;;  %v1399_v56 = vadd.f32 %v2216_v39, %v1238_v59  ;;  %v1254_v25 = vadd.f32 %v2118_v2, %v1093_v44 }
 0x156   : > { %v2850_v52 = vpop.f32.mrf.mxu1  ;;  %v1390_v58 = vpop.f32.mrf.mxu0  ;;  %v1096_v1 = vadd.f32 %v2709_v55, %v2794_v5  ;;  %v2018_v59 = vadd.f32 %v2725_v12, %v2723_v8  ;;  %v2130_v12 = vadd.f32 %v2789_v11, %v2785_v17  ;;  %v2133_v44 = vadd.f32 %v2806_v23, %v2798_v35 }
 0x157   : > { %1665 = vst.msk [vmem:[%s2826_s22 + $0xc] sm:$0xf] %vm1661_vm1, %v1929_v15  ;;  %v1927_v6 = vpack.c.bf16 %v1502_v19, %v1502_v19  ;;  %v1507_v42 = vmax.f32 %v1399_v56, 0.0  ;;  %v1391_v62 = vadd.f32 %v1390_v58, %v1230_v57  ;;  %v1246_v15 = vadd.f32 %v2112_v30, %v1085_v28 }
 0x158   : > { %v2858_v9 = vpop.f32.mrf.mxu1  ;;  %v2217_v13 = vpop.f32.mrf.mxu0  ;;  %v1088_v19 = vadd.f32 %v2705_v45, %v2794_v5  ;;  %v1257_v8 = vadd.f32 %v2121_v51, %v1096_v1  ;;  %v1109_v54 = vadd.f32 %v2018_v59, %v2794_v5  ;;  %v2021_v58 = vadd.f32 %v2731_v18, %v2727_v14  ;;  %v3037_v59 = vld [vmem:[#allocation12_spill] sm:$0xff] }
 0x159   : > { %1663 = vst.msk [vmem:[%s2826_s22 + $0x4] sm:$0xf] %vm1661_vm1, %v1927_v6  ;;  %v1932_v46 = vpack.c.bf16 %v1507_v42, %v1507_v42  ;;  %v1505_v33 = vmax.f32 %v1391_v62, 0.0  ;;  %v1402_v38 = vadd.f32 %v2217_v13, %v1241_v34  ;;  %v2124_v6 = vadd.f32 %v2773_v60, %v2769_v53 }
 0x15a   : > { %v2868_v50 = vpop.f32.mrf.mxu1  ;;  %v1393_v49 = vpop.f32.mrf.mxu0  ;;  %v1249_v2 = vadd.f32 %v2115_v40, %v1088_v19  ;;  %v1101_v62 = vadd.f32 %v2715_v0, %v2794_v5  ;;  %v1270_v60 = vadd.f32 %v2130_v12, %v1109_v54  ;;  %v1112_v30 = vadd.f32 %v2021_v58, %v2794_v5  ;;  %v3040_v19 = vld [vmem:[#allocation11_spill] sm:$0xff]  ;;  %v3041_v58 = vld [vmem:[#allocation18_spill] sm:$0xff] }
 0x15b   : > { %1668 = vst.msk [vmem:[%s2826_s22 + $0x18] sm:$0xf] %vm1661_vm1, %v1932_v46  ;;  %v1930_v4 = vpack.c.bf16 %v1505_v33, %v1505_v33  ;;  %v1508_v63 = vmax.f32 %v1402_v38, 0.0  ;;  %v1394_v21 = vadd.f32 %v1393_v49, %v1233_v22  ;;  %v2030_v46 = vadd.f32 %v2755_v36, %v2751_v32 }
 0x15c   : > { %v2878_v43 = vpop.f32.mrf.mxu1  ;;  %v2220_v48 = vpop.f32.mrf.mxu0  ;;  %v2127_v0 = vadd.f32 %v2781_v29, %v2777_v3  ;;  %v1262_v51 = vadd.f32 %v2124_v6, %v1101_v62  ;;  %v1104_v49 = vadd.f32 %v2721_v7, %v2794_v5  ;;  %v1273_v36 = vadd.f32 %v2133_v44, %v1112_v30  ;;  %v3038_v7 = vld [vmem:[#allocation13_spill] sm:$0xff] }
 0x15d   : > { %1666 = vst.msk [vmem:[%s2826_s22 + $0x10] sm:$0xf] %vm1661_vm1, %v1930_v4  ;;  %v1933_v61 = vpack.c.bf16 %v1508_v63, %v1508_v63  ;;  %v1506_v37 = vmax.f32 %v1394_v21, 0.0  ;;  %v1415_v39 = vadd.f32 %v2220_v48, %v1254_v25  ;;  %v2024_v4 = vadd.f32 %v2739_v24, %v2735_v20 }
 0x15e   : > { %v2884_v55 = vpop.f32.mrf.mxu1  ;;  %v1406_v56 = vpop.f32.mrf.mxu0  ;;  %v2142_v29 = vadd.f32 %v2850_v52, %v2844_v16  ;;  %v1125_v1 = vadd.f32 %v2030_v46, %v2794_v5  ;;  %v2033_v40 = vadd.f32 %v3038_v7, %v3037_v59  ;;  %v1265_v20 = vadd.f32 %v2127_v0, %v1104_v49 }
 0x15f   : > { %1669 = vst.msk [vmem:[%s2826_s22 + $0x1c] sm:$0xf] %vm1661_vm1, %v1933_v61  ;;  %v1931_v27 = vpack.c.bf16 %v1506_v37, %v1506_v37  ;;  %v1511_v31 = vmax.f32 %v1415_v39, 0.0  ;;  %v1407_v57 = vadd.f32 %v1406_v56, %v1246_v15  ;;  %v2136_v24 = vadd.f32 %v2819_v41, %v2812_v26  ;;  %v3039_v15 = vld [vmem:[#allocation10_spill] sm:$0xff] }
 0x160   : > { %v2893_v34 = vpop.f32.mrf.mxu1  ;;  %v2221_v45 = vpop.f32.mrf.mxu0  ;;  %v1117_v39 = vadd.f32 %v2024_v4, %v2794_v5  ;;  %v2027_v56 = vadd.f32 %v3040_v19, %v3039_v15  ;;  %v1128_v54 = vadd.f32 %v2033_v40, %v2794_v5  ;;  %v2139_v6 = vadd.f32 %v2836_v47, %v2828_v10 }
 0x161   : > { %1667 = vst.msk [vmem:[%s2826_s22 + $0x14] sm:$0xf] %vm1661_vm1, %v1931_v27  ;;  %v1936_v11 = vpack.c.bf16 %v1511_v31, %v1511_v31  ;;  %v1509_v17 = vmax.f32 %v1407_v57, 0.0  ;;  %v1418_v42 = vadd.f32 %v2221_v45, %v1257_v8  ;;  %v2145_v8 = vadd.f32 %v2868_v50, %v2858_v9  ;;  %v3042_v45 = vld [vmem:[#allocation19_spill] sm:$0xff] }
 0x162   : > { %v2903_v14 = vpop.f32.mrf.mxu1  ;;  %v1409_v18 = vpop.f32.mrf.mxu0  ;;  %v1286_v57 = vadd.f32 %v2142_v29, %v1125_v1  ;;  %v1278_v62 = vadd.f32 %v2136_v24, %v1117_v39  ;;  %v1120_v44 = vadd.f32 %v2027_v56, %v2794_v5 }
 0x163   : > { %1672 = vst.msk [vmem:[%s2826_s22 + $0x28] sm:$0xf] %vm1661_vm1, %v1936_v11  ;;  %v1934_v13 = vpack.c.bf16 %v1509_v17, %v1509_v17  ;;  %v1512_v22 = vmax.f32 %v1418_v42, 0.0  ;;  %v1410_v53 = vadd.f32 %v1409_v18, %v1249_v2  ;;  %v2042_v2 = vadd.f32 %v3042_v45, %v3041_v58  ;;  %v3043_v18 = vld [vmem:[#allocation14_spill] sm:$0xff] }
 0x164   : > { %v2152_v33 = vpop.f32.mrf.mxu1  ;;  %v2224_v23 = vpop.f32.mrf.mxu0  ;;  %v1289_v30 = vadd.f32 %v2145_v8, %v1128_v54  ;;  %v1281_v4 = vadd.f32 %v2139_v6, %v1120_v44  ;;  %v2151_v24 = vadd.f32 %v2903_v14, %v2893_v34 }
 0x165   : > { %1670 = vst.msk [vmem:[%s2826_s22 + $0x20] sm:$0xf] %vm1661_vm1, %v1934_v13  ;;  %v1937_v35 = vpack.c.bf16 %v1512_v22, %v1512_v22  ;;  %v1510_v38 = vmax.f32 %v1410_v53, 0.0  ;;  %v1431_v28 = vadd.f32 %v2224_v23, %v1270_v60  ;;  %v3044_v13 = vld [vmem:[#allocation15_spill] sm:$0xff]  ;;  %v1141_v23 = vadd.f32 %v2042_v2, %v2794_v5 }
 0x166   : > { %v2153_v63 = vpop.f32.mrf.mxu1  ;;  %v1422_v32 = vpop.f32.mrf.mxu0  ;;  %v2036_v22 = vadd.f32 %v3044_v13, %v3043_v18 }
 0x167   : > { %1673 = vst.msk [vmem:[%s2826_s22 + $0x2c] sm:$0xf] %vm1661_vm1, %v1937_v35  ;;  %v1935_v3 = vpack.c.bf16 %v1510_v38, %v1510_v38  ;;  %v1515_v21 = vmax.f32 %v1431_v28, 0.0  ;;  %v1423_v25 = vadd.f32 %v1422_v32, %v1262_v51  ;;  %v2154_v46 = vadd.f32 %v2153_v63, %v2152_v33  ;;  %v3045_v35 = vld [vmem:[#allocation20_spill] sm:$0xff]  ;;  %v3046_v38 = vld [vmem:[#allocation21_spill] sm:$0xff] }
 0x168   : > { %v2155_v48 = vpop.f32.mrf.mxu1  ;;  %v2225_v61 = vpop.f32.mrf.mxu0  ;;  %v2045_v28 = vadd.f32 %v3046_v38, %v3045_v35  ;;  %v2148_v32 = vadd.f32 %v2884_v55, %v2878_v43  ;;  %v1133_v29 = vadd.f32 %v2036_v22, %v2794_v5  ;;  %v3052_v38 = vld [vmem:[#allocation3_spill] sm:$0xff] }
 0x169   : > { %1671 = vst.msk [vmem:[%s2826_s22 + $0x24] sm:$0xf] %vm1661_vm1, %v1935_v3  ;;  %v1940_v16 = vpack.c.bf16 %v1515_v21, %v1515_v21  ;;  %v1513_v52 = vmax.f32 %v1423_v25, 0.0  ;;  %v1434_v37 = vadd.f32 %v2225_v61, %v1273_v36  ;;  %v3047_v3 = vld [vmem:[#allocation16_spill] sm:$0xff]  ;;  %v3048_v21 = vld [vmem:[#allocation17_spill] sm:$0xff]  ;;  %v1302_v55 = vadd.f32 %v2154_v46, %v1141_v23 }
 0x16a   : > { %v2156_v12 = vpop.f32.mrf.mxu1  ;;  %v1425_v27 = vpop.f32.mrf.mxu0  ;;  %v2039_v25 = vadd.f32 %v3048_v21, %v3047_v3  ;;  %v1294_v15 = vadd.f32 %v2148_v32, %v1133_v29 }
 0x16b   : > { %1676 = vst.msk [vmem:[%s2826_s22 + $0x38] sm:$0xf] %vm1661_vm1, %v1940_v16  ;;  %v1938_v31 = vpack.c.bf16 %v1513_v52, %v1513_v52  ;;  %v1516_v26 = vmax.f32 %v1434_v37, 0.0  ;;  %v1426_v41 = vadd.f32 %v1425_v27, %v1265_v20  ;;  %v2157_v1 = vadd.f32 %v2156_v12, %v2155_v48 }
 0x16c   : > { %v2158_v11 = vpop.f32.mrf.mxu1  ;;  %v2228_v17 = vpop.f32.mrf.mxu0  ;;  %v1144_v20 = vadd.f32 %v2045_v28, %v2794_v5  ;;  %v1136_v19 = vadd.f32 %v2039_v25, %v2794_v5  ;;  %v1152_v28 = vadd.f32 %v3052_v38, %v2794_v5 }
 0x16d   : > { %1674 = vst.msk [vmem:[%s2826_s22 + $0x30] sm:$0xf] %vm1661_vm1, %v1938_v31  ;;  %v1941_v9 = vpack.c.bf16 %v1516_v26, %v1516_v26  ;;  %v1514_v50 = vmax.f32 %v1426_v41, 0.0  ;;  %v1447_v42 = vadd.f32 %v2228_v17, %v1286_v57  ;;  %v3049_v26 = vld [vmem:[#allocation4_spill] sm:$0xff] }
 0x16e   : > { %v2159_v53 = vpop.f32.mrf.mxu1  ;;  %v1438_v60 = vpop.f32.mrf.mxu0  ;;  %v1305_v12 = vadd.f32 %v2157_v1, %v1144_v20  ;;  %v1157_v41 = vadd.f32 %v3049_v26, %v2794_v5  ;;  %v1297_v58 = vadd.f32 %v2151_v24, %v1136_v19  ;;  %v3054_v19 = vld [vmem:[#allocation7_spill] sm:$0xff] }
 0x16f   : > { %1677 = vst.msk [vmem:[%s2826_s22 + $0x3c] sm:$0xf] %vm1661_vm1, %v1941_v9  ;;  %v1939_v10 = vpack.c.bf16 %v1514_v50, %v1514_v50  ;;  %v1519_v47 = vmax.f32 %v1447_v42, 0.0  ;;  %v1439_v0 = vadd.f32 %v1438_v60, %v1278_v62  ;;  %v2160_v45 = vadd.f32 %v2159_v53, %v2158_v11  ;;  %v3050_v9 = vld [vmem:[#allocation2_spill] sm:$0xff]  ;;  %v3051_v11 = vld [vmem:[#allocation5_spill] sm:$0xff] }
 0x170   : > { %v2161_v51 = vpop.f32.mrf.mxu1  ;;  %v2229_v49 = vpop.f32.mrf.mxu0  ;;  %v1149_v50 = vadd.f32 %v3050_v9, %v2794_v5  ;;  %v1160_v53 = vadd.f32 %v3051_v11, %v2794_v5 }
 0x171   : > { %1675 = vst.msk [vmem:[%s2826_s22 + $0x34] sm:$0xf] %vm1661_vm1, %v1939_v10  ;;  %v1944_v33 = vpack.c.bf16 %v1519_v47, %v1519_v47  ;;  %v1517_v63 = vmax.f32 %v1439_v0, 0.0  ;;  %v1450_v36 = vadd.f32 %v2229_v49, %v1289_v30 }
 0x172   : > { %v2162_v59 = vpop.f32.mrf.mxu1  ;;  %v1441_v7 = vpop.f32.mrf.mxu0  ;;  %v1310_v35 = vadd.f32 %v2160_v45, %v1149_v50 }
 0x173   : > { %1680 = vst.msk [vmem:[%s2826_s22 + $0x48] sm:$0xf] %vm1661_vm1, %v1944_v33  ;;  %v1942_v40 = vpack.c.bf16 %v1517_v63, %v1517_v63  ;;  %v1520_v61 = vmax.f32 %v1450_v36, 0.0  ;;  %v1442_v43 = vadd.f32 %v1441_v7, %v1281_v4  ;;  %v2163_v30 = vadd.f32 %v2162_v59, %v2161_v51 }
 0x174   : > { %v2164_v16 = vpop.f32.mrf.mxu1  ;;  %v2232_v52 = vpop.f32.mrf.mxu0 }
 0x175   : > { %1678 = vst.msk [vmem:[%s2826_s22 + $0x40] sm:$0xf] %vm1661_vm1, %v1942_v40  ;;  %v1945_v37 = vpack.c.bf16 %v1520_v61, %v1520_v61  ;;  %v1518_v48 = vmax.f32 %v1442_v43, 0.0  ;;  %v1463_v39 = vadd.f32 %v2232_v52, %v1302_v55  ;;  %v1313_v3 = vadd.f32 %v2163_v30, %v1152_v28  ;;  %v3053_v61 = vld [vmem:[#allocation6_spill] sm:$0xff] }
 0x176   : > { %v2165_v56 = vpop.f32.mrf.mxu1  ;;  %v1454_v8 = vpop.f32.mrf.mxu0  ;;  %v1165_v43 = vadd.f32 %v3053_v61, %v2794_v5 }
 0x177   : > { %1681 = vst.msk [vmem:[%s2826_s22 + $0x4c] sm:$0xf] %vm1661_vm1, %v1945_v37  ;;  %v1943_v27 = vpack.c.bf16 %v1518_v48, %v1518_v48  ;;  %v1523_v31 = vmax.f32 %v1463_v39, 0.0  ;;  %v2166_v34 = vadd.f32 %v2165_v56, %v2164_v16  ;;  %v1455_v14 = vadd.f32 %v1454_v8, %v1294_v15 }
 0x178   : > { %v2167_v57 = vpop.f32.mrf.mxu1  ;;  %v2233_v54 = vpop.f32.mrf.mxu0  ;;  %v1168_v56 = vadd.f32 %v3054_v19, %v2794_v5 }
 0x179   : > { %1679 = vst.msk [vmem:[%s2826_s22 + $0x44] sm:$0xf] %vm1661_vm1, %v1943_v27  ;;  %v1948_v2 = vpack.c.bf16 %v1523_v31, %v1523_v31  ;;  %v1521_v6 = vmax.f32 %v1455_v14, 0.0  ;;  %v1466_v17 = vadd.f32 %v2233_v54, %v1305_v12  ;;  %v1318_v44 = vadd.f32 %v2166_v34, %v1157_v41  ;;  %v3055_v27 = vld [vmem:[#allocation8_spill] sm:$0xff] }
 0x17a   : > { %v2168_v42 = vpop.f32.mrf.mxu1  ;;  %v1457_v62 = vpop.f32.mrf.mxu0  ;;  %v1173_v31 = vadd.f32 %v3055_v27, %v2794_v5 }
 0x17b   : > { %1684 = vst.msk [vmem:[%s2826_s22 + $0x58] sm:$0xf] %vm1661_vm1, %v1948_v2  ;;  %v1946_v18 = vpack.c.bf16 %v1521_v6, %v1521_v6  ;;  %v1524_v13 = vmax.f32 %v1466_v17, 0.0  ;;  %v2169_v22 = vadd.f32 %v2168_v42, %v2167_v57  ;;  %v1458_v60 = vadd.f32 %v1457_v62, %v1297_v58  ;;  %v3056_v2 = vld [vmem:[#allocation9_spill] sm:$0xff] }
 0x17c   : > { %v2170_v46 = vpop.f32.mrf.mxu1  ;;  %v2236_v10 = vpop.f32.mrf.mxu0  ;;  %v1176_v6 = vadd.f32 %v3056_v2, %v2794_v5 }
 0x17d   : > { %1682 = vst.msk [vmem:[%s2826_s22 + $0x50] sm:$0xf] %vm1661_vm1, %v1946_v18  ;;  %v1949_v47 = vpack.c.bf16 %v1524_v13, %v1524_v13  ;;  %v1522_v0 = vmax.f32 %v1458_v60, 0.0  ;;  %v1479_v23 = vadd.f32 %v2236_v10, %v1318_v44  ;;  %v1321_v63 = vadd.f32 %v2169_v22, %v1160_v53 }
 0x17e   : > { %v2171_v49 = vpop.f32.mrf.mxu1  ;;  %v1470_v4 = vpop.f32.mrf.mxu0 }
 0x17f   : > { %1685 = vst.msk [vmem:[%s2826_s22 + $0x5c] sm:$0xf] %vm1661_vm1, %v1949_v47  ;;  %v1947_v32 = vpack.c.bf16 %v1522_v0, %v1522_v0  ;;  %v1527_v33 = vmax.f32 %v1479_v23, 0.0  ;;  %v1471_v51 = vadd.f32 %v1470_v4, %v1310_v35  ;;  %v2172_v25 = vadd.f32 %v2171_v49, %v2170_v46 }
 0x180   : > { %v2173_v36 = vpop.f32.mrf.mxu1  ;;  %v2237_v29 = vpop.f32.mrf.mxu0 }
 0x181   : > { %1683 = vst.msk [vmem:[%s2826_s22 + $0x54] sm:$0xf] %vm1661_vm1, %v1947_v32  ;;  %v1952_v21 = vpack.c.bf16 %v1527_v33, %v1527_v33  ;;  %v1525_v1 = vmax.f32 %v1471_v51, 0.0  ;;  %v1482_v59 = vadd.f32 %v2237_v29, %v1321_v63  ;;  %v1326_v15 = vadd.f32 %v2172_v25, %v1165_v43 }
 0x182   : > { %v2174_v7 = vpop.f32.mrf.mxu1  ;;  %v1473_v40 = vpop.f32.mrf.mxu0 }
 0x183   : > { %1688 = vst.msk [vmem:[%s2826_s22 + $0x68] sm:$0xf] %vm1661_vm1, %v1952_v21  ;;  %v1950_v55 = vpack.c.bf16 %v1525_v1, %v1525_v1  ;;  %v1528_v20 = vmax.f32 %v1482_v59, 0.0  ;;  %v1474_v24 = vadd.f32 %v1473_v40, %v1313_v3  ;;  %v2175_v48 = vadd.f32 %v2174_v7, %v2173_v36 }
 0x184   : > { %v2176_v16 = vpop.f32.mrf.mxu1  ;;  %v2240_v52 = vpop.f32.mrf.mxu0 }
 0x185   : > { %1686 = vst.msk [vmem:[%s2826_s22 + $0x60] sm:$0xf] %vm1661_vm1, %v1950_v55  ;;  %v1953_v37 = vpack.c.bf16 %v1528_v20, %v1528_v20  ;;  %v1526_v39 = vmax.f32 %v1474_v24, 0.0  ;;  %v1329_v45 = vadd.f32 %v2175_v48, %v1168_v56 }
 0x186   : > { %v2177_v8 = vpop.f32.mrf.mxu1  ;;  %v1486_v12 = vpop.f32.mrf.mxu0 }
 0x187   : > { %1689 = vst.msk [vmem:[%s2826_s22 + $0x6c] sm:$0xf] %vm1661_vm1, %v1953_v37  ;;  %v1951_v34 = vpack.c.bf16 %v1526_v39, %v1526_v39  ;;  %v2178_v14 = vadd.f32 %v2177_v8, %v2176_v16  ;;  %v1487_v26 = vadd.f32 %v1486_v12, %v1326_v15 }
 0x188   : > { %v2179_v41 = vpop.f32.mrf.mxu1  ;;  %v2241_v57 = vpop.f32.mrf.mxu0 }
 0x189   : > { %1687 = vst.msk [vmem:[%s2826_s22 + $0x64] sm:$0xf] %vm1661_vm1, %v1951_v34  ;;  %v1334_v54 = vadd.f32 %v2178_v14, %v1173_v31  ;;  %v1529_v58 = vmax.f32 %v1487_v26, 0.0 }
 0x18a   : > { %v2180_v17 = vpop.f32.mrf.mxu1  ;;  %v1489_v9 = vpop.f32.mrf.mxu0 }
 0x18b   : > { %v1495_v50 = vadd.f32 %v2240_v52, %v1334_v54  ;;  %v1954_v42 = vpack.c.bf16 %v1529_v58, %v1529_v58  ;;  %v2181_v62 = vadd.f32 %v2180_v17, %v2179_v41  ;;  %v1490_v44 = vadd.f32 %v1489_v9, %v1329_v45 }
 0x18d   : > { %v1531_v18 = vmax.f32 %v1495_v50, 0.0  ;;  %1690 = vst.msk [vmem:[%s2826_s22 + $0x70] sm:$0xf] %vm1661_vm1, %v1954_v42  ;;  %v1337_v13 = vadd.f32 %v2181_v62, %v1176_v6  ;;  %v1530_v22 = vmax.f32 %v1490_v44, 0.0 }
 0x18f   : > { %v1956_v60 = vpack.c.bf16 %v1531_v18, %v1531_v18  ;;  %v1498_v11 = vadd.f32 %v2241_v57, %v1337_v13  ;;  %v1955_v53 = vpack.c.bf16 %v1530_v22, %v1530_v22 }
 0x191   : > { %1692 = vst.msk [vmem:[%s2826_s22 + $0x78] sm:$0xf] %vm1661_vm1, %v1956_v60  ;;  %v1532_v30 = vmax.f32 %v1498_v11, 0.0  ;;  %1691 = vst.msk [vmem:[%s2826_s22 + $0x74] sm:$0xf] %vm1661_vm1, %v1955_v53 }
 0x193   : > { %v1957_v5 = vpack.c.bf16 %v1532_v30, %v1532_v30 }
 0x195   : > { %1693 = vst.msk [vmem:[%s2826_s22 + $0x7c] sm:$0xf] %vm1661_vm1, %v1957_v5 }
 0x196 PF: > { %s13_s12 = sadd.s32 1, %s2421_s12  }
 0x197   : > { %p10_p4 = scmp.ge.s32.totalorder %s13_s12, 4  }
 0x199   :  { %12 = sbr.rel (!%p10_p4) target bundleno = 1 (0x1), region = 62 }

// kernel: colornet_forward.29
= control target key start
LH: loop header
LB: loop body
LE: loop exit
PB: predicated region body
PF: predicated region fallthrough
CT: control target
= control target key end

     0   :  { %s1774_s12 = smov 0   ;;  %s2006_s0 = inlined_call_operand.vmem [shape: bf16[512,288], index: 0, kind: input, shape index: {}]   ;;  %s2007_s1 = inlined_call_operand.vmem [shape: bf16[288,128], index: 1, kind: input, shape index: {}]   ;;  %s2008_s2 = inlined_call_operand.vmem [shape: f32[1,128], index: 2, kind: input, shape index: {}]   ;;  %s2009_s3 = inlined_call_operand.vmem [shape: bf16[512,128], index: 3, kind: output, shape index: {}]  }
   0x1 LB: > { %s1220_s13 = sadd.s32 4294967295, %s1752_s12   ;;  %p1224_p0 = scmp.ge.s32.totalorder %s1752_s12, 1  ;;  %s1752_s12 = sphi %s1774_s12, %s13_s12  }
   0x2   : > { %p139_p1 = scmp.lt.s32.totalorder %s1752_s12, 3 }
   0x4   : > { %p140_p2 = pnand %p1224_p0, %p139_p1 }
   0x5   : > { %s1225_s16 = sshll.u32 (!%p140_p2), %s1220_s13, 5 }
   0x6   : > { %143 = sbr.rel (%p140_p2) target bundleno = 340 (0x154), region = 32  ;;  %p165_p3 = scmp.lt.s32.totalorder (!%p140_p2), %s1225_s16, 63 }
   0xb   : > { %v1664_v0 = vld [vmem:[%s2007_s1 + $0x78] sm:$0xff]   ;;  %v1666_v2 = vld [vmem:[%s2007_s1 + $0x70] sm:$0xff]   ;;  %v1668_v4 = vld [vmem:[%s2007_s1 + $0x68] sm:$0xff]   ;;  %s2011_s16 = smov (!%p165_p3, %s1225_s16), 63  ;;  %vm633_vm0 = vcmask 261120  }
   0xc   : > { %v1665_v1 = vld [vmem:[%s2007_s1 + $0x38] sm:$0xff]   ;;  %1473 = vmatprep.subr.bf16.mxu0 %v1664_v0  ;;  %1639 = vmatprep.subr.bf16.mxu1 %v1664_v0  ;;  %v1667_v3 = vld [vmem:[%s2007_s1 + $0x30] sm:$0xff]   ;;  %v1669_v5 = vld [vmem:[%s2007_s1 + $0x28] sm:$0xff]   ;;  %s1655_s29 = smul.u32 12, %s2011_s16  ;;  %s1228_s5 = sshll.u32 %s2011_s16, 2 }
   0xd   : > { %1474 = vmatpush3.bf16.msra.mxu0 %v1665_v1  ;;  %1647 = vmatpush3.bf16.msra.mxu1 %v1665_v1  ;;  %v1670_v6 = vld [vmem:[%s2007_s1 + $0x60] sm:$0xff]   ;;  %v1672_v8 = vld [vmem:[%s2007_s1 + $0x58] sm:$0xff]   ;;  %v1674_v10 = vld [vmem:[%s2007_s1 + $0x50] sm:$0xff]   ;;  %s1941_s8 = scalar_lea.vmem %s2009_s3, %s1228_s5 }
   0xe   : > { %1475 = vmatprep.subr.bf16.mxu0 %v1666_v2  ;;  %1640 = vmatprep.subr.bf16.mxu1 %v1666_v2  ;;  %v1671_v7 = vld [vmem:[%s2007_s1 + $0x20] sm:$0xff]   ;;  %s1815_s9 = scalar_lea.vmem %s2006_s0, %s1655_s29  ;;  %v1673_v9 = vld [vmem:[%s2007_s1 + $0x18] sm:$0xff]   ;;  %v1675_v13 = vld [vmem:[%s2007_s1 + $0x10] sm:$0xff]  }
   0xf   : > { %v1682_v11 = vld [vmem:[%s1815_s9 + $0x4] ss:$12 sps:$4 sm:$0xff]   ;;  %v1676_v14 = vld [vmem:[%s2007_s1 + $0x48] sm:$0xff]   ;;  %v1693_v26 = vld [vmem:[%s1815_s9 + $0x34] ss:$12 sps:$4 sm:$0xff]  }
  0x10   : > { %v1685_v12 = vld [vmem:[%s1815_s9 + $0x124] ss:$12 sps:$4 sm:$0xff]   ;;  %714 = vmatprep.mubr.bf16.mxu0 %v1682_v11  ;;  %v1677_v15 = vld [vmem:[%s2007_s1 + $0x8] sm:$0xff]   ;;  %v1695_v27 = vld [vmem:[%s1815_s9 + $0x154] ss:$12 sps:$4 sm:$0xff]  }
  0x11   : > { %1476 = vmatpush3.bf16.msra.mxu0 %v1667_v3  ;;  %1648 = vmatpush3.bf16.msra.mxu1 %v1667_v3  ;;  %v1678_v16 = vld [vmem:[%s2007_s1 + $0x40] sm:$0xff]   ;;  %v1686_v18 = vld [vmem:[%s2007_s1 + $0x88] sm:$0xff]   ;;  %v1697_v28 = vld [vmem:[%s1815_s9 + $0x30] ss:$12 sps:$4 sm:$0xff]  }
  0x12   : > { %1477 = vmatprep.subr.bf16.mxu0 %v1668_v4  ;;  %1641 = vmatprep.subr.bf16.mxu1 %v1668_v4  ;;  %v1679_v17 = vld [vmem:[%s2007_s1] sm:$0xff]   ;;  %v1687_v21 = vld [vmem:[%s1815_s9 + $0x1c] ss:$12 sps:$4 sm:$0xff]   ;;  %v1700_v30 = vld [vmem:[%s1815_s9 + $0x4c] ss:$12 sps:$4 sm:$0xff]  }
  0x13   : > { %810 = vmatprep.mubr.bf16.mxu1 %v1685_v12  ;;  %v1680_v19 = vld [vmem:[%s1815_s9] ss:$12 sps:$4 sm:$0xff]   ;;  %v1689_v22 = vld [vmem:[%s1815_s9 + $0x13c] ss:$12 sps:$4 sm:$0xff]   ;;  %v1691_v24 = vld [vmem:[%s1815_s9 + $0x18] ss:$12 sps:$4 sm:$0xff]  }
  0x14   : > { %v1683_v20 = vld [vmem:[%s1815_s9 + $0x120] ss:$12 sps:$4 sm:$0xff]   ;;  %v1692_v25 = vld [vmem:[%s1815_s9 + $0x138] ss:$12 sps:$4 sm:$0xff]   ;;  %v1698_v29 = vld [vmem:[%s1815_s9 + $0x150] ss:$12 sps:$4 sm:$0xff]  }
  0x15   : > { %1478 = vmatpush3.bf16.msra.mxu0 %v1669_v5  ;;  %1649 = vmatpush3.bf16.msra.mxu1 %v1669_v5  ;;  %v1699_v23 = vld [vmem:[%s2007_s1 + $0x80] sm:$0xff]   ;;  %v1702_v31 = vld [vmem:[%s1815_s9 + $0x16c] ss:$12 sps:$4 sm:$0xff]   ;;  %v1704_v32 = vld [vmem:[%s1815_s9 + $0x48] ss:$12 sps:$4 sm:$0xff]  }
  0x16   : > { %1479 = vmatprep.subr.bf16.mxu0 %v1670_v6  ;;  %1642 = vmatprep.subr.bf16.mxu1 %v1670_v6  ;;  %v1705_v33 = vld [vmem:[%s1815_s9 + $0x168] ss:$12 sps:$4 sm:$0xff]   ;;  %v1706_v34 = vld [vmem:[%s1815_s9 + $0x64] ss:$12 sps:$4 sm:$0xff]   ;;  %v1709_v36 = vld [vmem:[%s1815_s9 + $0x60] ss:$12 sps:$4 sm:$0xff]  }
  0x17   : > { %v1708_v35 = vld [vmem:[%s1815_s9 + $0x8] ss:$12 sps:$4 sm:$0xff]   ;;  %v1710_v37 = vld [vmem:[%s1815_s9 + $0x20] ss:$12 sps:$4 sm:$0xff]   ;;  %v1713_v39 = vld [vmem:[%s1815_s9 + $0x38] ss:$12 sps:$4 sm:$0xff]  }
  0x18   : > { %v1711_v38 = vld [vmem:[%s1815_s9 + $0x7c] ss:$12 sps:$4 sm:$0xff]   ;;  %v1714_v40 = vld [vmem:[%s1815_s9 + $0x78] ss:$12 sps:$4 sm:$0xff]   ;;  %v1716_v42 = vld [vmem:[%s1815_s9 + $0x94] ss:$12 sps:$4 sm:$0xff]  }
  0x19   : > { %1480 = vmatpush3.bf16.msra.mxu0 %v1671_v7  ;;  %1650 = vmatpush3.bf16.msra.mxu1 %v1671_v7  ;;  %v1715_v41 = vld [vmem:[%s1815_s9 + $0x50] ss:$12 sps:$4 sm:$0xff]   ;;  %v1718_v43 = vld [vmem:[%s1815_s9 + $0x68] ss:$12 sps:$4 sm:$0xff]   ;;  %v1720_v45 = vld [vmem:[%s1815_s9 + $0x80] ss:$12 sps:$4 sm:$0xff]  }
  0x1a   : > { %1481 = vmatprep.subr.bf16.mxu0 %v1672_v8  ;;  %1643 = vmatprep.subr.bf16.mxu1 %v1672_v8  ;;  %v1719_v44 = vld [vmem:[%s1815_s9 + $0x90] ss:$12 sps:$4 sm:$0xff]   ;;  %v1721_v46 = vld [vmem:[%s1815_s9 + $0xac] ss:$12 sps:$4 sm:$0xff]   ;;  %v1724_v48 = vld [vmem:[%s1815_s9 + $0xa8] ss:$12 sps:$4 sm:$0xff]  }
  0x1b   : > { %v1723_v47 = vld [vmem:[%s1815_s9 + $0x98] ss:$12 sps:$4 sm:$0xff]   ;;  %v1725_v49 = vld [vmem:[%s1815_s9 + $0xb0] ss:$12 sps:$4 sm:$0xff]   ;;  %v1728_v51 = vld [vmem:[%s1815_s9 + $0xc8] ss:$12 sps:$4 sm:$0xff]  }
  0x1c   : > { %v1726_v50 = vld [vmem:[%s1815_s9 + $0xc4] ss:$12 sps:$4 sm:$0xff]   ;;  %v1729_v52 = vld [vmem:[%s1815_s9 + $0xc0] ss:$12 sps:$4 sm:$0xff]   ;;  %v1731_v54 = vld [vmem:[%s1815_s9 + $0xdc] ss:$12 sps:$4 sm:$0xff]  }
  0x1d   : > { %1482 = vmatpush3.bf16.msra.mxu0 %v1673_v9  ;;  %1651 = vmatpush3.bf16.msra.mxu1 %v1673_v9  ;;  %v1730_v53 = vld [vmem:[%s1815_s9 + $0xe0] ss:$12 sps:$4 sm:$0xff]   ;;  %v1733_v55 = vld [vmem:[%s1815_s9 + $0xf8] ss:$12 sps:$4 sm:$0xff]   ;;  %v1735_v57 = vld [vmem:[%s1815_s9 + $0x110] ss:$12 sps:$4 sm:$0xff]  }
  0x1e   : > { %1483 = vmatprep.subr.bf16.mxu0 %v1674_v10  ;;  %1644 = vmatprep.subr.bf16.mxu1 %v1674_v10  ;;  %v1734_v56 = vld [vmem:[%s1815_s9 + $0xd8] ss:$12 sps:$4 sm:$0xff]   ;;  %v1736_v58 = vld [vmem:[%s1815_s9 + $0xf4] ss:$12 sps:$4 sm:$0xff]   ;;  %v1739_v60 = vld [vmem:[%s1815_s9 + $0xf0] ss:$12 sps:$4 sm:$0xff]  }
  0x1f   : > { %v1738_v59 = vld [vmem:[%s1815_s9 + $0x128] ss:$12 sps:$4 sm:$0xff]   ;;  %v1740_v61 = vld [vmem:[%s1815_s9 + $0x140] ss:$12 sps:$4 sm:$0xff]   ;;  %v1743_v63 = vld [vmem:[%s1815_s9 + $0x158] ss:$12 sps:$4 sm:$0xff]  }
  0x20   : > { %v1741_v62 = vld [vmem:[%s1815_s9 + $0x10c] ss:$12 sps:$4 sm:$0xff]   ;;  %v1744_v0 = vld [vmem:[%s1815_s9 + $0x108] ss:$12 sps:$4 sm:$0xff]   ;;  %v1745_v1 = vld [vmem:[%s1815_s9 + $0x170] ss:$12 sps:$4 sm:$0xff]  }
  0x21   : > { %1484 = vmatpush3.bf16.msra.mxu0 %v1675_v13  ;;  %1652 = vmatpush3.bf16.msra.mxu1 %v1675_v13 }
  0x22   : > { %1485 = vmatprep.subr.bf16.mxu0 %v1676_v14  ;;  %1645 = vmatprep.subr.bf16.mxu1 %v1676_v14 }
  0x25   : > { %1486 = vmatpush3.bf16.msra.mxu0 %v1677_v15  ;;  %1653 = vmatpush3.bf16.msra.mxu1 %v1677_v15 }
  0x26   : > { %1487 = vmatprep.subr.bf16.mxu0 %v1678_v16  ;;  %1646 = vmatprep.subr.bf16.mxu1 %v1678_v16 }
  0x29   : > { %1488 = vmatpush3.bf16.msra.mxu0 %v1679_v17  ;;  %1654 = vmatpush3.bf16.msra.mxu1 %v1679_v17 }
  0x2a   : > { %1603 = vmatprep.subr.bf16.mxu1 %v1686_v18 }
  0x2c   : > { %715 = vmatmul.mubr.bf16.vlgmr.msra.gmra.mxu0 %v1680_v19  ;;  %811 = vmatmul.mubr.bf16.vlgmr.msra.gmra.mxu1 %v1683_v20 }
  0x2d   : > { %1604 = vmatpush3.bf16.msra.mxu1 %v1686_v18  ;;  %722 = vmatprep.mubr.bf16.mxu0 %v1687_v21 }
  0x2e   : > { %818 = vmatprep.mubr.bf16.mxu1 %v1689_v22  ;;  %1605 = vmatprep.subr.bf16.mxu1 %v1699_v23 }
  0x31   : > { %1606 = vmatpush3.bf16.msra.mxu1 %v1699_v23 }
  0x34   : > { %723 = vmatmul.mubr.bf16.gmra.mxu0 %v1691_v24  ;;  %819 = vmatmul.mubr.bf16.gmra.mxu1 %v1692_v25 }
  0x35   : > { %730 = vmatprep.mubr.bf16.mxu0 %v1693_v26  ;;  %826 = vmatprep.mubr.bf16.mxu1 %v1695_v27 }
  0x3c   : > { %731 = vmatmul.mubr.bf16.gmra.mxu0 %v1697_v28  ;;  %827 = vmatmul.mubr.bf16.gmra.mxu1 %v1698_v29 }
  0x3d   : > { %738 = vmatprep.mubr.bf16.mxu0 %v1700_v30  ;;  %834 = vmatprep.mubr.bf16.mxu1 %v1702_v31 }
  0x44   : > { %739 = vmatmul.mubr.bf16.gmra.mxu0 %v1704_v32  ;;  %835 = vmatmul.mubr.bf16.gmra.mxu1 %v1705_v33 }
  0x45   : > { %746 = vmatprep.mubr.bf16.mxu0 %v1706_v34  ;;  %1607 = vmatprep.mubr.msk.bf16.mxu1 %vm633_vm0, %v1708_v35 }
  0x4c   : > { %747 = vmatmul.mubr.bf16.gmra.mxu0 %v1709_v36  ;;  %1608 = vmatmul.mubr.msk.bf16.vlgmr.msra.gmra.mxu1 %vm633_vm0, %v1710_v37 }
  0x4d   : > { %754 = vmatprep.mubr.bf16.mxu0 %v1711_v38  ;;  %1611 = vmatprep.mubr.msk.bf16.mxu1 %vm633_vm0, %v1713_v39 }
  0x54   : > { %755 = vmatmul.mubr.bf16.gmra.mxu0 %v1714_v40  ;;  %1612 = vmatmul.mubr.msk.bf16.gmra.mxu1 %vm633_vm0, %v1715_v41 }
  0x55   : > { %762 = vmatprep.mubr.bf16.mxu0 %v1716_v42  ;;  %1615 = vmatprep.mubr.msk.bf16.mxu1 %vm633_vm0, %v1718_v43 }
  0x5c   : > { %763 = vmatmul.mubr.bf16.gmra.mxu0 %v1719_v44  ;;  %1616 = vmatmul.mubr.msk.bf16.gmra.mxu1 %vm633_vm0, %v1720_v45 }
  0x5d   : > { %770 = vmatprep.mubr.bf16.mxu0 %v1721_v46  ;;  %1619 = vmatprep.mubr.msk.bf16.mxu1 %vm633_vm0, %v1723_v47  ;;  %v1931_v46 = vld [vmem:[%s2008_s2] ss:$0 sm:$0xff] }
  0x64   : > { %771 = vmatmul.mubr.bf16.gmra.mxu0 %v1724_v48  ;;  %1620 = vmatmul.mubr.msk.bf16.gmra.mxu1 %vm633_vm0, %v1725_v49 }
  0x65   : > { %778 = vmatprep.mubr.bf16.mxu0 %v1726_v50  ;;  %1623 = vmatprep.mubr.msk.bf16.mxu1 %vm633_vm0, %v1728_v51 }
  0x6c   : > { %779 = vmatmul.mubr.bf16.gmra.mxu0 %v1729_v52  ;;  %1624 = vmatmul.mubr.msk.bf16.gmra.mxu1 %vm633_vm0, %v1730_v53 }
  0x6d   : > { %786 = vmatprep.mubr.bf16.mxu0 %v1731_v54  ;;  %1627 = vmatprep.mubr.msk.bf16.mxu1 %vm633_vm0, %v1733_v55 }
  0x74   : > { %787 = vmatmul.mubr.bf16.gmra.mxu0 %v1734_v56  ;;  %1628 = vmatmul.mubr.msk.bf16.gmra.mxu1 %vm633_vm0, %v1735_v57 }
  0x75   : > { %794 = vmatprep.mubr.bf16.mxu0 %v1736_v58  ;;  %1631 = vmatprep.mubr.msk.bf16.mxu1 %vm633_vm0, %v1738_v59 }
  0x7c   : > { %795 = vmatmul.mubr.bf16.gmra.mxu0 %v1739_v60  ;;  %1632 = vmatmul.mubr.msk.bf16.gmra.mxu1 %vm633_vm0, %v1740_v61 }
  0x7d   : > { %802 = vmatprep.mubr.bf16.mxu0 %v1741_v62  ;;  %1635 = vmatprep.mubr.msk.bf16.mxu1 %vm633_vm0, %v1743_v63 }
  0x84   : > { %803 = vmatmul.mubr.bf16.gmra.mxu0 %v1744_v0  ;;  %1636 = vmatmul.mubr.msk.bf16.gmra.mxu1 %vm633_vm0, %v1745_v1 }
  0xec   : > { %v1489_v2 = vpop.f32.mrf.mxu0  ;;  %v1561_v3 = vpop.f32.mrf.mxu1 }
  0xee   : > { %v1490_v4 = vpop.f32.mrf.mxu0  ;;  %v1562_v5 = vpop.f32.mrf.mxu1 }
  0xef   : > { %v1908_v6 = vadd.f32 %v1562_v5, %v1561_v3  ;;  %v1491_v44 = vadd.f32 %v1490_v4, %v1489_v2 }
  0xf0   : > { %v1492_v7 = vpop.f32.mrf.mxu0  ;;  %v1564_v8 = vpop.f32.mrf.mxu1 }
  0xf1   : > { %v717_v54 = vadd.f32 %v1491_v44, %v1931_v46 }
  0xf2   : > { %v1493_v9 = vpop.f32.mrf.mxu0  ;;  %v1565_v10 = vpop.f32.mrf.mxu1 }
  0xf3   : > { %v1910_v11 = vadd.f32 %v1565_v10, %v1564_v8  ;;  %v1494_v45 = vadd.f32 %v1493_v9, %v1492_v7 }
  0xf4   : > { %v1495_v12 = vpop.f32.mrf.mxu0  ;;  %v1567_v13 = vpop.f32.mrf.mxu1 }
  0xf5   : > { %v720_v56 = vadd.f32 %v1494_v45, %v1931_v46 }
  0xf6   : > { %v1496_v14 = vpop.f32.mrf.mxu0  ;;  %v1568_v15 = vpop.f32.mrf.mxu1 }
  0xf7   : > { %v1912_v16 = vadd.f32 %v1568_v15, %v1567_v13  ;;  %v1497_v40 = vadd.f32 %v1496_v14, %v1495_v12 }
  0xf8   : > { %v1498_v17 = vpop.f32.mrf.mxu0  ;;  %v1570_v18 = vpop.f32.mrf.mxu1 }
  0xf9   : > { %v725_v49 = vadd.f32 %v1497_v40, %v1931_v46 }
  0xfa   : > { %v1499_v19 = vpop.f32.mrf.mxu0  ;;  %v1571_v20 = vpop.f32.mrf.mxu1 }
  0xfb   : > { %v1914_v21 = vadd.f32 %v1571_v20, %v1570_v18  ;;  %v1500_v41 = vadd.f32 %v1499_v19, %v1498_v17 }
  0xfc   : > { %v1501_v22 = vpop.f32.mrf.mxu0  ;;  %v1573_v23 = vpop.f32.mrf.mxu1 }
  0xfd   : > { %v728_v50 = vadd.f32 %v1500_v41, %v1931_v46 }
  0xfe   : > { %v1502_v24 = vpop.f32.mrf.mxu0  ;;  %v1574_v25 = vpop.f32.mrf.mxu1 }
  0xff   : > { %v1916_v26 = vadd.f32 %v1574_v25, %v1573_v23  ;;  %v1503_v2 = vadd.f32 %v1502_v24, %v1501_v22 }
 0x100   : > { %v1504_v27 = vpop.f32.mrf.mxu0  ;;  %v1576_v28 = vpop.f32.mrf.mxu1 }
 0x101   : > { %v733_v14 = vadd.f32 %v1503_v2, %v1931_v46 }
 0x102   : > { %v1505_v29 = vpop.f32.mrf.mxu0  ;;  %v1577_v30 = vpop.f32.mrf.mxu1 }
 0x103   : > { %v1918_v31 = vadd.f32 %v1577_v30, %v1576_v28  ;;  %v1506_v3 = vadd.f32 %v1505_v29, %v1504_v27 }
 0x104   : > { %v1507_v32 = vpop.f32.mrf.mxu0  ;;  %v1920_v33 = vpop.f32.mrf.mxu1 }
 0x105   : > { %v736_v17 = vadd.f32 %v1506_v3, %v1931_v46 }
 0x106   : > { %v1508_v34 = vpop.f32.mrf.mxu0  ;;  %v1922_v35 = vpop.f32.mrf.mxu1 }
 0x107   : > { %v1509_v57 = vadd.f32 %v1508_v34, %v1507_v32 }
 0x108   : > { %v1510_v36 = vpop.f32.mrf.mxu0  ;;  %v1924_v37 = vpop.f32.mrf.mxu1 }
 0x109   : > { %v741_v8 = vadd.f32 %v1509_v57, %v1931_v46 }
 0x10a   : > { %v1511_v38 = vpop.f32.mrf.mxu0  ;;  %v1926_v39 = vpop.f32.mrf.mxu1 }
 0x10b   : > { %v1512_v60 = vadd.f32 %v1511_v38, %v1510_v36 }
 0x10c   : > { %v1513_v42 = vpop.f32.mrf.mxu0  ;;  %v1609_v43 = vpop.f32.mrf.mxu1 }
 0x10d   : > { %v886_v53 = vadd.f32 %v1609_v43, %v725_v49  ;;  %v744_v9 = vadd.f32 %v1512_v60, %v1931_v46 }
 0x10e   : > { %v1514_v47 = vpop.f32.mrf.mxu0  ;;  %v877_v48 = vpop.f32.mrf.mxu1 }
 0x10f   : > { %v878_v61 = vadd.f32 %v877_v48, %v717_v54  ;;  %v1515_v29 = vadd.f32 %v1514_v47, %v1513_v42 }
 0x110   : > { %v1516_v51 = vpop.f32.mrf.mxu0  ;;  %v1610_v52 = vpop.f32.mrf.mxu1 }
 0x111   : > { %v889_v55 = vadd.f32 %v1610_v52, %v728_v50  ;;  %v749_v45 = vadd.f32 %v1515_v29, %v1931_v46 }
 0x112   : > { %v1517_v58 = vpop.f32.mrf.mxu0  ;;  %v880_v59 = vpop.f32.mrf.mxu1 }
 0x113   : > { %v1386_v62 = vpack.c.bf16 %v889_v55, %v886_v53  ;;  %v881_v63 = vadd.f32 %v880_v59, %v720_v56  ;;  %v1518_v30 = vadd.f32 %v1517_v58, %v1516_v51 }
 0x114   : > { %v1519_v0 = vpop.f32.mrf.mxu0  ;;  %v1613_v1 = vpop.f32.mrf.mxu1 }
 0x115   : > { %1458 = vst [vmem:[%s1941_s8 + $0x8] sm:$0xff] %v1386_v62   ;;  %v1381_v4 = vpack.c.bf16 %v881_v63, %v878_v61  ;;  %v902_v13 = vadd.f32 %v1613_v1, %v741_v8  ;;  %v752_v42 = vadd.f32 %v1518_v30, %v1931_v46 }
 0x116   : > { %v1520_v5 = vpop.f32.mrf.mxu0  ;;  %v893_v7 = vpop.f32.mrf.mxu1 }
 0x117   : > { %1382 = vst [vmem:[%s1941_s8] sm:$0xff] %v1381_v4   ;;  %v1521_v18 = vadd.f32 %v1520_v5, %v1519_v0  ;;  %v894_v22 = vadd.f32 %v893_v7, %v733_v14 }
 0x118   : > { %v1522_v10 = vpop.f32.mrf.mxu0  ;;  %v1614_v12 = vpop.f32.mrf.mxu1 }
 0x119   : > { %v905_v15 = vadd.f32 %v1614_v12, %v744_v9  ;;  %v757_v38 = vadd.f32 %v1521_v18, %v1931_v46 }
 0x11a   : > { %v1523_v19 = vpop.f32.mrf.mxu0  ;;  %v896_v20 = vpop.f32.mrf.mxu1 }
 0x11b   : > { %v1396_v23 = vpack.c.bf16 %v905_v15, %v902_v13  ;;  %v1524_v24 = vadd.f32 %v1523_v19, %v1522_v10  ;;  %v897_v25 = vadd.f32 %v896_v20, %v736_v17 }
 0x11c   : > { %v1525_v27 = vpop.f32.mrf.mxu0  ;;  %v1617_v28 = vpop.f32.mrf.mxu1 }
 0x11d   : > { %1460 = vst [vmem:[%s1941_s8 + $0x18] sm:$0xff] %v1396_v23   ;;  %v1391_v32 = vpack.c.bf16 %v897_v25, %v894_v22  ;;  %v760_v40 = vadd.f32 %v1524_v24, %v1931_v46  ;;  %v918_v44 = vadd.f32 %v1617_v28, %v757_v38 }
 0x11e   : > { %v1526_v34 = vpop.f32.mrf.mxu0  ;;  %v909_v36 = vpop.f32.mrf.mxu1 }
 0x11f   : > { %1459 = vst [vmem:[%s1941_s8 + $0x10] sm:$0xff] %v1391_v32   ;;  %v910_v50 = vadd.f32 %v909_v36, %v749_v45  ;;  %v1527_v55 = vadd.f32 %v1526_v34, %v1525_v27 }
 0x120   : > { %v1528_v41 = vpop.f32.mrf.mxu0  ;;  %v1618_v43 = vpop.f32.mrf.mxu1 }
 0x121   : > { %v921_v48 = vadd.f32 %v1618_v43, %v760_v40  ;;  %v765_v63 = vadd.f32 %v1527_v55, %v1931_v46 }
 0x122   : > { %v1529_v47 = vpop.f32.mrf.mxu0  ;;  %v912_v49 = vpop.f32.mrf.mxu1 }
 0x123   : > { %v1406_v51 = vpack.c.bf16 %v921_v48, %v918_v44  ;;  %v913_v52 = vadd.f32 %v912_v49, %v752_v42  ;;  %v1530_v56 = vadd.f32 %v1529_v47, %v1528_v41 }
 0x124   : > { %v1531_v53 = vpop.f32.mrf.mxu0  ;;  %v1621_v54 = vpop.f32.mrf.mxu1 }
 0x125   : > { %1462 = vst [vmem:[%s1941_s8 + $0x28] sm:$0xff] %v1406_v51   ;;  %v1401_v57 = vpack.c.bf16 %v913_v52, %v910_v50  ;;  %v768_v0 = vadd.f32 %v1530_v56, %v1931_v46  ;;  %v821_v52 = vadd.f32 %v1912_v16, %v1931_v46  ;;  %v816_v16 = vadd.f32 %v1910_v11, %v1931_v46 }
 0x126   : > { %v1532_v58 = vpop.f32.mrf.mxu0  ;;  %v925_v59 = vpop.f32.mrf.mxu1 }
 0x127   : > { %1461 = vst [vmem:[%s1941_s8 + $0x20] sm:$0xff] %v1401_v57   ;;  %v1533_v60 = vadd.f32 %v1532_v58, %v1531_v53  ;;  %v926_v4 = vadd.f32 %v925_v59, %v765_v63  ;;  %v824_v58 = vadd.f32 %v1914_v21, %v1931_v46  ;;  %v813_v59 = vadd.f32 %v1908_v6, %v1931_v46 }
 0x128   : > { %v1534_v61 = vpop.f32.mrf.mxu0  ;;  %v1622_v62 = vpop.f32.mrf.mxu1 }
 0x129   : > { %v773_v3 = vadd.f32 %v1533_v60, %v1931_v46 }
 0x12a   : > { %v1535_v1 = vpop.f32.mrf.mxu0  ;;  %v928_v2 = vpop.f32.mrf.mxu1 }
 0x12b   : > { %v1536_v5 = vadd.f32 %v1535_v1, %v1534_v61  ;;  %v929_v7 = vadd.f32 %v928_v2, %v768_v0  ;;  %v934_v15 = vadd.f32 %v1621_v54, %v773_v3  ;;  %v1581_v1 = vadd.f32 %v1922_v35, %v1920_v33 }
 0x12c   : > { %v1537_v8 = vpop.f32.mrf.mxu0  ;;  %v1625_v9 = vpop.f32.mrf.mxu1  ;;  %v1584_v2 = vadd.f32 %v1926_v39, %v1924_v37 }
 0x12d   : > { %v776_v10 = vadd.f32 %v1536_v5, %v1931_v46  ;;  %v1411_v12 = vpack.c.bf16 %v929_v7, %v926_v4  ;;  %v837_v33 = vadd.f32 %v1581_v1, %v1931_v46 }
 0x12e   : > { %v1538_v13 = vpop.f32.mrf.mxu0  ;;  %v941_v14 = vpop.f32.mrf.mxu1 }
 0x12f   : > { %v937_v17 = vadd.f32 %v1622_v62, %v776_v10  ;;  %1463 = vst [vmem:[%s1941_s8 + $0x30] sm:$0xff] %v1411_v12   ;;  %v1539_v18 = vadd.f32 %v1538_v13, %v1537_v8 }
 0x130   : > { %v1540_v19 = vpop.f32.mrf.mxu0  ;;  %v1626_v20 = vpop.f32.mrf.mxu1 }
 0x131   : > { %v1416_v22 = vpack.c.bf16 %v937_v17, %v934_v15  ;;  %v781_v25 = vadd.f32 %v1539_v18, %v1931_v46  ;;  %v840_v15 = vadd.f32 %v1584_v2, %v1931_v46  ;;  %v829_v17 = vadd.f32 %v1916_v26, %v1931_v46 }
 0x132   : > { %v1541_v23 = vpop.f32.mrf.mxu0  ;;  %v944_v24 = vpop.f32.mrf.mxu1 }
 0x133   : > { %1464 = vst [vmem:[%s1941_s8 + $0x38] sm:$0xff] %v1416_v22   ;;  %v1542_v27 = vadd.f32 %v1541_v23, %v1540_v19  ;;  %v942_v36 = vadd.f32 %v941_v14, %v781_v25 }
 0x134   : > { %v1543_v28 = vpop.f32.mrf.mxu0  ;;  %v1964_v29 = vpop.f32.mrf.mxu1 }
 0x135   : > { %v784_v30 = vadd.f32 %v1542_v27, %v1931_v46 }
 0x136   : > { %v1544_v32 = vpop.f32.mrf.mxu0  ;;  %v957_v34 = vpop.f32.mrf.mxu1 }
 0x137   : > { %v945_v38 = vadd.f32 %v944_v24, %v784_v30  ;;  %v1545_v40 = vadd.f32 %v1544_v32, %v1543_v28  ;;  %v832_v24 = vadd.f32 %v1918_v31, %v1931_v46 }
 0x138   : > { %v1546_v41 = vpop.f32.mrf.mxu0  ;;  %v1967_v43 = vpop.f32.mrf.mxu1 }
 0x139   : > { %v1421_v44 = vpack.c.bf16 %v945_v38, %v942_v36  ;;  %v789_v42 = vadd.f32 %v1545_v40, %v1931_v46 }
 0x13a   : > { %v1547_v45 = vpop.f32.mrf.mxu0  ;;  %v960_v48 = vpop.f32.mrf.mxu1 }
 0x13b   : > { %1465 = vst [vmem:[%s1941_s8 + $0x40] sm:$0xff] %v1421_v44   ;;  %v1548_v47 = vadd.f32 %v1547_v45, %v1546_v41  ;;  %v950_v55 = vadd.f32 %v1625_v9, %v789_v42 }
 0x13c   : > { %v1549_v49 = vpop.f32.mrf.mxu0  ;;  %v1633_v50 = vpop.f32.mrf.mxu1 }
 0x13d   : > { %v792_v51 = vadd.f32 %v1548_v47, %v1931_v46  ;;  %v982_v63 = vadd.f32 %v1633_v50, %v821_v52 }
 0x13e   : > { %v1550_v53 = vpop.f32.mrf.mxu0  ;;  %v973_v54 = vpop.f32.mrf.mxu1 }
 0x13f   : > { %v953_v56 = vadd.f32 %v1626_v20, %v792_v51  ;;  %v1551_v57 = vadd.f32 %v1550_v53, %v1549_v49  ;;  %v974_v3 = vadd.f32 %v973_v54, %v813_v59 }
 0x140   : > { %v1552_v60 = vpop.f32.mrf.mxu0  ;;  %v1634_v61 = vpop.f32.mrf.mxu1 }
 0x141   : > { %v1426_v62 = vpack.c.bf16 %v953_v56, %v950_v55  ;;  %v985_v0 = vadd.f32 %v1634_v61, %v824_v58  ;;  %v797_v6 = vadd.f32 %v1551_v57, %v1931_v46 }
 0x142   : > { %v1553_v21 = vpop.f32.mrf.mxu0  ;;  %v976_v4 = vpop.f32.mrf.mxu1 }
 0x143   : > { %1466 = vst [vmem:[%s1941_s8 + $0x48] sm:$0xff] %v1426_v62   ;;  %v1446_v5 = vpack.c.bf16 %v985_v0, %v982_v63  ;;  %v1554_v7 = vadd.f32 %v1553_v21, %v1552_v60  ;;  %v977_v8 = vadd.f32 %v976_v4, %v816_v16  ;;  %v958_v39 = vadd.f32 %v957_v34, %v797_v6 }
 0x144   : > { %v1555_v9 = vpop.f32.mrf.mxu0  ;;  %v1637_v10 = vpop.f32.mrf.mxu1 }
 0x145   : > { %1470 = vst [vmem:[%s1941_s8 + $0x68] sm:$0xff] %v1446_v5   ;;  %v800_v11 = vadd.f32 %v1554_v7, %v1931_v46  ;;  %v1441_v12 = vpack.c.bf16 %v977_v8, %v974_v3  ;;  %v998_v22 = vadd.f32 %v1637_v10, %v837_v33 }
 0x146   : > { %v1556_v35 = vpop.f32.mrf.mxu0  ;;  %v989_v37 = vpop.f32.mrf.mxu1 }
 0x147   : > { %v961_v13 = vadd.f32 %v960_v48, %v800_v11  ;;  %1469 = vst [vmem:[%s1941_s8 + $0x60] sm:$0xff] %v1441_v12   ;;  %v1557_v14 = vadd.f32 %v1556_v35, %v1555_v9  ;;  %v990_v25 = vadd.f32 %v989_v37, %v829_v17 }
 0x148   : > { %v1558_v18 = vpop.f32.mrf.mxu0  ;;  %v1638_v19 = vpop.f32.mrf.mxu1 }
 0x149   : > { %v1431_v20 = vpack.c.bf16 %v961_v13, %v958_v39  ;;  %v1001_v23 = vadd.f32 %v1638_v19, %v840_v15  ;;  %v805_v30 = vadd.f32 %v1557_v14, %v1931_v46 }
 0x14a   : > { %v1559_v27 = vpop.f32.mrf.mxu0  ;;  %v992_v28 = vpop.f32.mrf.mxu1 }
 0x14b   : > { %1467 = vst [vmem:[%s1941_s8 + $0x50] sm:$0xff] %v1431_v20   ;;  %v1456_v32 = vpack.c.bf16 %v1001_v23, %v998_v22  ;;  %v1560_v34 = vadd.f32 %v1559_v27, %v1558_v18  ;;  %v993_v36 = vadd.f32 %v992_v28, %v832_v24  ;;  %v966_v40 = vadd.f32 %v1964_v29, %v805_v30 }
 0x14d   : > { %1472 = vst [vmem:[%s1941_s8 + $0x78] sm:$0xff] %v1456_v32   ;;  %v808_v26 = vadd.f32 %v1560_v34, %v1931_v46  ;;  %v1451_v38 = vpack.c.bf16 %v993_v36, %v990_v25 }
 0x14f   : > { %v969_v41 = vadd.f32 %v1967_v43, %v808_v26  ;;  %1471 = vst [vmem:[%s1941_s8 + $0x70] sm:$0xff] %v1451_v38  }
 0x151   : > { %v1436_v31 = vpack.c.bf16 %v969_v41, %v966_v40 }
 0x153   : > { %1468 = vst [vmem:[%s1941_s8 + $0x58] sm:$0xff] %v1436_v31  }
 0x154 PF: > { %s13_s12 = sadd.s32 1, %s1752_s12  }
 0x155   : > { %p10_p4 = scmp.ge.s32.totalorder %s13_s12, 4  }
 0x157   :  { %12 = sbr.rel (!%p10_p4) target bundleno = 1 (0x1), region = 62 }

</bundles_post_ra>
